<compile_context>
chip_gen: v7x
topology: tpu7x:2x2x1
jax: 0.10.0
libtpu: 0.0.40
codegen_flags: <defaults>
</compile_context>

<pallas_src>
import math

import jax
import jax.numpy as jnp
import numpy as np
from jax.experimental import pallas as pl
from jax.experimental.pallas import tpu as pltpu

# full-f32 matmuls in the pure-JAX reference so the comparison is meaningful
jax.config.update("jax_default_matmul_precision", "highest")

_EPSILON = 1e-8
_LANE = 128


def _rup(v, m):
    return (v + m - 1) // m * m


def _int_pow(x, e):
    """x**e for a non-negative integer e via square-and-multiply (VPU only)."""
    e = int(e)
    if e == 0:
        return jnp.ones_like(x)
    result = None
    base = x
    while e > 0:
        if e & 1:
            result = base if result is None else result * base
        e >>= 1
        if e:
            base = base * base
    return result


def _pow(x, p):
    """x**p; multiply chain when p is a non-negative integer (default sigma)."""
    if float(p).is_integer() and p >= 0:
        return _int_pow(x, int(p))
    return jnp.power(x, jnp.float32(p))


def _make_kernel(bb, n_p, hf_p, hg_p, alpha, beta, sigma, matmul_dtype):
    prec = (jax.lax.Precision.HIGHEST if matmul_dtype == jnp.dtype(jnp.float32)
            else jax.lax.Precision.DEFAULT)

    def mm(a, w):
        # matmul operands in matmul_dtype, accumulation always f32
        return jnp.dot(a.astype(matmul_dtype), w, precision=prec,
                       preferred_element_type=jnp.float32)

    def kernel(x_ref, w1_ref, b1_ref, w2_ref, b2_ref, wk2t_ref, wk1t_ref,
               out_ref):
        x = x_ref[...]                                        # (bb, n)

        # ---- fused layer 0: f/g/k hiddens in one MXU pass; each hidden
        #      segment is padded to a 128-lane boundary (pad weights/bias are
        #      zero, so padded lanes carry tanh(0)=0).
        h = jnp.tanh(mm(x, w1_ref[...]) + b1_ref[...])        # (bb, hf_p+hg_p+hk_p)

        # ---- fused block-diagonal layer 1: one MXU pass -> [f | G | k],
        #      each segment n_p (=128-multiple) lanes wide, pad lanes == 0.
        o = mm(h, w2_ref[...]) + b2_ref[...]                  # (bb, 3*n_p)
        f_out = o[:, :n_p]                                    # vreg-aligned slices
        g_out = o[:, n_p:2 * n_p]
        k_out = o[:, 2 * n_p:]
        dx_dt = f_out + g_out

        # ---- analytic JVPs with J_x (no (B,n,n) Jacobian, no bmm):
        #   J_x[b,j,i] = sum_h Wk1[j,h] * (1 - h_k^2)[b,h] * Wk2[h,i]
        #   J_x @ v    = ((v @ Wk2^T) * s) @ Wk1^T
        # Batch(sublane)-stacked: [f_out; g_out] as (2*bb, n_p) rows -> two
        # dense matmuls, no zero-padded block-diagonal weights, no lane concat.
        s_k = 1.0 - jnp.square(h[:, hf_p + hg_p:])            # (bb, hk_p), aligned
        fg = jnp.concatenate([f_out, g_out], axis=0)          # (2*bb, n_p)
        s2 = jnp.concatenate([s_k, s_k], axis=0)              # (2*bb, hk_p)
        v = mm(fg, wk2t_ref[...]) * s2                        # (2*bb, hk_p)
        jvp = mm(v, wk1t_ref[...])                            # (2*bb, n_p)
        j_f = jvp[:bb]                                        # J_x @ f
        j_g = jvp[bb:]                                        # J_x @ G

        # padded lanes of k_out/j_f/j_g are exactly zero -> lane reductions OK
        k_norm = jnp.sqrt(jnp.sum(k_out * k_out, axis=1, keepdims=True))
        jf_norm = jnp.sqrt(jnp.sum(j_f * j_f, axis=1, keepdims=True))
        c1 = jf_norm - alpha * _pow(k_norm, 2.0 * sigma - 1.0)
        c2 = (jnp.sum(k_out * j_g, axis=1, keepdims=True)
              - beta * _pow(k_norm, 2.0 * sigma))
        mask = jnp.logical_or(c1 > _EPSILON, c2 < -_EPSILON)  # (bb, 1)
        dx_upd = jnp.where(mask, jnp.zeros_like(dx_dt), dx_dt)
        out_ref[...] = ((dx_upd + dx_dt) * 0.5).astype(out_ref.dtype)

    return kernel


def pack_manifold_params(params, matmul_dtype=jnp.float32):
    """Fuse + lane-pad the MLP weights once per parameter set.

    params = (wf1, bf1, wf2, bf2,  wg1, bg1, wg2, bg2,  wk1, bk1, wk2, bk2),
    weights stored as (in_features, out_features).  Call this once and reuse
    the result across forward calls (e.g. inside an ODE solver loop).
    """
    (wf1, bf1, wf2, bf2, wg1, bg1, wg2, bg2, wk1, bk1, wk2, bk2) = [
        jnp.asarray(p, jnp.float32) for p in params]

    n = wf1.shape[0]
    hf, hg, hk = wf1.shape[1], wg1.shape[1], wk1.shape[1]
    n_p = _rup(n, _LANE)
    hf_p, hg_p, hk_p = _rup(hf, _LANE), _rup(hg, _LANE), _rup(hk, _LANE)
    htot_p = hf_p + hg_p + hk_p

    # fused layer-0 weight/bias (one matmul instead of three), segments padded
    w1 = jnp.zeros((n, htot_p), jnp.float32)
    w1 = w1.at[:, :hf].set(wf1)
    w1 = w1.at[:, hf_p:hf_p + hg].set(wg1)
    w1 = w1.at[:, hf_p + hg_p:hf_p + hg_p + hk].set(wk1)
    b1 = jnp.zeros((1, htot_p), jnp.float32)
    b1 = b1.at[0, :hf].set(bf1)
    b1 = b1.at[0, hf_p:hf_p + hg].set(bg1)
    b1 = b1.at[0, hf_p + hg_p:hf_p + hg_p + hk].set(bk1)

    # block-diagonal layer-1 weight (one matmul -> [f | G | k]), lane-dense
    # TODO(synk): at production widths on v7x (64 MiB VMEM) this is 3x the real
    # layer-1 footprint (2/3 zeros); un-fuse or tile the 3*n_p axis there.
    w2 = jnp.zeros((htot_p, 3 * n_p), jnp.float32)
    w2 = w2.at[:hf, :n].set(wf2)
    w2 = w2.at[hf_p:hf_p + hg, n_p:n_p + n].set(wg2)
    w2 = w2.at[hf_p + hg_p:hf_p + hg_p + hk, 2 * n_p:2 * n_p + n].set(wk2)
    b2 = jnp.zeros((1, 3 * n_p), jnp.float32)
    b2 = b2.at[0, :n].set(bf2)
    b2 = b2.at[0, n_p:n_p + n].set(bg2)
    b2 = b2.at[0, 2 * n_p:2 * n_p + n].set(bk2)

    # transposed k_func weights for the batch-stacked JVP pair (dense, padded)
    wk2t = jnp.zeros((n_p, hk_p), jnp.float32).at[:n, :hk].set(wk2.T)
    wk1t = jnp.zeros((hk_p, n_p), jnp.float32).at[:hk, :n].set(wk1.T)

    md = jnp.dtype(matmul_dtype)  # bf16 operands = MXU/DMA win on v6e/v5e;
    # biases and all elementwise math stay f32 (v5e VPU/EUP have no bf16 path).
    return dict(
        n=n, n_p=n_p, hf_p=hf_p, hg_p=hg_p, hk_p=hk_p, matmul_dtype=md,
        w1=w1.astype(md), b1=b1, w2=w2.astype(md), b2=b2,
        wk2t=wk2t.astype(md), wk1t=wk1t.astype(md))


def manifold_dynamic_forward(t, x, packed, alpha=60.0, beta=20.0, sigma=5.0,
                             block_b=512):
    """Pallas forward of ManifoldDynamic; `packed` from pack_manifold_params."""
    del t  # TODO(synk): f_model here is autonomous; thread t via SMEM if needed.
    x = jnp.asarray(x, jnp.float32)
    B, n = x.shape
    assert n == packed["n"], "state dim mismatch with packed params"
    n_p = packed["n_p"]

    # Large batch blocks amortize the ~0.35us per-grid-step overhead; a
    # (512, n) f32 block is tiny, so VMEM is not the constraint even on v7x.
    # TODO(synk): on v7x, keep >=2 balanced grid blocks at large B so both
    # TensorCores get work.
    bb = B if B <= block_b else block_b
    grid = (pl.cdiv(B, bb),)
    # NOTE: when B % bb != 0, padded rows of the final block flow through
    # tanh/pow but are never written back; keep all reductions per-row.

    kernel = _make_kernel(bb, n_p, packed["hf_p"], packed["hg_p"],
                          float(alpha), float(beta), float(sigma),
                          packed["matmul_dtype"])

    def wspec(arr):
        # Grid-invariant weights (same block every step).
        # TODO(synk): single-buffer these (pipeline_mode=pl.Buffered(1)) if
        # weight VMEM becomes tight at production widths on v7x.
        return pl.BlockSpec(arr.shape, lambda b: (0, 0))

    w_args = (packed["w1"], packed["b1"], packed["w2"], packed["b2"],
              packed["wk2t"], packed["wk1t"])

    out_p = pl.pallas_call(
        kernel,
        out_shape=jax.ShapeDtypeStruct((B, n_p), jnp.float32),
        grid_spec=pltpu.PrefetchScalarGridSpec(
            num_scalar_prefetch=0,
            grid=grid,
            in_specs=[pl.BlockSpec((bb, n), lambda b: (b, 0))]
                     + [wspec(w) for w in w_args],
            out_specs=pl.BlockSpec((bb, n_p), lambda b: (b, 0))),
        compiler_params=pltpu.CompilerParams(
            dimension_semantics=("parallel",)),
    )(x, *w_args)

    # lane-dense kernel output; real state dim is the first n lanes
    return out_p[:, :n]


# ---------------- plain-JAX reference (autodiff Jacobian, for verification) --
def reference_forward(t, x, params, alpha=60.0, beta=20.0, sigma=5.0):
    (wf1, bf1, wf2, bf2, wg1, bg1, wg2, bg2, wk1, bk1, wk2, bk2) = params

    def f_model(t_, u):
        return jnp.tanh(u @ wf1 + bf1) @ wf2 + bf2

    def g_fn(u):
        return (jnp.tanh(u @ wg1 + bg1) @ wg2 + bg2,)

    def k_func(u):
        return jnp.tanh(u @ wk1 + bk1) @ wk2 + bk2

    f_out = f_model(t, x)
    k_out = k_func(x)
    G_k_out = g_fn(x)[0]
    dx_dt = f_out + G_k_out

    def k_single(u):
        return k_func(u[None, :])[0]

    J_std = jax.vmap(jax.jacfwd(k_single))(x)      # [b, i, j] = dk_i/dx_j
    J_x = jnp.transpose(J_std, (0, 2, 1))          # matches compute_k_jacobian

    k_norm = jnp.linalg.norm(k_out, axis=1)
    Jf = jnp.einsum('bji,bi->bj', J_x, f_out)
    Jg = jnp.einsum('bji,bi->bj', J_x, G_k_out)
    Jf_norm = jnp.linalg.norm(Jf, axis=1)
    c1 = Jf_norm - alpha * k_norm ** (2 * sigma - 1)
    c2 = jnp.sum(k_out * Jg, axis=1) - beta * k_norm ** (2 * sigma)
    mask = (c1 > _EPSILON) | (c2 < -_EPSILON)
    dx_upd = jnp.where(mask[:, None], jnp.zeros_like(dx_dt), dx_dt)
    return (dx_upd + dx_dt) / 2


def _init_linear(key, fan_in, fan_out):
    kw, kb = jax.random.split(key)
    bound = 1.0 / math.sqrt(fan_in)
    w = jax.random.uniform(kw, (fan_in, fan_out), jnp.float32, -bound, bound)
    b = jax.random.uniform(kb, (fan_out,), jnp.float32, -bound, bound)
    return w, b


if __name__ == "__main__":
    B, N = 2, 4          # batch, state dim
    HF = HG = HK = 32    # hidden widths of f_model / g_fn / k_func MLPs

    key = jax.random.PRNGKey(0)
    ks = jax.random.split(key, 7)
    wf1, bf1 = _init_linear(ks[0], N, HF)
    wf2, bf2 = _init_linear(ks[1], HF, N)
    wg1, bg1 = _init_linear(ks[2], N, HG)
    wg2, bg2 = _init_linear(ks[3], HG, N)
    wk1, bk1 = _init_linear(ks[4], N, HK)
    wk2, bk2 = _init_linear(ks[5], HK, N)
    params = (wf1, bf1, wf2, bf2, wg1, bg1, wg2, bg2, wk1, bk1, wk2, bk2)

    x = jax.random.normal(ks[6], (B, N), jnp.float32)
    t = jnp.float32(0.0)

    # pack once (hoisted out of the per-step path), then call the kernel
    packed = pack_manifold_params(params)
    out = manifold_dynamic_forward(t, x, packed)
    out = jax.block_until_ready(out)

    ref = reference_forward(t, x, params)
    np.testing.assert_allclose(np.asarray(out), np.asarray(ref),
                               rtol=1e-4, atol=1e-4)
    assert out.shape == (B, N)
    print("KERNEL_OK")
</pallas_src>

<mosaic_0001>
module attributes {stable_mosaic.version = 11 : i64} {
  func.func @kernel(%arg0: i32, %arg1: memref<2x4xf32, #tpu.memory_space<vmem>>, %arg2: memref<4x384xf32, #tpu.memory_space<vmem>>, %arg3: memref<1x384xf32, #tpu.memory_space<vmem>>, %arg4: memref<384x384xf32, #tpu.memory_space<vmem>>, %arg5: memref<1x384xf32, #tpu.memory_space<vmem>>, %arg6: memref<128x128xf32, #tpu.memory_space<vmem>>, %arg7: memref<128x128xf32, #tpu.memory_space<vmem>>, %arg8: memref<2x128xf32, #tpu.memory_space<vmem>>) attributes {dimension_semantics = [#tpu.dimension_semantics<parallel>], iteration_bounds = array<i64: 1>, scalar_prefetch = 0 : i64, scratch_operands = 0 : i64, tpu.core_type = #tpu.core_type<tc>, window_params = [{transform_indices = @transform_0, window_bounds = array<i64: 2, 4>}, {pipeline_mode = #tpu.pipeline_mode<synchronous>, transform_indices = @transform_1, window_bounds = array<i64: 4, 384>}, {pipeline_mode = #tpu.pipeline_mode<synchronous>, transform_indices = @transform_2, window_bounds = array<i64: 1, 384>}, {pipeline_mode = #tpu.pipeline_mode<synchronous>, transform_indices = @transform_3, window_bounds = array<i64: 384, 384>}, {pipeline_mode = #tpu.pipeline_mode<synchronous>, transform_indices = @transform_4, window_bounds = array<i64: 1, 384>}, {pipeline_mode = #tpu.pipeline_mode<synchronous>, transform_indices = @transform_5, window_bounds = array<i64: 128, 128>}, {pipeline_mode = #tpu.pipeline_mode<synchronous>, transform_indices = @transform_6, window_bounds = array<i64: 128, 128>}, {transform_indices = @transform_7, window_bounds = array<i64: 2, 128>}]} {
    %c0 = arith.constant 0 : index
    %c0_0 = arith.constant 0 : index
    %0 = vector.load %arg1[%c0, %c0_0] : memref<2x4xf32, #tpu.memory_space<vmem>>, vector<2x4xf32>
    %c0_1 = arith.constant 0 : index
    %c0_2 = arith.constant 0 : index
    %1 = vector.load %arg2[%c0_1, %c0_2] : memref<4x384xf32, #tpu.memory_space<vmem>>, vector<4x384xf32>
    %cst = arith.constant dense<0.000000e+00> : vector<2x384xf32>
    %2 = tpu.matmul %0, %1, %cst {dimension_numbers = #tpu.dot_dimension_numbers<[1], [0], [0], [1], [0, 0, 1, 1], [], []>, precision = #tpu.contract_precision<fp32>} : vector<2x4xf32>, vector<4x384xf32>, vector<2x384xf32> -> vector<2x384xf32>
    %c0_3 = arith.constant 0 : index
    %c0_4 = arith.constant 0 : index
    %3 = vector.load %arg3[%c0_3, %c0_4] : memref<1x384xf32, #tpu.memory_space<vmem>>, vector<1x384xf32>
    %4 = vector.broadcast %3 : vector<1x384xf32> to vector<2x384xf32>
    %5 = arith.addf %2, %4 : vector<2x384xf32>
    %6 = math.tanh %5 : vector<2x384xf32>
    %c0_5 = arith.constant 0 : index
    %c0_6 = arith.constant 0 : index
    %7 = vector.load %arg4[%c0_5, %c0_6] : memref<384x384xf32, #tpu.memory_space<vmem>>, vector<384x384xf32>
    %cst_7 = arith.constant dense<0.000000e+00> : vector<2x384xf32>
    %8 = tpu.matmul %6, %7, %cst_7 {dimension_numbers = #tpu.dot_dimension_numbers<[1], [0], [0], [1], [0, 0, 1, 1], [], []>, precision = #tpu.contract_precision<fp32>} : vector<2x384xf32>, vector<384x384xf32>, vector<2x384xf32> -> vector<2x384xf32>
    %c0_8 = arith.constant 0 : index
    %c0_9 = arith.constant 0 : index
    %9 = vector.load %arg5[%c0_8, %c0_9] : memref<1x384xf32, #tpu.memory_space<vmem>>, vector<1x384xf32>
    %10 = vector.broadcast %9 : vector<1x384xf32> to vector<2x384xf32>
    %11 = arith.addf %8, %10 : vector<2x384xf32>
    %12 = vector.extract_strided_slice %11 {offsets = [0, 0], sizes = [2, 128], strides = [1, 1]} : vector<2x384xf32> to vector<2x128xf32>
    %13 = vector.extract_strided_slice %11 {offsets = [0, 128], sizes = [2, 128], strides = [1, 1]} : vector<2x384xf32> to vector<2x128xf32>
    %14 = vector.extract_strided_slice %11 {offsets = [0, 256], sizes = [2, 128], strides = [1, 1]} : vector<2x384xf32> to vector<2x128xf32>
    %15 = arith.addf %12, %13 : vector<2x128xf32>
    %16 = vector.extract_strided_slice %6 {offsets = [0, 256], sizes = [2, 128], strides = [1, 1]} : vector<2x384xf32> to vector<2x128xf32>
    %17 = arith.mulf %16, %16 : vector<2x128xf32>
    %cst_10 = arith.constant 1.000000e+00 : f32
    %18 = vector.broadcast %cst_10 : f32 to vector<2x128xf32>
    %19 = arith.subf %18, %17 : vector<2x128xf32>
    %20 = tpu.concatenate %12, %13 in 0 : vector<2x128xf32>, vector<2x128xf32> -> vector<4x128xf32>
    %21 = tpu.concatenate %19, %19 in 0 : vector<2x128xf32>, vector<2x128xf32> -> vector<4x128xf32>
    %c0_11 = arith.constant 0 : index
    %c0_12 = arith.constant 0 : index
    %22 = vector.load %arg6[%c0_11, %c0_12] : memref<128x128xf32, #tpu.memory_space<vmem>>, vector<128x128xf32>
    %cst_13 = arith.constant dense<0.000000e+00> : vector<4x128xf32>
    %23 = tpu.matmul %20, %22, %cst_13 {dimension_numbers = #tpu.dot_dimension_numbers<[1], [0], [0], [1], [0, 0, 1, 1], [], []>, precision = #tpu.contract_precision<fp32>} : vector<4x128xf32>, vector<128x128xf32>, vector<4x128xf32> -> vector<4x128xf32>
    %24 = arith.mulf %23, %21 : vector<4x128xf32>
    %c0_14 = arith.constant 0 : index
    %c0_15 = arith.constant 0 : index
    %25 = vector.load %arg7[%c0_14, %c0_15] : memref<128x128xf32, #tpu.memory_space<vmem>>, vector<128x128xf32>
    %cst_16 = arith.constant dense<0.000000e+00> : vector<4x128xf32>
    %26 = tpu.matmul %24, %25, %cst_16 {dimension_numbers = #tpu.dot_dimension_numbers<[1], [0], [0], [1], [0, 0, 1, 1], [], []>, precision = #tpu.contract_precision<fp32>} : vector<4x128xf32>, vector<128x128xf32>, vector<4x128xf32> -> vector<4x128xf32>
    %27 = vector.extract_strided_slice %26 {offsets = [0, 0], sizes = [2, 128], strides = [1, 1]} : vector<4x128xf32> to vector<2x128xf32>
    %28 = vector.extract_strided_slice %26 {offsets = [2, 0], sizes = [2, 128], strides = [1, 1]} : vector<4x128xf32> to vector<2x128xf32>
    %29 = arith.mulf %14, %14 : vector<2x128xf32>
    %cst_17 = arith.constant dense<0.000000e+00> : vector<2xf32>
    %30 = vector.multi_reduction <add>, %29, %cst_17 [1] : vector<2x128xf32> to vector<2xf32>
    %31 = vector.shape_cast %30 : vector<2xf32> to vector<2x1xf32>
    %32 = math.sqrt %31 : vector<2x1xf32>
    %33 = arith.mulf %27, %27 : vector<2x128xf32>
    %cst_18 = arith.constant dense<0.000000e+00> : vector<2xf32>
    %34 = vector.multi_reduction <add>, %33, %cst_18 [1] : vector<2x128xf32> to vector<2xf32>
    %35 = vector.shape_cast %34 : vector<2xf32> to vector<2x1xf32>
    %36 = math.sqrt %35 : vector<2x1xf32>
    %37 = arith.mulf %32, %32 : vector<2x1xf32>
    %38 = arith.mulf %37, %37 : vector<2x1xf32>
    %39 = arith.mulf %38, %38 : vector<2x1xf32>
    %40 = arith.mulf %32, %39 : vector<2x1xf32>
    %cst_19 = arith.constant 6.000000e+01 : f32
    %41 = vector.broadcast %cst_19 : f32 to vector<2x1xf32>
    %42 = arith.mulf %41, %40 : vector<2x1xf32>
    %43 = arith.subf %36, %42 : vector<2x1xf32>
    %44 = arith.mulf %14, %28 : vector<2x128xf32>
    %cst_20 = arith.constant dense<0.000000e+00> : vector<2xf32>
    %45 = vector.multi_reduction <add>, %44, %cst_20 [1] : vector<2x128xf32> to vector<2xf32>
    %46 = vector.shape_cast %45 : vector<2xf32> to vector<2x1xf32>
    %47 = arith.mulf %32, %32 : vector<2x1xf32>
    %48 = arith.mulf %47, %47 : vector<2x1xf32>
    %49 = arith.mulf %48, %48 : vector<2x1xf32>
    %50 = arith.mulf %47, %49 : vector<2x1xf32>
    %cst_21 = arith.constant 2.000000e+01 : f32
    %51 = vector.broadcast %cst_21 : f32 to vector<2x1xf32>
    %52 = arith.mulf %51, %50 : vector<2x1xf32>
    %53 = arith.subf %46, %52 : vector<2x1xf32>
    %cst_22 = arith.constant 9.99999993E-9 : f32
    %54 = vector.broadcast %cst_22 : f32 to vector<2x1xf32>
    %55 = arith.cmpf ogt, %43, %54 : vector<2x1xf32>
    %cst_23 = arith.constant -9.99999993E-9 : f32
    %56 = vector.broadcast %cst_23 : f32 to vector<2x1xf32>
    %57 = arith.cmpf olt, %53, %56 : vector<2x1xf32>
    %58 = arith.ori %55, %57 : vector<2x1xi1>
    %cst_24 = arith.constant 0.000000e+00 : f32
    %59 = vector.broadcast %cst_24 : f32 to vector<2x128xf32>
    %60 = vector.shape_cast %58 : vector<2x1xi1> to vector<2x1xi1>
    %61 = vector.broadcast %60 : vector<2x1xi1> to vector<2x128xi1>
    %62 = arith.select %61, %59, %15 : vector<2x128xi1>, vector<2x128xf32>
    %63 = arith.addf %62, %15 : vector<2x128xf32>
    %cst_25 = arith.constant 5.000000e-01 : f32
    %64 = vector.broadcast %cst_25 : f32 to vector<2x128xf32>
    %65 = arith.mulf %63, %64 : vector<2x128xf32>
    %c0_26 = arith.constant 0 : index
    %c0_27 = arith.constant 0 : index
    %66 = vector.load %arg8[%c0_26, %c0_27] : memref<2x128xf32, #tpu.memory_space<vmem>>, vector<2x128xf32>
    tpu.vector_store %arg8[%c0_26, %c0_27], %65 {strides = array<i32>} : memref<2x128xf32, #tpu.memory_space<vmem>>, vector<2x128xf32>,
    return
  }
  func.func @transform_0(%arg0: i32) -> (i32, i32) {
    %c0_i32 = arith.constant 0 : i32
    %c0_i32_0 = arith.constant 0 : i32
    return %arg0, %c0_i32 : i32, i32
  }
  func.func @transform_1(%arg0: i32) -> (i32, i32) {
    %c0_i32 = arith.constant 0 : i32
    %c0_i32_0 = arith.constant 0 : i32
    %c0_i32_1 = arith.constant 0 : i32
    return %c0_i32, %c0_i32_0 : i32, i32
  }
  func.func @transform_2(%arg0: i32) -> (i32, i32) {
    %c0_i32 = arith.constant 0 : i32
    %c0_i32_0 = arith.constant 0 : i32
    %c0_i32_1 = arith.constant 0 : i32
    return %c0_i32, %c0_i32_0 : i32, i32
  }
  func.func @transform_3(%arg0: i32) -> (i32, i32) {
    %c0_i32 = arith.constant 0 : i32
    %c0_i32_0 = arith.constant 0 : i32
    %c0_i32_1 = arith.constant 0 : i32
    return %c0_i32, %c0_i32_0 : i32, i32
  }
  func.func @transform_4(%arg0: i32) -> (i32, i32) {
    %c0_i32 = arith.constant 0 : i32
    %c0_i32_0 = arith.constant 0 : i32
    %c0_i32_1 = arith.constant 0 : i32
    return %c0_i32, %c0_i32_0 : i32, i32
  }
  func.func @transform_5(%arg0: i32) -> (i32, i32) {
    %c0_i32 = arith.constant 0 : i32
    %c0_i32_0 = arith.constant 0 : i32
    %c0_i32_1 = arith.constant 0 : i32
    return %c0_i32, %c0_i32_0 : i32, i32
  }
  func.func @transform_6(%arg0: i32) -> (i32, i32) {
    %c0_i32 = arith.constant 0 : i32
    %c0_i32_0 = arith.constant 0 : i32
    %c0_i32_1 = arith.constant 0 : i32
    return %c0_i32, %c0_i32_0 : i32, i32
  }
  func.func @transform_7(%arg0: i32) -> (i32, i32) {
    %c0_i32 = arith.constant 0 : i32
    %c0_i32_0 = arith.constant 0 : i32
    return %arg0, %c0_i32 : i32, i32
  }
}

</mosaic_0001>

<bundles_post_ra>
// kernel: tpu_custom_call.1
= control target key start
LH: loop header
LB: loop body
LE: loop exit
PB: predicated region body
PF: predicated region fallthrough
CT: control target
= control target key end

     0   :  { %12 = vsyncpa [#allocation3], 0  ;;  %s12677_s0 = inlined_call_operand.hbm [shape: f32[2,4], index: 0, kind: input, shape index: {}]   ;;  %s12678_s1 = inlined_call_operand.hbm [shape: f32[4,384], index: 1, kind: input, shape index: {}]   ;;  %s12679_s2 = inlined_call_operand.vmem [shape: f32[1,384], index: 2, kind: input, shape index: {}]   ;;  %s12680_s3 = inlined_call_operand.hbm [shape: f32[384,384], index: 3, kind: input, shape index: {}]   ;;  %s12681_s4 = inlined_call_operand.vmem [shape: f32[1,384], index: 4, kind: input, shape index: {}]   ;;  %s12682_s5 = inlined_call_operand.hbm [shape: f32[128,128], index: 5, kind: input, shape index: {}]   ;;  %s12683_s6 = inlined_call_operand.hbm [shape: f32[128,128], index: 6, kind: input, shape index: {}]   ;;  %s12684_s7 = inlined_call_operand.hbm [shape: f32[2,128], index: 7, kind: output, shape index: {}]  }
   0x1   :  { %13 = vsyncpa [#allocation6], 0 }
   0x2   :  { %14 = vsyncpa [#allocation9], 0 }
   0x3   :  { %15 = vsyncpa [#allocation4], 0  ;;  %s8863_s24 = smov [#allocation5]   ;;  %s8864_s26 = smov [#allocation8]  }
   0x4   :  { %s32_s25 = sshll.u32 %s8863_s24, 4  ;;  %s57_s27 = sshll.u32 %s8864_s26, 4  ;;  %s33_s25 = int_to_ptr.vmem [resolvable:$true] %s32_s25  ;;  %s8916_s27 = int_to_ptr.vmem [resolvable:$true] %s57_s27 }
   0x5   :  { %s8723_s30 = scalar_lea.hbm %s12678_s1, 192 }
   0x6   :  { %p8724_p0 = scmp.ne.s32.totalorder %s12678_s1, %s8723_s30  ;;  %p8727_p1 = scmp.lt.u32.totalorder %s8723_s30, %s12678_s1 }
   0x8   :  { %p8729_p2 = pnand %p8727_p1, %p8724_p0 }
   0xa   :  { %8732 = shalt.err (!%p8729_p2)
}
   0xb   :  { %s8733_s12 = scalar_lea.vmem %s33_s25, 192  ;;  %p8738_p4 = scmp.lt.s32.totalorder %s33_s25, %s33_s25 }
   0xc   :  { %p8734_p3 = scmp.ne.s32.totalorder %s33_s25, %s8733_s12  ;;  %p8739_p5 = scmp.lt.s32.totalorder %s8733_s12, %s8733_s12 }
   0xe   :  { %p8740_p6 = por %p8739_p5, %p8738_p4 }
  0x10   :  { %p8741_p7 = pnand %p8740_p6, %p8734_p3 }
  0x12   :  { %8744 = shalt.err (!%p8741_p7)
}
  0x13   :  { %35 = dma.hbm_to_vmem [thread:$0]  %s12678_s1, 192, %s33_s25, [#allocation6]  }
  0x14   :  { %s8745_s17 = scalar_lea.hbm %s12682_s5, 2048 }
  0x15   :  { %p8746_p8 = scmp.ne.s32.totalorder %s12682_s5, %s8745_s17  ;;  %p8749_p9 = scmp.lt.u32.totalorder %s8745_s17, %s12682_s5 }
  0x17   :  { %p8751_p10 = pnand %p8749_p9, %p8746_p8 }
  0x19   :  { %8754 = shalt.err (!%p8751_p10)
}
  0x1a   :  { %s8755_s22 = scalar_lea.vmem %s8916_s27, 2048  ;;  %p8760_p12 = scmp.lt.s32.totalorder %s8916_s27, %s8916_s27 }
  0x1b   :  { %p8756_p11 = scmp.ne.s32.totalorder %s8916_s27, %s8755_s22  ;;  %p8761_p13 = scmp.lt.s32.totalorder %s8755_s22, %s8755_s22 }
  0x1d   :  { %p8762_p0 = por %p8761_p13, %p8760_p12 }
  0x1f   :  { %p8763_p1 = pnand %p8762_p0, %p8756_p11 }
  0x21   :  { %8766 = shalt.err (!%p8763_p1)
}
  0x22   :  { %s8865_s1 = smov 128   ;;  %s8866_s23 = smov 8  }
  0x23   :  { %63 = dma.hbm_to_vmem [thread:$0]  %s12682_s5, 2048, %s8916_s27, [#allocation9], %s8865_s1, %s8865_s1, %s8866_s23  }
  0x24   :  { %s8867_s26 = smov [#allocation2]   ;;  %s8868_s29 = smov [#allocation7]  }
  0x25   :  { %s22_s28 = sshll.u32 %s8867_s26, 4  ;;  %s43_s30 = sshll.u32 %s8868_s29, 4  ;;  %s23_s28 = int_to_ptr.vmem [resolvable:$true] %s22_s28  ;;  %s8950_s30 = int_to_ptr.vmem [resolvable:$true] %s43_s30 }
  0x26   :  { %s8767_s10 = scalar_lea.hbm %s12677_s0, 32 }
  0x27   :  { %p8768_p2 = scmp.ne.s32.totalorder %s12677_s0, %s8767_s10  ;;  %p8771_p3 = scmp.lt.u32.totalorder %s8767_s10, %s12677_s0 }
  0x29   :  { %p8773_p4 = pnand %p8771_p3, %p8768_p2 }
  0x2b   :  { %8776 = shalt.err (!%p8773_p4)
}
  0x2c   :  { %s8777_s5 = scalar_lea.vmem %s23_s28, 32  ;;  %p8782_p6 = scmp.lt.s32.totalorder %s23_s28, %s23_s28 }
  0x2d   :  { %p8778_p5 = scmp.ne.s32.totalorder %s23_s28, %s8777_s5  ;;  %p8783_p7 = scmp.lt.s32.totalorder %s8777_s5, %s8777_s5 }
  0x2f   :  { %p8784_p8 = por %p8783_p7, %p8782_p6 }
  0x31   :  { %p8785_p9 = pnand %p8784_p8, %p8778_p5 }
  0x33   :  { %8788 = shalt.err (!%p8785_p9)
}
  0x34   :  { %25 = dma.hbm_to_vmem [thread:$0]  %s12677_s0, 32, %s23_s28, [#allocation3]  }
  0x35   :  { %s8789_s18 = scalar_lea.hbm %s12680_s3, 18432 }
  0x36   :  { %p8790_p10 = scmp.ne.s32.totalorder %s12680_s3, %s8789_s18  ;;  %p8793_p11 = scmp.lt.u32.totalorder %s8789_s18, %s12680_s3 }
  0x38   :  { %p8795_p12 = pnand %p8793_p11, %p8790_p10 }
  0x3a   :  { %8798 = shalt.err (!%p8795_p12)
}
  0x3b   :  { %s8799_s24 = scalar_lea.vmem %s8950_s30, 18432  ;;  %p8804_p0 = scmp.lt.s32.totalorder %s8950_s30, %s8950_s30 }
  0x3c   :  { %p8800_p13 = scmp.ne.s32.totalorder %s8950_s30, %s8799_s24  ;;  %p8805_p1 = scmp.lt.s32.totalorder %s8799_s24, %s8799_s24 }
  0x3e   :  { %p8806_p2 = por %p8805_p1, %p8804_p0 }
  0x40   :  { %p8807_p3 = pnand %p8806_p2, %p8800_p13 }
  0x42   :  { %8810 = shalt.err (!%p8807_p3)
}
  0x43   :  { %s8869_s0 = smov 384   ;;  %s8870_s25 = smov 24  }
  0x44   :  { %49 = dma.hbm_to_vmem [thread:$0]  %s12680_s3, 18432, %s8950_s30, [#allocation6], %s8869_s0, %s8869_s0, %s8870_s25  }
  0x45   :  { %s8871_s29 = smov [#allocation10]   ;;  %s8811_s11 = scalar_lea.hbm %s12683_s6, 2048 }
  0x46   :  { %s69_s8 = sshll.u32 %s8871_s29, 4  ;;  %p8812_p4 = scmp.ne.s32.totalorder %s12683_s6, %s8811_s11  ;;  %s70_s8 = int_to_ptr.vmem [resolvable:$true] %s69_s8 }
  0x47   :  { %p8815_p5 = scmp.lt.u32.totalorder %s8811_s11, %s12683_s6 }
  0x49   :  { %p8817_p6 = pnand %p8815_p5, %p8812_p4 }
  0x4b   :  { %8820 = shalt.err (!%p8817_p6)
}
  0x4c   :  { %s8821_s27 = scalar_lea.vmem %s70_s8, 2048  ;;  %p8826_p8 = scmp.lt.s32.totalorder %s70_s8, %s70_s8 }
  0x4d   :  { %p8822_p7 = scmp.ne.s32.totalorder %s70_s8, %s8821_s27  ;;  %p8827_p9 = scmp.lt.s32.totalorder %s8821_s27, %s8821_s27 }
  0x4f   :  { %p8828_p10 = por %p8827_p9, %p8826_p8 }
  0x51   :  { %p8829_p11 = pnand %p8828_p10, %p8822_p7 }
  0x53   :  { %8832 = shalt.err (!%p8829_p11)
}
  0x54   :  { %75 = dma.hbm_to_vmem [thread:$0]  %s12683_s6, 2048, %s70_s8, [#allocation9], %s8865_s1, %s8865_s1, %s8866_s23  }
  0x55   :  { %8855 = dma.done.wait [#allocation3], 32  }
  0x56   :  { %8856 = vsyncadd [#allocation3], 4294967264 }
  0x57   :  { %8857 = dma.done.wait [#allocation6], 18624  }
  0x58   :  { %8858 = vsyncadd [#allocation6], 4294948672 }
  0x59   :  { %8859 = dma.done.wait [#allocation9], 4096  }
  0x5a   :  { %8860 = vsyncadd [#allocation9], 4294963200  ;;  %v12709_v0 = vmov 0.0   ;;  %vm8873_vm0 = vmmov 0   ;;  %vm118_vm1 = vcmask 1043456   ;;  %vm114_vm2 = vcmask 31744  }
  0x5b   :  { %191 = vmatprep.mubr.f32.mxu0 %v12709_v0  ;;  %6761 = vmatprep.subr.mxu1 %v12709_v0  ;;  %v92_v1 = vld [vmem:[#allocation5] sm:$0xff]  ;;  %v91_v2 = vld [vmem:[#allocation2] sm:$0x3]  ;;  %v93_v3 = vld [vmem:[#allocation5 + $0x8] sm:$0xf]  ;;  %vm4848_vm3 = vcmask 1041408  }
  0x5c   :  { %6763 = vmatprep.mubr.msk.f32.mxu1 %vm8873_vm0, %v12709_v0  ;;  %v113_v4 = vcombine.high %v92_v1, %v92_v1  ;;  %v119_v5 = vsel %vm118_vm1, %v92_v1, 0  ;;  %v116_v6 = vsel %vm114_vm2, %v91_v2, 0  ;;  %v123_v7 = vsel %vm118_vm1, %v93_v3, 0  ;;  %v9018_v16 = vld [vmem:[#allocation7 + $0x8] sm:$0xff]  ;;  %v9020_v17 = vld [vmem:[#allocation7 + $0x20] sm:$0xff]  ;;  %v9037_v25 = vld [vmem:[#allocation7 + $0x18] sm:$0xff] }
  0x5d   :  { %v9000_v8 = vand.u32 4294901760, %v119_v5  ;;  %v9002_v9 = vand.u32 4294901760, %v116_v6  ;;  %v9004_v10 = vand.u32 4294901760, %v123_v7  ;;  %v9032_v22 = vld [vmem:[#allocation7] sm:$0xff]  ;;  %v1200_v23 = vand.u32 4294901760, %v9018_v16  ;;  %v9049_v31 = vld [vmem:[#allocation7 + $0x38] sm:$0xff] }
  0x5e   :  { %v121_v11 = vsel %vm118_vm1, %v113_v4, 0  ;;  %v1204_v24 = vand.u32 4294901760, %v9020_v17  ;;  %v1202_v30 = vand.u32 4294901760, %v9032_v22  ;;  %v9051_v32 = vld [vmem:[#allocation7 + $0x50] sm:$0xff]  ;;  %v1206_v36 = vand.u32 4294901760, %v9037_v25  ;;  %v9071_v44 = vld [vmem:[#allocation7 + $0x48] sm:$0xff] }
  0x5f   :  { %v9006_v12 = vand.u32 4294901760, %v121_v11  ;;  %v9009_v13 = vsub.f32 %v119_v5, %v9000_v8  ;;  %v9012_v14 = vsub.f32 %v116_v6, %v9002_v9  ;;  %6762 = vmatpush3.msra.mxu1 %v9004_v10  ;;  %v9016_v15 = vsub.f32 %v123_v7, %v9004_v10  ;;  %v9069_v43 = vld [vmem:[#allocation7 + $0x30] sm:$0xff]  ;;  %v9091_v51 = vld [vmem:[#allocation7 + $0x68] sm:$0xff]  ;;  %v9093_v52 = vld [vmem:[#allocation7 + $0x80] sm:$0xff] }
  0x60   :  { %6766 = vmatprep.subr.mxu1 %v12709_v0  ;;  %v9060_v38 = vsub.f32 %v9018_v16, %v1200_v23  ;;  %v9065_v39 = vsub.f32 %v9020_v17, %v1204_v24  ;;  %v12701_v41 = vand.u32 4294901760, %v9049_v31  ;;  %v12699_v42 = vand.u32 4294901760, %v9051_v32  ;;  %v9107_v56 = vld [vmem:[#allocation7 + $0x60] sm:$0xff]  ;;  %v9112_v60 = vld [vmem:[#allocation7 + $0x78] sm:$0xff] }
  0x61   :  { %126 = vmatprep.subr.mxu0 %v9006_v12  ;;  %v9025_v18 = vand.u32 4294901760, %v9012_v14  ;;  %v9028_v19 = vsub.f32 %v121_v11, %v9006_v12  ;;  %v12697_v20 = vand.u32 4294901760, %v9009_v13  ;;  %v12695_v21 = vand.u32 4294901760, %v9016_v15  ;;  %v9130_v2 = vld [vmem:[#allocation7 + $0x98] sm:$0xff]  ;;  %v9143_v11 = vld [vmem:[#allocation7 + $0xb0] sm:$0xff]  ;;  %v9264_v17 = vld [vmem:[#allocation7 + $0xc0] sm:$0xff] }
  0x62   :  { %128 = vmatpush1.msra.mxu0 %v9000_v8  ;;  %13189 = vst [vmem:[#allocation16_spill] sm:$0xff] %v9060_v38  ;;  %13190 = vst [vmem:[#allocation17_spill] sm:$0xff] %v9065_v39  ;;  %v9077_v45 = vsub.f32 %v9032_v22, %v1202_v30  ;;  %v9084_v46 = vsub.f32 %v9037_v25, %v1206_v36  ;;  %v12688_v47 = vand.u32 4294901760, %v9060_v38  ;;  %v12687_v48 = vand.u32 4294901760, %v9065_v39 }
  0x63   :  { %v195_v26 = vsub.f32 %v9012_v14, %v9025_v18  ;;  %v205_v27 = vand.u32 4294901760, %v9028_v19  ;;  %v212_v28 = vsub.f32 %v9009_v13, %v12697_v20  ;;  %v670_v29 = vsub.f32 %v9016_v15, %v12695_v21 }
  0x64   :  { %13191 = vst [vmem:[#allocation18_spill] sm:$0xff] %v9084_v46  ;;  %v12693_v49 = vand.u32 4294901760, %v9069_v43  ;;  %v12691_v50 = vand.u32 4294901760, %v9071_v44  ;;  %v9099_v53 = vsub.f32 %v9049_v31, %v12701_v41  ;;  %v9104_v54 = vsub.f32 %v9051_v32, %v12699_v42  ;;  %v9214_v41 = vld [vmem:[#allocation7 + $0xe0] sm:$0xff] }
  0x65   :  { %v196_v33 = vand.u32 4294901760, %v195_v26  ;;  %v206_v34 = vsub.f32 %v9028_v19, %v205_v27  ;;  %v671_v35 = vand.u32 4294901760, %v670_v29  ;;  %v213_v37 = vand.u32 4294901760, %v212_v28 }
  0x66   :  { %13192 = vst [vmem:[#allocation19_spill] sm:$0xff] %v9099_v53  ;;  %13193 = vst [vmem:[#allocation20_spill] sm:$0xff] %v9104_v54  ;;  %v12686_v55 = vand.u32 4294901760, %v9077_v45  ;;  %v12685_v57 = vand.u32 4294901760, %v9084_v46  ;;  %v12690_v58 = vand.u32 4294901760, %v9091_v51  ;;  %v12689_v59 = vand.u32 4294901760, %v9093_v52 }
  0x67   :  { %197 = vmatmul.mubr.f32.vlgmr.msra.gmra.mrb[0].mxu0 %v196_v33  ;;  %v207_v40 = vand.u32 4294901760, %v206_v34  ;;  %6764 = vmatmul.mubr.f32.vlgmr.msra.gmra.mrb[0].mxu1 %v196_v33  ;;  %v1348_v61 = vsub.f32 %v9060_v38, %v12688_v47  ;;  %v1360_v62 = vsub.f32 %v9065_v39, %v12687_v48  ;;  %v9123_v63 = vsub.f32 %v9069_v43, %v12693_v49  ;;  %v9161_v34 = vld [vmem:[#allocation7 + $0x90] sm:$0xff] }
  0x68   :  { %277 = vmatprep.mubr.f32.mxu0 %v12709_v0  ;;  %6767 = vmatpush3.msra.mxu1 %v671_v35  ;;  %v9128_v1 = vsub.f32 %v9071_v44, %v12691_v50  ;;  %v12692_v3 = vand.u32 4294901760, %v9099_v53  ;;  %v12694_v4 = vand.u32 4294901760, %v9104_v54  ;;  %v12696_v5 = vand.u32 4294901760, %v9107_v56  ;;  %v9163_v35 = vld [vmem:[#allocation7 + $0xa8] sm:$0xff] }
  0x69   :  { %208 = vmatprep.subr.mxu0 %v207_v40  ;;  %6768 = vmatprep.mubr.msk.f32.mxu1 %vm8873_vm0, %v12709_v0  ;;  %13194 = vst [vmem:[#allocation21_spill] sm:$0xff] %v9123_v63  ;;  %v1354_v6 = vsub.f32 %v9077_v45, %v12686_v55  ;;  %v12698_v7 = vand.u32 4294901760, %v9112_v60  ;;  %v1366_v26 = vsub.f32 %v9084_v46, %v12685_v57  ;;  %v12700_v33 = vand.u32 4294901760, %v9130_v2 }
  0x6a   :  { %214 = vmatpush1.msra.mxu0 %v213_v37  ;;  %6771 = vmatprep.subr.mxu1 %v12709_v0  ;;  %13195 = vst [vmem:[#allocation22_spill] sm:$0xff] %v9128_v1  ;;  %v9153_v28 = vsub.f32 %v9091_v51, %v12690_v58  ;;  %v9158_v29 = vsub.f32 %v9093_v52, %v12689_v59  ;;  %v1349_v37 = vand.u32 4294901760, %v1348_v61  ;;  %v1361_v40 = vand.u32 4294901760, %v1360_v62 }
  0x6b   :  { %287 = vmatprep.subr.mxu0 %v9028_v19  ;;  %v12702_v57 = vand.u32 4294901760, %v9123_v63  ;;  %v12703_v55 = vand.u32 4294901760, %v9128_v1  ;;  %v1372_v48 = vsub.f32 %v9099_v53, %v12692_v3  ;;  %v1384_v47 = vsub.f32 %v9104_v54, %v12694_v4 }
  0x6c   :  { %13196 = vst [vmem:[#allocation23_spill] sm:$0xff] %v9153_v28  ;;  %13197 = vst [vmem:[#allocation24_spill] sm:$0xff] %v9158_v29  ;;  %v9179_v59 = vsub.f32 %v9107_v56, %v12696_v5  ;;  %v12704_v61 = vand.u32 4294901760, %v9143_v11  ;;  %v1355_v62 = vand.u32 4294901760, %v1354_v6  ;;  %v9185_v58 = vsub.f32 %v9112_v60, %v12698_v7  ;;  %v9196_v6 = vld [vmem:[#allocation7 + $0xc8] sm:$0xff] }
  0x6d   :  { %v12705_v50 = vand.u32 4294901760, %v9161_v34  ;;  %v12706_v3 = vand.u32 4294901760, %v9163_v35  ;;  %v1367_v49 = vand.u32 4294901760, %v1366_v26  ;;  %v12708_v4 = vand.u32 4294901760, %v9153_v28 }
  0x6e   :  { %13198 = vst [vmem:[#allocation25_spill] sm:$0xff] %v9179_v59  ;;  %13199 = vst [vmem:[#allocation26_spill] sm:$0xff] %v9185_v58  ;;  %v12707_v21 = vand.u32 4294901760, %v9158_v29  ;;  %v9194_v5 = vsub.f32 %v9130_v2, %v12700_v33  ;;  %v9198_v20 = vpack.c.bf16 %v1361_v40, %v1349_v37  ;;  %v1378_v7 = vsub.f32 %v9123_v63, %v12702_v57 }
  0x6f   :  { %279 = vmatmul.mubr.f32.vlgmr.msra.gmra.mrb[0].mxu0 %v9002_v9  ;;  %6769 = vmatmul.mubr.f32.vlgmr.msra.gmra.mrb[0].mxu1 %v9002_v9  ;;  %v9206_v26 = vsub.f32 %v9143_v11, %v12704_v61  ;;  %v1373_v42 = vand.u32 4294901760, %v1372_v48  ;;  %v1385_v33 = vand.u32 4294901760, %v1384_v47  ;;  %v1390_v37 = vsub.f32 %v9128_v1, %v12703_v55 }
  0x70   :  { %290 = vmatpush1.msra.mxu0 %v9009_v13  ;;  %353 = vmatprep.mubr.f32.mxu0 %v12709_v0  ;;  %13200 = vst [vmem:[#allocation27_spill] sm:$0xff] %v9194_v5  ;;  %v12711_v40 = vand.u32 4294901760, %v9179_v59  ;;  %v12712_v57 = vand.u32 4294901760, %v9185_v58  ;;  %v9227_v47 = vsub.f32 %v9163_v35, %v12706_v3  ;;  %v12713_v48 = vand.u32 4294901760, %v9196_v6 }
  0x71   :  { %363 = vmatprep.subr.mxu0 %v9006_v12  ;;  %6772 = vmatpush3.msra.mxu1 %v9016_v15  ;;  %13201 = vst [vmem:[#allocation28_spill] sm:$0xff] %v9206_v26  ;;  %v9233_v55 = vpack.c.bf16 %v1367_v49, %v1355_v62  ;;  %v1396_v61 = vsub.f32 %v9153_v28, %v12708_v4  ;;  %v12715_v3 = vand.u32 4294901760, %v9194_v5  ;;  %v12714_v49 = vand.u32 4294901760, %v9206_v26 }
  0x72   :  { %6773 = vmatprep.mubr.msk.f32.mxu1 %vm8873_vm0, %v12709_v0  ;;  %6776 = vmatprep.subr.mxu1 %v12709_v0  ;;  %13203 = vst [vmem:[#allocation30_spill] sm:$0xff] %v9227_v47  ;;  %v9249_v19 = vpack.c.bf16 %v1204_v24, %v1200_v23  ;;  %v12716_v62 = vand.u32 4294901760, %v9214_v41  ;;  %v1379_v4 = vand.u32 4294901760, %v1378_v7  ;;  %v1402_v16 = vsub.f32 %v9179_v59, %v12711_v40  ;;  %v9266_v23 = vld [vmem:[#allocation7 + $0xd8] sm:$0xff] }
  0x73   :  { %v1414_v22 = vsub.f32 %v9185_v58, %v12712_v57  ;;  %v1397_v7 = vand.u32 4294901760, %v1396_v61  ;;  %v13208_v40 = vand.u32 4294901760, %v9051_v32  ;;  %v1420_v25 = vsub.f32 %v9194_v5, %v12715_v3 }
  0x74   :  { %13204 = vst [vmem:[#allocation31_spill] sm:$0xff] %v9249_v19  ;;  %v9297_v24 = vsub.f32 %v9214_v41, %v12716_v62  ;;  %v1403_v61 = vand.u32 4294901760, %v1402_v16  ;;  %v13212_v3 = vmov 0.0   ;;  %v9319_v16 = vld [vmem:[#allocation7 + $0x108] sm:$0xff]  ;;  %v13232_v5 = vand.u32 4294901760, %v9112_v60 }
  0x75   :  { %v1415_v62 = vand.u32 4294901760, %v1414_v22  ;;  %v1421_v22 = vand.u32 4294901760, %v1420_v25  ;;  %v13224_v25 = vand.u32 4294901760, %v9266_v23 }
  0x76   :  { %13210 = vst [vmem:[#allocation35_spill] sm:$0xff] %v9297_v24 }
  0x77   :  { %356 = vmatmul.mubr.f32.vlgmr.msra.gmra.mrb[0].mxu0 %v9012_v14  ;;  %6774 = vmatmul.mubr.f32.vlgmr.msra.gmra.mrb[0].mxu1 %v9012_v14  ;;  %v9222_v14 = vsub.f32 %v9161_v34, %v12705_v50  ;;  %v1408_v50 = vsub.f32 %v9158_v29, %v12707_v21  ;;  %v9259_v21 = vpack.c.bf16 %v1385_v33, %v1373_v42  ;;  %v9280_v42 = vld [vmem:[#allocation7 + $0x110] sm:$0xff] }
  0x78   :  { %365 = vmatpush1.msra.mxu0 %v9000_v8  ;;  %428 = vmatprep.mubr.f32.mxu0 %v12709_v0 }
  0x79   :  { %13202 = vst [vmem:[#allocation29_spill] sm:$0xff] %v9222_v14  ;;  %441 = vmatprep.subr.mxu0 %v205_v27  ;;  %6777 = vmatpush3.msra.mxu1 %v9004_v10  ;;  %v9255_v27 = vpack.c.bf16 %v1206_v36, %v1202_v30  ;;  %v9276_v30 = vsub.f32 %v9196_v6, %v12713_v48  ;;  %v9278_v36 = vld [vmem:[#allocation7 + $0xf8] sm:$0xff]  ;;  %v1409_v33 = vand.u32 4294901760, %v1408_v50  ;;  %v13213_v50 = vand.u32 4294901760, %v9222_v14 }
  0x7a   :  { %6778 = vmatprep.mubr.msk.f32.mxu1 %vm8873_vm0, %v12709_v0  ;;  %6781 = vmatprep.subr.mxu1 %v12709_v0  ;;  %v1391_v0 = vand.u32 4294901760, %v1390_v37  ;;  %v13207_v37 = vand.u32 4294901760, %v9049_v31  ;;  %v1432_v48 = vsub.f32 %v9206_v26, %v12714_v49  ;;  %v13211_v49 = vand.u32 4294901760, %v9009_v13 }
  0x7b   :  { %13205 = vst [vmem:[#allocation32_spill] sm:$0xff] %v9255_v27  ;;  %13206 = vst [vmem:[#allocation33_spill] sm:$0xff] %v9276_v30  ;;  %v1426_v31 = vsub.f32 %v9222_v14, %v13213_v50  ;;  %v13214_v26 = vand.u32 4294901760, %v9227_v47  ;;  %v13215_v13 = vand.u32 4294901760, %v9016_v15  ;;  %v13216_v50 = vand.u32 4294901760, %v9069_v43 }
  0x7c   :  { %v9286_v57 = vpack.c.bf16 %v13208_v40, %v13207_v37  ;;  %v9303_v32 = vpack.c.bf16 %v1391_v0, %v1379_v4  ;;  %v9317_v4 = vld [vmem:[#allocation7 + $0xf0] sm:$0xff]  ;;  %v13217_v37 = vand.u32 4294901760, %v9071_v44  ;;  %v13222_v43 = vand.u32 4294901760, %v9264_v17 }
  0x7d   :  { %v1438_v0 = vsub.f32 %v9227_v47, %v13214_v26  ;;  %v13219_v26 = vand.u32 4294901760, %v9091_v51  ;;  %v9350_v51 = vsub.f32 %v9266_v23, %v13224_v25  ;;  %v13230_v15 = vand.u32 4294901760, %v9276_v30 }
  0x7e   :  { %13209 = vst [vmem:[#allocation34_spill] sm:$0xff] %v9286_v57  ;;  %v9330_v40 = vpack.c.bf16 %v13217_v37, %v13216_v50  ;;  %v9345_v44 = vsub.f32 %v9264_v17, %v13222_v43  ;;  %v13228_v37 = vand.u32 4294901760, %v9280_v42  ;;  %v12729_v50 = vand.u32 4294901760, %v9319_v16 }
  0x7f   :  { %432 = vmatmul.mubr.f32.vlgmr.msra.gmra.mrb[0].mxu0 %v9025_v18  ;;  %6779 = vmatmul.mubr.f32.vlgmr.msra.gmra.mrb[0].mxu1 %v9025_v18  ;;  %v13220_v18 = vand.u32 4294901760, %v9093_v52  ;;  %13225 = vst [vmem:[#allocation39_spill] sm:$0xff] %v9350_v51  ;;  %v9352_v52 = vld [vmem:[#allocation7 + $0x128] sm:$0xff]  ;;  %v1427_v43 = vand.u32 4294901760, %v1426_v31  ;;  %v1439_v25 = vand.u32 4294901760, %v1438_v0  ;;  %v1444_v14 = vsub.f32 %v9276_v30, %v13230_v15  ;;  %v9389_v0 = vld [vmem:[#allocation7 + $0x138] sm:$0xff] }
  0x80   :  { %445 = vmatpush1.msra.mxu0 %v13211_v49  ;;  %508 = vmatprep.mubr.f32.mxu0 %v13212_v3  ;;  %v9324_v49 = vpack.c.bf16 %v1409_v33, %v1397_v7  ;;  %13218 = vst [vmem:[#allocation36_spill] sm:$0xff] %v9330_v40  ;;  %13223 = vst [vmem:[#allocation38_spill] sm:$0xff] %v9345_v44  ;;  %v9354_v7 = vld [vmem:[#allocation7 + $0x140] sm:$0xff]  ;;  %v13226_v33 = vand.u32 4294901760, %v9278_v36 }
  0x81   :  { %517 = vmatprep.subr.mxu0 %v9006_v12  ;;  %6782 = vmatpush3.msra.mxu1 %v13215_v13  ;;  %v9336_v47 = vpack.c.bf16 %v13220_v18, %v13219_v26  ;;  %v1433_v12 = vand.u32 4294901760, %v1432_v48  ;;  %v9364_v18 = vsub.f32 %v9280_v42, %v13228_v37  ;;  %v9368_v26 = vpack.c.bf16 %v1415_v62, %v1403_v61  ;;  %v9387_v61 = vld [vmem:[#allocation7 + $0x120] sm:$0xff] }
  0x82   :  { %6783 = vmatprep.mubr.msk.f32.mxu1 %vm8873_vm0, %v13212_v3  ;;  %6786 = vmatprep.subr.mxu1 %v13212_v3  ;;  %v9359_v48 = vsub.f32 %v9278_v36, %v13226_v33  ;;  %v13231_v33 = vand.u32 4294901760, %v9107_v56  ;;  %v13234_v37 = vand.u32 4294901760, %v9130_v2  ;;  %v13235_v13 = vand.u32 4294901760, %v9143_v11  ;;  %v9398_v11 = vld [vmem:[#allocation7 + $0x158] sm:$0xff] }
  0x83   :  { %13221 = vst [vmem:[#allocation37_spill] sm:$0xff] %v9336_v47  ;;  %13229 = vst [vmem:[#allocation41_spill] sm:$0xff] %v9364_v18  ;;  %v12730_v62 = vand.u32 4294901760, %v9352_v52  ;;  %v12731_v31 = vand.u32 4294901760, %v9354_v7  ;;  %v9391_v15 = vpack.c.bf16 %v1433_v12, %v1421_v22  ;;  %v13237_v56 = vand.u32 4294901760, %v9297_v24 }
  0x84   :  { %13227 = vst [vmem:[#allocation40_spill] sm:$0xff] %v9359_v48  ;;  %v9377_v58 = vpack.c.bf16 %v13232_v5, %v13231_v33  ;;  %v9383_v59 = vpack.c.bf16 %v13235_v13, %v13234_v37  ;;  %v9400_v13 = vld [vmem:[#allocation7 + $0x170] sm:$0xff]  ;;  %v13238_v12 = vand.u32 4294901760, %v9317_v4  ;;  %v9418_v5 = vpack.c.bf16 %v1439_v25, %v1427_v43 }
  0x85   :  { %v1456_v60 = vsub.f32 %v9297_v24, %v13237_v56  ;;  %v9414_v56 = vsub.f32 %v9319_v16, %v12729_v50  ;;  %v1445_v2 = vand.u32 4294901760, %v1444_v14  ;;  %v9437_v25 = vld [vmem:[#allocation7 + $0x150] sm:$0xff]  ;;  %v13245_v14 = vand.u32 4294901760, %v9161_v34 }
  0x86   :  { %13233 = vst [vmem:[#allocation42_spill] sm:$0xff] %v9377_v58  ;;  %13236 = vst [vmem:[#allocation43_spill] sm:$0xff] %v9383_v59  ;;  %v9409_v37 = vsub.f32 %v9317_v4, %v13238_v12  ;;  %v9428_v12 = vsub.f32 %v9352_v52, %v12730_v62  ;;  %v13243_v62 = vand.u32 4294901760, %v9345_v44  ;;  %v13246_v43 = vand.u32 4294901760, %v9163_v35 }
  0x87   :  { %510 = vmatmul.mubr.f32.vlgmr.msra.gmra.mrb[0].mxu0 %v9002_v9  ;;  %6784 = vmatmul.mubr.f32.vlgmr.msra.gmra.mrb[0].mxu1 %v9002_v9  ;;  %13240 = vst [vmem:[#allocation45_spill] sm:$0xff] %v9414_v56  ;;  %v1457_v50 = vand.u32 4294901760, %v1456_v60  ;;  %v13248_v24 = vand.u32 4294901760, %v9359_v48  ;;  %v13249_v60 = vand.u32 4294901760, %v9364_v18  ;;  %v13252_v35 = vand.u32 4294901760, %v9389_v0 }
  0x88   :  { %13239 = vst [vmem:[#allocation44_spill] sm:$0xff] %v9409_v37  ;;  %519 = vmatpush1.msra.mxu0 %v9000_v8  ;;  %582 = vmatprep.mubr.f32.mxu0 %v13212_v3  ;;  %13241 = vst [vmem:[#allocation46_spill] sm:$0xff] %v9428_v12  ;;  %v9433_v8 = vsub.f32 %v9354_v7, %v12731_v31  ;;  %v1450_v22 = vsub.f32 %v9345_v44, %v13243_v62  ;;  %v13244_v31 = vand.u32 4294901760, %v9350_v51 }
  0x89   :  { %6787 = vmatpush3.msra.mxu1 %v9004_v10  ;;  %6788 = vmatprep.mubr.msk.f32.mxu1 %vm8873_vm0, %v13212_v3  ;;  %v9439_v10 = vld [vmem:[#allocation7 + $0x168] sm:$0xff]  ;;  %v9453_v3 = vpack.c.bf16 %v13246_v43, %v13245_v14  ;;  %v9471_v14 = vsub.f32 %v9389_v0, %v13252_v35  ;;  %v13254_v44 = vand.u32 4294901760, %v9398_v11  ;;  %v9487_v35 = vpack.c.bf16 %v1457_v50, %v1445_v2 }
  0x8a   :  { %13242 = vst [vmem:[#allocation47_spill] sm:$0xff] %v9433_v8  ;;  %7486 = vmatprep.subr.bf16.mxu0 %v9198_v20  ;;  %7422 = vmatprep.subr.bf16.mxu1 %v9249_v19  ;;  %v1462_v33 = vsub.f32 %v9350_v51, %v13244_v31  ;;  %v1468_v20 = vsub.f32 %v9359_v48, %v13248_v24  ;;  %v13250_v31 = vand.u32 4294901760, %v9387_v61  ;;  %v1451_v51 = vand.u32 4294901760, %v1450_v22 }
  0x8b   :  { %13247 = vst [vmem:[#allocation48_spill] sm:$0xff] %v9453_v3  ;;  %v1480_v19 = vsub.f32 %v9364_v18, %v13249_v60  ;;  %13253 = vst [vmem:[#allocation50_spill] sm:$0xff] %v9471_v14  ;;  %v9480_v18 = vsub.f32 %v9398_v11, %v13254_v44  ;;  %v13258_v43 = vand.u32 4294901760, %v9196_v6  ;;  %v13259_v60 = vand.u32 4294901760, %v9214_v41  ;;  %v9505_v6 = vld [vmem:[#allocation7 + $0x1a0] sm:$0xff] }
  0x8c   :  { %v9466_v34 = vsub.f32 %v9387_v61, %v13250_v31  ;;  %v13256_v31 = vand.u32 4294901760, %v9400_v13  ;;  %v1463_v24 = vand.u32 4294901760, %v1462_v33  ;;  %v1469_v44 = vand.u32 4294901760, %v1468_v20  ;;  %v9503_v33 = vld [vmem:[#allocation7 + $0x188] sm:$0xff] }
  0x8d   :  { %13255 = vst [vmem:[#allocation51_spill] sm:$0xff] %v9480_v18  ;;  %v9493_v30 = vpack.c.bf16 %v13259_v60, %v13258_v43  ;;  %v1481_v62 = vand.u32 4294901760, %v1480_v19  ;;  %v13261_v29 = vand.u32 4294901760, %v9409_v37  ;;  %v13262_v50 = vand.u32 4294901760, %v9414_v56 }
  0x8e   :  { %13251 = vst [vmem:[#allocation49_spill] sm:$0xff] %v9466_v34  ;;  %v9485_v48 = vsub.f32 %v9400_v13, %v13256_v31  ;;  %v13263_v19 = vand.u32 4294901760, %v9437_v25  ;;  %v13265_v22 = vand.u32 4294901760, %v9439_v10  ;;  %v13268_v60 = vand.u32 4294901760, %v9433_v8 }
  0x8f   :  { %13260 = vst [vmem:[#allocation53_spill] sm:$0xff] %v9493_v30  ;;  %584 = vmatmul.mubr.f32.vlgmr.msra.gmra.mrb[0].mxu0 %v9002_v9  ;;  %6789 = vmatmul.mubr.f32.vlgmr.msra.gmra.mrb[0].mxu1 %v9002_v9  ;;  %v1474_v31 = vsub.f32 %v9409_v37, %v13261_v29  ;;  %v1486_v2 = vsub.f32 %v9414_v56, %v13262_v50  ;;  %v13273_v41 = vand.u32 4294901760, %v9280_v42 }
  0x90   :  { %13257 = vst [vmem:[#allocation52_spill] sm:$0xff] %v9485_v48  ;;  %7488 = vmatpush1.bf16.msra.mxu0 %v9233_v55  ;;  %7424 = vmatpush1.bf16.msra.mxu1 %v9255_v27  ;;  %v9514_v29 = vsub.f32 %v9437_v25, %v13263_v19  ;;  %v9519_v20 = vsub.f32 %v9439_v10, %v13265_v22  ;;  %v13267_v55 = vand.u32 4294901760, %v9428_v12  ;;  %v13269_v22 = vand.u32 4294901760, %v9264_v17  ;;  %v9551_v17 = vld [vmem:[#allocation7 + $0x198] sm:$0xff] }
  0x91   :  { %7490 = vmatprep.subr.bf16.mxu0 %v9259_v21  ;;  %7426 = vmatprep.subr.bf16.mxu1 %v9286_v57  ;;  %v1504_v50 = vsub.f32 %v9433_v8, %v13268_v60  ;;  %v9531_v9 = vpack.c.bf16 %v1463_v24, %v1451_v51  ;;  %v13270_v21 = vand.u32 4294901760, %v9266_v23  ;;  %v12759_v57 = vand.u32 4294901760, %v9503_v33  ;;  %v9549_v24 = vld [vmem:[#allocation7 + $0x180] sm:$0xff] }
  0x92   :  { %13264 = vst [vmem:[#allocation54_spill] sm:$0xff] %v9514_v29  ;;  %13266 = vst [vmem:[#allocation55_spill] sm:$0xff] %v9519_v20  ;;  %v1492_v43 = vsub.f32 %v9428_v12, %v13267_v55  ;;  %v12762_v55 = vand.u32 4294901760, %v9505_v6  ;;  %v9541_v12 = vpack.c.bf16 %v1481_v62, %v1469_v44  ;;  %v1475_v56 = vand.u32 4294901760, %v1474_v31 }
  0x93   :  { %v9537_v27 = vpack.c.bf16 %v13270_v21, %v13269_v22  ;;  %v1487_v60 = vand.u32 4294901760, %v1486_v2  ;;  %v13272_v19 = vand.u32 4294901760, %v9278_v36  ;;  %v13275_v23 = vand.u32 4294901760, %v9466_v34  ;;  %v9563_v2 = vld [vmem:[#allocation7 + $0x1b8] sm:$0xff] }
  0x94   :  { %7492 = vmatpush1.bf16.msra.mxu0 %v9303_v32  ;;  %7428 = vmatpush1.bf16.msra.mxu1 %v9330_v40  ;;  %v13276_v44 = vand.u32 4294901760, %v9471_v14  ;;  %v1493_v32 = vand.u32 4294901760, %v1492_v43  ;;  %v13277_v22 = vand.u32 4294901760, %v9480_v18  ;;  %v9578_v31 = vsub.f32 %v9503_v33, %v12759_v57 }
  0x95   :  { %13271 = vst [vmem:[#allocation56_spill] sm:$0xff] %v9537_v27  ;;  %v9547_v51 = vpack.c.bf16 %v13273_v41, %v13272_v19  ;;  %v1498_v62 = vsub.f32 %v9466_v34, %v13275_v23  ;;  %v9565_v41 = vld [vmem:[#allocation7 + $0x1d0] sm:$0xff]  ;;  %7494 = vmatprep.subr.bf16.mxu0 %v9324_v49  ;;  %7430 = vmatprep.subr.bf16.mxu1 %v9336_v47  ;;  %v1505_v19 = vand.u32 4294901760, %v1504_v50  ;;  %v13278_v23 = vand.u32 4294901760, %v9485_v48 }
  0x96   :  { %v1510_v36 = vsub.f32 %v9471_v14, %v13276_v44  ;;  %v1516_v21 = vsub.f32 %v9480_v18, %v13277_v22  ;;  %13279 = vst [vmem:[#allocation58_spill] sm:$0xff] %v9578_v31  ;;  %v9583_v49 = vsub.f32 %v9505_v6, %v12762_v55  ;;  %v9587_v42 = vpack.c.bf16 %v1487_v60, %v1475_v56  ;;  %v9605_v60 = vld [vmem:[#allocation7 + $0x1b0] sm:$0xff] }
  0x97   :  { %13274 = vst [vmem:[#allocation57_spill] sm:$0xff] %v9547_v51  ;;  %v1528_v44 = vsub.f32 %v9485_v48, %v13278_v23  ;;  %v13281_v22 = vand.u32 4294901760, %v9317_v4  ;;  %v13282_v23 = vand.u32 4294901760, %v9319_v16  ;;  %v1499_v55 = vand.u32 4294901760, %v1498_v62 }
  0x98   :  { %13280 = vst [vmem:[#allocation59_spill] sm:$0xff] %v9583_v49  ;;  %7496 = vmatpush1.bf16.msra.mxu0 %v9368_v26  ;;  %7432 = vmatpush1.bf16.msra.mxu1 %v9377_v58  ;;  %v1511_v43 = vand.u32 4294901760, %v1510_v36  ;;  %v13284_v50 = vand.u32 4294901760, %v9514_v29  ;;  %v13285_v4 = vand.u32 4294901760, %v9519_v20  ;;  %v9611_v26 = vpack.c.bf16 %v1505_v19, %v1493_v32 }
  0x99   :  { %v9593_v47 = vpack.c.bf16 %v13282_v23, %v13281_v22  ;;  %v9607_v22 = vld [vmem:[#allocation7 + $0x1c8] sm:$0xff]  ;;  %7498 = vmatprep.subr.bf16.mxu0 %v9391_v15  ;;  %7434 = vmatprep.subr.bf16.mxu1 %v9383_v59  ;;  %v1517_v62 = vand.u32 4294901760, %v1516_v21  ;;  %v1529_v36 = vand.u32 4294901760, %v1528_v44  ;;  %v13286_v23 = vand.u32 4294901760, %v9352_v52  ;;  %v9633_v52 = vld [vmem:[#allocation7 + $0x200] sm:$0xff] }
  0x9a   :  { %v1522_v56 = vsub.f32 %v9514_v29, %v13284_v50  ;;  %v1534_v16 = vsub.f32 %v9519_v20, %v13285_v4  ;;  %v13287_v50 = vand.u32 4294901760, %v9354_v7  ;;  %v13289_v58 = vand.u32 4294901760, %v9549_v24  ;;  %v9631_v21 = vld [vmem:[#allocation7 + $0x1e8] sm:$0xff] }
  0x9b   :  { %13283 = vst [vmem:[#allocation60_spill] sm:$0xff] %v9593_v47  ;;  %v13291_v32 = vand.u32 4294901760, %v9551_v17  ;;  %v13293_v7 = vand.u32 4294901760, %v9563_v2  ;;  %v13298_v20 = vand.u32 4294901760, %v9389_v0  ;;  %v13301_v57 = vand.u32 4294901760, %v9400_v13  ;;  %v9671_v0 = vld [vmem:[#allocation7 + $0x1f8] sm:$0xff] }
  0x9c   :  { %v9617_v40 = vpack.c.bf16 %v13287_v50, %v13286_v23  ;;  %v9624_v15 = vsub.f32 %v9549_v24, %v13289_v58  ;;  %v13295_v23 = vand.u32 4294901760, %v9565_v41  ;;  %v12771_v58 = vand.u32 4294901760, %v9605_v60  ;;  %7500 = vmatpush1.bf16.msra.mxu0 %v9418_v5  ;;  %7436 = vmatpush1.bf16.msra.mxu1 %v9453_v3 }
  0x9d   :  { %v9629_v19 = vsub.f32 %v9551_v17, %v13291_v32  ;;  %v9638_v44 = vsub.f32 %v9563_v2, %v13293_v7  ;;  %v9649_v32 = vpack.c.bf16 %v1511_v43, %v1499_v55  ;;  %v1523_v4 = vand.u32 4294901760, %v1522_v56  ;;  %7502 = vmatprep.subr.bf16.mxu0 %v9487_v35  ;;  %7438 = vmatprep.subr.bf16.mxu1 %v9493_v30  ;;  %v9669_v56 = vld [vmem:[#allocation7 + $0x1e0] sm:$0xff] }
  0x9e   :  { %13288 = vst [vmem:[#allocation61_spill] sm:$0xff] %v9617_v40  ;;  %13290 = vst [vmem:[#allocation62_spill] sm:$0xff] %v9624_v15  ;;  %v9643_v50 = vsub.f32 %v9565_v41, %v13295_v23  ;;  %v1535_v59 = vand.u32 4294901760, %v1534_v16  ;;  %v13297_v7 = vand.u32 4294901760, %v9387_v61  ;;  %v9659_v23 = vpack.c.bf16 %v1529_v36, %v1517_v62  ;;  %v9681_v62 = vld [vmem:[#allocation7 + $0x218] sm:$0xff]  ;;  %v9683_v36 = vld [vmem:[#allocation7 + $0x230] sm:$0xff] }
  0x9f   :  { %13292 = vst [vmem:[#allocation63_spill] sm:$0xff] %v9629_v19  ;;  %13294 = vst [vmem:[#allocation64_spill] sm:$0xff] %v9638_v44  ;;  %v13300_v5 = vand.u32 4294901760, %v9398_v11  ;;  %v13303_v35 = vand.u32 4294901760, %v9578_v31  ;;  %v13304_v16 = vand.u32 4294901760, %v9583_v49  ;;  %v13306_v61 = vand.u32 4294901760, %v9607_v22 }
  0xa0   :  { %13296 = vst [vmem:[#allocation65_spill] sm:$0xff] %v9643_v50  ;;  %v9655_v29 = vpack.c.bf16 %v13298_v20, %v13297_v7  ;;  %7504 = vmatpush1.bf16.msra.mxu0 %v9531_v9  ;;  %7440 = vmatpush1.bf16.msra.mxu1 %v9537_v27  ;;  %v13308_v13 = vand.u32 4294901760, %v9437_v25  ;;  %v13309_v7 = vand.u32 4294901760, %v9439_v10  ;;  %v13315_v43 = vand.u32 4294901760, %v9624_v15 }
  0xa1   :  { %v9665_v55 = vpack.c.bf16 %v13301_v57, %v13300_v5  ;;  %v1540_v20 = vsub.f32 %v9578_v31, %v13303_v35  ;;  %v1552_v11 = vsub.f32 %v9583_v49, %v13304_v16  ;;  %v9690_v35 = vsub.f32 %v9605_v60, %v12771_v58  ;;  %7506 = vmatprep.subr.bf16.mxu0 %v9541_v12 }
  0xa2   :  { %13299 = vst [vmem:[#allocation66_spill] sm:$0xff] %v9655_v29  ;;  %v9695_v16 = vsub.f32 %v9607_v22, %v13306_v61  ;;  %v7515_v57 = vpack.c.bf16 %v1535_v59, %v1523_v4  ;;  %v9703_v5 = vpack.c.bf16 %v13309_v7, %v13308_v13  ;;  %7442 = vmatprep.subr.bf16.mxu1 %v9547_v51  ;;  %v13311_v61 = vand.u32 4294901760, %v9631_v21  ;;  %v9721_v13 = vld [vmem:[#allocation7 + $0x210] sm:$0xff]  ;;  %v9723_v7 = vld [vmem:[#allocation7 + $0x228] sm:$0xff] }
  0xa3   :  { %13302 = vst [vmem:[#allocation67_spill] sm:$0xff] %v9665_v55  ;;  %13305 = vst [vmem:[#allocation68_spill] sm:$0xff] %v9690_v35  ;;  %v13313_v59 = vand.u32 4294901760, %v9633_v52  ;;  %v1541_v12 = vand.u32 4294901760, %v1540_v20  ;;  %v1553_v58 = vand.u32 4294901760, %v1552_v11  ;;  %v13316_v51 = vand.u32 4294901760, %v9629_v19 }
  0xa4   :  { %13307 = vst [vmem:[#allocation69_spill] sm:$0xff] %v9695_v16  ;;  %13310 = vst [vmem:[#allocation70_spill] sm:$0xff] %v9703_v5  ;;  %v9712_v9 = vsub.f32 %v9631_v21, %v13311_v61  ;;  %v1546_v61 = vsub.f32 %v9624_v15, %v13315_v43  ;;  %v13318_v4 = vand.u32 4294901760, %v9643_v50  ;;  %7508 = vmatpush1.bf16.msra.mxu0 %v9587_v42  ;;  %7444 = vmatpush1.bf16.msra.mxu1 %v9593_v47 }
  0xa5   :  { %v9717_v25 = vsub.f32 %v9633_v52, %v13313_v59  ;;  %v1558_v27 = vsub.f32 %v9629_v19, %v13316_v51  ;;  %v13317_v59 = vand.u32 4294901760, %v9638_v44  ;;  %v13319_v43 = vand.u32 4294901760, %v9669_v56  ;;  %7510 = vmatprep.subr.bf16.mxu0 %v9611_v26  ;;  %7446 = vmatprep.subr.bf16.mxu1 %v9617_v40 }
  0xa6   :  { %13312 = vst [vmem:[#allocation71_spill] sm:$0xff] %v9712_v9  ;;  %v1576_v30 = vsub.f32 %v9643_v50, %v13318_v4  ;;  %v13321_v11 = vand.u32 4294901760, %v9671_v0  ;;  %v7517_v4 = vpack.c.bf16 %v1553_v58, %v1541_v12  ;;  %v1547_v3 = vand.u32 4294901760, %v1546_v61 }
  0xa7   :  { %13314 = vst [vmem:[#allocation72_spill] sm:$0xff] %v9717_v25  ;;  %v1564_v10 = vsub.f32 %v9638_v44, %v13317_v59  ;;  %v9744_v51 = vsub.f32 %v9669_v56, %v13319_v43  ;;  %v13323_v43 = vand.u32 4294901760, %v9681_v62  ;;  %v1559_v44 = vand.u32 4294901760, %v1558_v27 }
  0xa8   :  { %v9749_v59 = vsub.f32 %v9671_v0, %v13321_v11  ;;  %v13325_v11 = vand.u32 4294901760, %v9683_v36  ;;  %v13327_v26 = vand.u32 4294901760, %v9503_v33  ;;  %v13328_v40 = vand.u32 4294901760, %v9505_v6  ;;  %7512 = vmatpush1.bf16.msra.mxu0 %v9649_v32  ;;  %7448 = vmatpush1.bf16.msra.mxu1 %v9655_v29 }
  0xa9   :  { %13320 = vst [vmem:[#allocation73_spill] sm:$0xff] %v9744_v51  ;;  %v9760_v47 = vsub.f32 %v9681_v62, %v13323_v43  ;;  %v1565_v20 = vand.u32 4294901760, %v1564_v10  ;;  %v1577_v19 = vand.u32 4294901760, %v1576_v30  ;;  %v13330_v15 = vand.u32 4294901760, %v9690_v35  ;;  %7514 = vmatprep.subr.bf16.mxu0 %v9659_v23  ;;  %7450 = vmatprep.subr.bf16.mxu1 %v9665_v55 }
  0xaa   :  { %13322 = vst [vmem:[#allocation74_spill] sm:$0xff] %v9749_v59  ;;  %v9765_v50 = vsub.f32 %v9683_v36, %v13325_v11  ;;  %v9771_v42 = vpack.c.bf16 %v13328_v40, %v13327_v26  ;;  %v13331_v49 = vand.u32 4294901760, %v9695_v16  ;;  %v13332_v40 = vand.u32 4294901760, %v9721_v13 }
  0xab   :  { %13324 = vst [vmem:[#allocation75_spill] sm:$0xff] %v9760_v47  ;;  %v1570_v43 = vsub.f32 %v9690_v35, %v13330_v15  ;;  %v13334_v6 = vand.u32 4294901760, %v9723_v7  ;;  %v13337_v32 = vand.u32 4294901760, %v9717_v25  ;;  %v12803_v12 = vand.u32 4294901760, %v9760_v47 }
  0xac   :  { %13326 = vst [vmem:[#allocation76_spill] sm:$0xff] %v9765_v50  ;;  %13329 = vst [vmem:[#allocation77_spill] sm:$0xff] %v9771_v42  ;;  %v1582_v11 = vsub.f32 %v9695_v16, %v13331_v49  ;;  %v9786_v30 = vsub.f32 %v9721_v13, %v13332_v40  ;;  %v13336_v49 = vand.u32 4294901760, %v9712_v9  ;;  %v12802_v61 = vand.u32 4294901760, %v9765_v50  ;;  %7516 = vmatpush1.bf16.msra.mxu0 %v7515_v57 }
  0xad   :  { %v9791_v15 = vsub.f32 %v9723_v7, %v13334_v6  ;;  %v1600_v10 = vsub.f32 %v9717_v25, %v13337_v32  ;;  %v7519_v26 = vpack.c.bf16 %v1559_v44, %v1547_v3  ;;  %v13338_v40 = vand.u32 4294901760, %v9549_v24  ;;  %7452 = vmatpush1.bf16.msra.mxu1 %v9703_v5  ;;  %7518 = vmatprep.subr.bf16.mxu0 %v7517_v4 }
  0xae   :  { %13333 = vst [vmem:[#allocation78_spill] sm:$0xff] %v9786_v30  ;;  %v1588_v58 = vsub.f32 %v9712_v9, %v13336_v49  ;;  %v13339_v6 = vand.u32 4294901760, %v9551_v17  ;;  %v7521_v33 = vpack.c.bf16 %v1577_v19, %v1565_v20  ;;  %v1571_v27 = vand.u32 4294901760, %v1570_v43  ;;  %7454 = vmatprep.subr.bf16.mxu1 %v9771_v42  ;;  %v9929_v42 = vld [vmem:[#allocation7 + $0x2a8] sm:$0xff] }
  0xaf   :  { %13335 = vst [vmem:[#allocation79_spill] sm:$0xff] %v9791_v15  ;;  %v1583_v55 = vand.u32 4294901760, %v1582_v11  ;;  %v13341_v49 = vand.u32 4294901760, %v9563_v2  ;;  %v13342_v29 = vand.u32 4294901760, %v9565_v41  ;;  %v13344_v3 = vand.u32 4294901760, %v9744_v51 }
  0xb0   :  { %v9807_v23 = vpack.c.bf16 %v13339_v6, %v13338_v40  ;;  %v13345_v17 = vand.u32 4294901760, %v9749_v59  ;;  %v12801_v19 = vand.u32 4294901760, %v9786_v30  ;;  %v12800_v20 = vand.u32 4294901760, %v9791_v15  ;;  %7520 = vmatpush1.bf16.msra.mxu0 %v7519_v26 }
  0xb1   :  { %v9813_v9 = vpack.c.bf16 %v13342_v29, %v13341_v49  ;;  %v1594_v24 = vsub.f32 %v9744_v51, %v13344_v3  ;;  %v1589_v29 = vand.u32 4294901760, %v1588_v58  ;;  %v1601_v2 = vand.u32 4294901760, %v1600_v10  ;;  %7522 = vmatprep.subr.bf16.mxu0 %v7521_v33  ;;  %v9848_v33 = vld [vmem:[#allocation7 + $0x260] sm:$0xff] }
  0xb2   :  { %13340 = vst [vmem:[#allocation80_spill] sm:$0xff] %v9807_v23  ;;  %v1606_v44 = vsub.f32 %v9749_v59, %v13345_v17  ;;  %v1612_v41 = vsub.f32 %v9760_v47, %v12803_v12  ;;  %v1624_v57 = vsub.f32 %v9765_v50, %v12802_v61  ;;  %v7523_v43 = vpack.c.bf16 %v1583_v55, %v1571_v27  ;;  %v9846_v17 = vld [vmem:[#allocation7 + $0x248] sm:$0xff] }
  0xb3   :  { %13343 = vst [vmem:[#allocation81_spill] sm:$0xff] %v9813_v9  ;;  %v13346_v11 = vand.u32 4294901760, %v9605_v60  ;;  %v13347_v32 = vand.u32 4294901760, %v9607_v22  ;;  %7456 = vmatpush1.bf16.msra.mxu1 %v9807_v23  ;;  %v1595_v4 = vand.u32 4294901760, %v1594_v24  ;;  %v1618_v10 = vsub.f32 %v9786_v30, %v12801_v19 }
  0xb4   :  { %v1607_v58 = vand.u32 4294901760, %v1606_v44  ;;  %v1630_v6 = vsub.f32 %v9791_v15, %v12800_v20  ;;  %v7525_v55 = vpack.c.bf16 %v1601_v2, %v1589_v29  ;;  %7458 = vmatprep.subr.bf16.mxu1 %v9813_v9  ;;  %v1613_v60 = vand.u32 4294901760, %v1612_v41  ;;  %7524 = vmatpush1.bf16.msra.mxu0 %v7523_v43  ;;  %v9852_v2 = vld [vmem:[#allocation7 + $0x240] sm:$0xff]  ;;  %v9854_v41 = vld [vmem:[#allocation7 + $0x258] sm:$0xff] }
  0xb5   :  { %v9835_v40 = vpack.c.bf16 %v13347_v32, %v13346_v11  ;;  %v1625_v22 = vand.u32 4294901760, %v1624_v57  ;;  %v1619_v26 = vand.u32 4294901760, %v1618_v10  ;;  %v12811_v44 = vand.u32 4294901760, %v9846_v17  ;;  %v9878_v10 = vld [vmem:[#allocation7 + $0x278] sm:$0xff] }
  0xb6   :  { %v7527_v27 = vpack.c.bf16 %v1607_v58, %v1595_v4  ;;  %v1631_v49 = vand.u32 4294901760, %v1630_v6  ;;  %7526 = vmatprep.subr.bf16.mxu0 %v7525_v55  ;;  %v12806_v29 = vand.u32 4294901760, %v9848_v33  ;;  %v12805_v57 = vand.u32 4294901760, %v9852_v2  ;;  %v9880_v6 = vld [vmem:[#allocation7 + $0x290] sm:$0xff] }
  0xb7   :  { %13348 = vst [vmem:[#allocation82_spill] sm:$0xff] %v9835_v40  ;;  %7460 = vmatpush1.bf16.msra.mxu1 %v9835_v40  ;;  %v7529_v3 = vpack.c.bf16 %v1625_v22, %v1613_v60  ;;  %v12804_v43 = vand.u32 4294901760, %v9854_v41  ;;  %v9861_v11 = vsub.f32 %v9846_v17, %v12811_v44  ;;  %v12809_v22 = vand.u32 4294901760, %v9878_v10 }
  0xb8   :  { %7528 = vmatpush1.bf16.msra.mxu0 %v7527_v27  ;;  %v7531_v24 = vpack.c.bf16 %v1631_v49, %v1619_v26  ;;  %v9866_v32 = vsub.f32 %v9848_v33, %v12806_v29  ;;  %v9871_v4 = vsub.f32 %v9852_v2, %v12805_v57  ;;  %v12810_v27 = vand.u32 4294901760, %v9880_v6  ;;  %v9886_v26 = vld [vmem:[#allocation7 + $0x270] sm:$0xff]  ;;  %v9888_v49 = vld [vmem:[#allocation7 + $0x288] sm:$0xff] }
  0xb9   :  { %7530 = vmatprep.subr.bf16.mxu0 %v7529_v3  ;;  %13349 = vst [vmem:[#allocation83_spill] sm:$0xff] %v9861_v11  ;;  %v9876_v58 = vsub.f32 %v9854_v41, %v12804_v43  ;;  %v12807_v55 = vand.u32 4294901760, %v9861_v11  ;;  %v12822_v20 = vand.u32 4294901760, %v9886_v26  ;;  %v12827_v19 = vand.u32 4294901760, %v9888_v49 }
  0xba   :  { %13350 = vst [vmem:[#allocation84_spill] sm:$0xff] %v9866_v32  ;;  %13351 = vst [vmem:[#allocation85_spill] sm:$0xff] %v9871_v4  ;;  %v12808_v60 = vand.u32 4294901760, %v9866_v32  ;;  %v12814_v3 = vand.u32 4294901760, %v9871_v4  ;;  %v9903_v43 = vsub.f32 %v9878_v10, %v12809_v22  ;;  %v9908_v57 = vsub.f32 %v9880_v6, %v12810_v27 }
  0xbb   :  { %13352 = vst [vmem:[#allocation86_spill] sm:$0xff] %v9876_v58  ;;  %v1636_v61 = vsub.f32 %v9861_v11, %v12807_v55  ;;  %v9924_v22 = vsub.f32 %v9888_v49, %v12827_v19  ;;  %v13358_v5 = vand.u32 4294901760, %v9633_v52  ;;  %v13361_v52 = vand.u32 4294901760, %v9671_v0 }
  0xbc   :  { %7532 = vmatpush1.bf16.msra.mxu0 %v7531_v24  ;;  %v12819_v24 = vand.u32 4294901760, %v9876_v58  ;;  %v1648_v12 = vsub.f32 %v9866_v32, %v12808_v60  ;;  %13353 = vst [vmem:[#allocation87_spill] sm:$0xff] %v9903_v43  ;;  %13354 = vst [vmem:[#allocation88_spill] sm:$0xff] %v9908_v57  ;;  %v1642_v29 = vsub.f32 %v9871_v4, %v12814_v3  ;;  %v12829_v40 = vand.u32 4294901760, %v9903_v43  ;;  %v10315_v4 = vld [vmem:[#allocation7 + $0x450] sm:$0xff] }
  0xbd   :  { %v9919_v60 = vsub.f32 %v9886_v26, %v12822_v20  ;;  %13356 = vst [vmem:[#allocation90_spill] sm:$0xff] %v9924_v22  ;;  %v1637_v27 = vand.u32 4294901760, %v1636_v61  ;;  %v12828_v3 = vand.u32 4294901760, %v9908_v57  ;;  %v13357_v20 = vand.u32 4294901760, %v9631_v21 }
  0xbe   :  { %v1654_v55 = vsub.f32 %v9876_v58, %v12819_v24  ;;  %v1649_v44 = vand.u32 4294901760, %v1648_v12  ;;  %v1643_v9 = vand.u32 4294901760, %v1642_v29  ;;  %v1660_v12 = vsub.f32 %v9903_v43, %v12829_v40  ;;  %v9943_v29 = vld [vmem:[#allocation7 + $0x2c0] sm:$0xff]  ;;  %v9947_v24 = vld [vmem:[#allocation7 + $0x2b8] sm:$0xff] }
  0xbf   :  { %13355 = vst [vmem:[#allocation89_spill] sm:$0xff] %v9919_v60  ;;  %v9935_v58 = vpack.c.bf16 %v13358_v5, %v13357_v20  ;;  %v1672_v61 = vsub.f32 %v9908_v57, %v12828_v3  ;;  %v13360_v21 = vand.u32 4294901760, %v9669_v56  ;;  %v12834_v57 = vand.u32 4294901760, %v9924_v22 }
  0xc0   :  { %v1655_v23 = vand.u32 4294901760, %v1654_v55  ;;  %v7533_v19 = vpack.c.bf16 %v1649_v44, %v1637_v27  ;;  %v9945_v55 = vld [vmem:[#allocation7 + $0x2a0] sm:$0xff]  ;;  %v13363_v44 = vand.u32 4294901760, %v9919_v60  ;;  %v1661_v3 = vand.u32 4294901760, %v1660_v12 }
  0xc1   :  { %13359 = vst [vmem:[#allocation91_spill] sm:$0xff] %v9935_v58  ;;  %v9953_v5 = vpack.c.bf16 %v13361_v52, %v13360_v21  ;;  %7462 = vmatprep.subr.bf16.mxu1 %v9935_v58  ;;  %v1673_v40 = vand.u32 4294901760, %v1672_v61  ;;  %v12835_v43 = vand.u32 4294901760, %v9929_v42  ;;  %v9965_v21 = vld [vmem:[#allocation7 + $0x2d8] sm:$0xff]  ;;  %v9967_v52 = vld [vmem:[#allocation7 + $0x2f0] sm:$0xff]  ;;  %v13365_v12 = vand.u32 4294901760, %v9683_v36 }
  0xc2   :  { %v7535_v20 = vpack.c.bf16 %v1655_v23, %v1643_v9  ;;  %v1666_v27 = vsub.f32 %v9919_v60, %v13363_v44  ;;  %7534 = vmatprep.subr.bf16.mxu0 %v7533_v19  ;;  %v13364_v19 = vand.u32 4294901760, %v9681_v62  ;;  %v9983_v23 = vld [vmem:[#allocation7 + $0x2d0] sm:$0xff]  ;;  %v13368_v9 = vand.u32 4294901760, %v9721_v13 }
  0xc3   :  { %13362 = vst [vmem:[#allocation92_spill] sm:$0xff] %v9953_v5  ;;  %7464 = vmatpush1.bf16.msra.mxu1 %v9953_v5  ;;  %v7537_v44 = vpack.c.bf16 %v1673_v40, %v1661_v3  ;;  %v13369_v62 = vand.u32 4294901760, %v9723_v7  ;;  %v13371_v36 = vand.u32 4294901760, %v9943_v29  ;;  %v13373_v3 = vand.u32 4294901760, %v9945_v55  ;;  %v10311_v60 = vld [vmem:[#allocation7 + $0x470] sm:$0xff] }
  0xc4   :  { %7536 = vmatpush1.bf16.msra.mxu0 %v7535_v20  ;;  %v1667_v56 = vand.u32 4294901760, %v1666_v27  ;;  %v9973_v61 = vpack.c.bf16 %v13365_v12, %v13364_v19  ;;  %v1678_v20 = vsub.f32 %v9924_v22, %v12834_v57  ;;  %v9981_v27 = vsub.f32 %v9929_v42, %v12835_v43 }
  0xc5   :  { %v9989_v0 = vpack.c.bf16 %v13369_v62, %v13368_v9  ;;  %v9994_v40 = vsub.f32 %v9943_v29, %v13371_v36  ;;  %v9999_v19 = vsub.f32 %v9945_v55, %v13373_v3  ;;  %v13375_v12 = vand.u32 4294901760, %v9947_v24  ;;  %7538 = vmatprep.subr.bf16.mxu0 %v7537_v44 }
  0xc6   :  { %13366 = vst [vmem:[#allocation93_spill] sm:$0xff] %v9973_v61  ;;  %13367 = vst [vmem:[#allocation94_spill] sm:$0xff] %v9981_v27  ;;  %7466 = vmatprep.subr.bf16.mxu1 %v9973_v61  ;;  %v1679_v13 = vand.u32 4294901760, %v1678_v20  ;;  %v1320_v9 = vand.u32 4294901760, %v9965_v21  ;;  %v1324_v62 = vand.u32 4294901760, %v9967_v52  ;;  %v1322_v5 = vand.u32 4294901760, %v9983_v23 }
  0xc7   :  { %13370 = vst [vmem:[#allocation95_spill] sm:$0xff] %v9989_v0  ;;  %13372 = vst [vmem:[#allocation96_spill] sm:$0xff] %v9994_v40  ;;  %v10004_v57 = vsub.f32 %v9947_v24, %v13375_v12  ;;  %7468 = vmatpush1.bf16.msra.mxu1 %v9989_v0  ;;  %v1132_v12 = vld [vmem:[#allocation7 + $0x2e8] sm:$0xff]  ;;  %v13377_v44 = vand.u32 4294901760, %v9846_v17  ;;  %v13378_v20 = vand.u32 4294901760, %v9848_v33  ;;  %v13380_v58 = vand.u32 4294901760, %v9981_v27 }
  0xc8   :  { %13374 = vst [vmem:[#allocation97_spill] sm:$0xff] %v9999_v19  ;;  %v7539_v61 = vpack.c.bf16 %v1679_v13, %v1667_v56  ;;  %v10025_v36 = vsub.f32 %v9965_v21, %v1320_v9  ;;  %v13382_v3 = vand.u32 4294901760, %v9994_v40  ;;  %v13383_v22 = vand.u32 4294901760, %v9852_v2 }
  0xc9   :  { %13376 = vst [vmem:[#allocation98_spill] sm:$0xff] %v10004_v57  ;;  %v10019_v7 = vpack.c.bf16 %v13378_v20, %v13377_v44  ;;  %v1684_v0 = vsub.f32 %v9981_v27, %v13380_v58  ;;  %v13384_v56 = vand.u32 4294901760, %v9854_v41  ;;  %v13386_v33 = vand.u32 4294901760, %v9999_v19 }
  0xca   :  { %13381 = vst [vmem:[#allocation100_spill] sm:$0xff] %v10025_v36  ;;  %v1696_v43 = vsub.f32 %v9994_v40, %v13382_v3  ;;  %v13387_v44 = vand.u32 4294901760, %v10004_v57  ;;  %7540 = vmatpush1.bf16.msra.mxu0 %v7539_v61  ;;  %v12855_v3 = vand.u32 4294901760, %v10025_v36  ;;  %v10045_v2 = vsub.f32 %v9967_v52, %v1324_v62 }
  0xcb   :  { %13379 = vst [vmem:[#allocation99_spill] sm:$0xff] %v10019_v7  ;;  %v10034_v17 = vpack.c.bf16 %v13384_v56, %v13383_v22  ;;  %v1690_v13 = vsub.f32 %v9999_v19, %v13386_v33  ;;  %7470 = vmatprep.subr.bf16.mxu1 %v10019_v7  ;;  %v1685_v21 = vand.u32 4294901760, %v1684_v0  ;;  %v1326_v41 = vand.u32 4294901760, %v1132_v12  ;;  %v10283_v19 = vld [vmem:[#allocation7 + $0x420] sm:$0xff] }
  0xcc   :  { %v1702_v58 = vsub.f32 %v10004_v57, %v13387_v44  ;;  %13388 = vst [vmem:[#allocation102_spill] sm:$0xff] %v10045_v2  ;;  %v1697_v22 = vand.u32 4294901760, %v1696_v43  ;;  %v10049_v33 = vsub.f32 %v9983_v23, %v1322_v5  ;;  %v13390_v44 = vand.u32 4294901760, %v9878_v10 }
  0xcd   :  { %13385 = vst [vmem:[#allocation101_spill] sm:$0xff] %v10034_v17  ;;  %7472 = vmatpush1.bf16.msra.mxu1 %v10034_v17  ;;  %v1691_v20 = vand.u32 4294901760, %v1690_v13  ;;  %v13391_v61 = vand.u32 4294901760, %v9880_v6  ;;  %v1708_v0 = vsub.f32 %v10025_v36, %v12855_v3  ;;  %v12854_v52 = vand.u32 4294901760, %v10045_v2  ;;  %v10279_v36 = vld [vmem:[#allocation7 + $0x440] sm:$0xff] }
  0xce   :  { %v1703_v56 = vand.u32 4294901760, %v1702_v58  ;;  %13389 = vst [vmem:[#allocation103_spill] sm:$0xff] %v10049_v33  ;;  %v10061_v43 = vsub.f32 %v1132_v12, %v1326_v41  ;;  %v7541_v17 = vpack.c.bf16 %v1697_v22, %v1685_v21  ;;  %v13394_v58 = vand.u32 4294901760, %v9886_v26 }
  0xcf   :  { %v10055_v7 = vpack.c.bf16 %v13391_v61, %v13390_v44  ;;  %v13395_v23 = vand.u32 4294901760, %v9888_v49  ;;  %v12853_v10 = vand.u32 4294901760, %v10049_v33  ;;  %v1709_v6 = vand.u32 4294901760, %v1708_v0 }
  0xd0   :  { %13393 = vst [vmem:[#allocation105_spill] sm:$0xff] %v10061_v43  ;;  %v7543_v13 = vpack.c.bf16 %v1703_v56, %v1691_v20  ;;  %v1720_v44 = vsub.f32 %v10045_v2, %v12854_v52  ;;  %v12852_v12 = vand.u32 4294901760, %v10061_v43  ;;  %7542 = vmatprep.subr.bf16.mxu0 %v7541_v17  ;;  %v13397_v22 = vand.u32 4294901760, %v9929_v42  ;;  %v10151_v52 = vld [vmem:[#allocation7 + $0x380] sm:$0xff] }
  0xd1   :  { %13392 = vst [vmem:[#allocation104_spill] sm:$0xff] %v10055_v7  ;;  %v10067_v57 = vpack.c.bf16 %v13395_v23, %v13394_v58  ;;  %7474 = vmatprep.subr.bf16.mxu1 %v10055_v7  ;;  %v1714_v26 = vsub.f32 %v10049_v33, %v12853_v10  ;;  %v13398_v20 = vand.u32 4294901760, %v9943_v29  ;;  %v13400_v17 = vand.u32 4294901760, %v9945_v55  ;;  %v1139_v55 = vld [vmem:[#allocation7 + $0x320] sm:$0xff]  ;;  %v10149_v10 = vld [vmem:[#allocation7 + $0x368] sm:$0xff] }
  0xd2   :  { %7544 = vmatpush1.bf16.msra.mxu0 %v7543_v13  ;;  %v1721_v49 = vand.u32 4294901760, %v1720_v44  ;;  %v1726_v21 = vsub.f32 %v10061_v43, %v12852_v12  ;;  %v13401_v0 = vand.u32 4294901760, %v9947_v24  ;;  %v7549_v44 = vpack.c.bf16 %v9065_v39, %v9060_v38  ;;  %v1136_v24 = vld [vmem:[#allocation7 + $0x308] sm:$0xff] }
  0xd3   :  { %13396 = vst [vmem:[#allocation106_spill] sm:$0xff] %v10067_v57  ;;  %7476 = vmatpush1.bf16.msra.mxu1 %v10067_v57  ;;  %v10086_v56 = vpack.c.bf16 %v13398_v20, %v13397_v22  ;;  %v1715_v61 = vand.u32 4294901760, %v1714_v26  ;;  %v10098_v29 = vpack.c.bf16 %v1324_v62, %v1320_v9  ;;  %v10100_v26 = vpack.c.bf16 %v1326_v41, %v1322_v5  ;;  %v10106_v22 = vld [vmem:[#allocation7 + $0x318] sm:$0xff]  ;;  %v10251_v57 = vld [vmem:[#allocation7 + $0x3f0] sm:$0xff] }
  0xd4   :  { %v10092_v58 = vpack.c.bf16 %v13401_v0, %v13400_v17  ;;  %v7545_v23 = vpack.c.bf16 %v1721_v49, %v1709_v6  ;;  %v1727_v13 = vand.u32 4294901760, %v1726_v21  ;;  %v2484_v6 = vand.u32 4294901760, %v1136_v24  ;;  %v10104_v21 = vld [vmem:[#allocation7 + $0x300] sm:$0xff]  ;;  %v10118_v17 = vld [vmem:[#allocation7 + $0x350] sm:$0xff] }
  0xd5   :  { %13399 = vst [vmem:[#allocation107_spill] sm:$0xff] %v10086_v56  ;;  %7478 = vmatprep.subr.bf16.mxu1 %v10086_v56  ;;  %13403 = vst [vmem:[#allocation109_spill] sm:$0xff] %v10098_v29  ;;  %v2488_v49 = vand.u32 4294901760, %v1139_v55  ;;  %v12857_v62 = vand.u32 4294901760, %v10104_v21  ;;  %v12856_v41 = vand.u32 4294901760, %v10106_v22  ;;  %v12872_v3 = vand.u32 4294901760, %v10149_v10 }
  0xd6   :  { %13402 = vst [vmem:[#allocation108_spill] sm:$0xff] %v10092_v58  ;;  %7546 = vmatprep.subr.bf16.mxu0 %v7545_v23  ;;  %v7547_v42 = vpack.c.bf16 %v1727_v13, %v1715_v61  ;;  %13404 = vst [vmem:[#allocation110_spill] sm:$0xff] %v10100_v26  ;;  %v10110_v9 = vsub.f32 %v1136_v24, %v2484_v6  ;;  %v10116_v61 = vld [vmem:[#allocation7 + $0x338] sm:$0xff]  ;;  %v12859_v23 = vand.u32 4294901760, %v10118_v17  ;;  %v10123_v13 = vld [vmem:[#allocation7 + $0x330] sm:$0xff]  ;;  %v12924_v2 = vand.u32 4294901760, %v10251_v57 }
  0xd7   :  { %7480 = vmatpush1.bf16.msra.mxu1 %v10092_v58  ;;  %v10108_v20 = vpack.c.bf16 %v2488_v49, %v2484_v6  ;;  %v10112_v5 = vsub.f32 %v1139_v55, %v2488_v49  ;;  %v12858_v0 = vand.u32 4294901760, %v10116_v61  ;;  %v10135_v24 = vsub.f32 %v10106_v22, %v12856_v41  ;;  %v10247_v56 = vld [vmem:[#allocation7 + $0x410] sm:$0xff] }
  0xd8   :  { %7548 = vmatpush1.bf16.msra.mxu0 %v7547_v42  ;;  %7482 = vmatprep.subr.bf16.mxu1 %v10098_v29  ;;  %13406 = vst [vmem:[#allocation112_spill] sm:$0xff] %v10110_v9  ;;  %v10130_v42 = vsub.f32 %v10104_v21, %v12857_v62  ;;  %v10145_v6 = vsub.f32 %v10118_v17, %v12859_v23  ;;  %v12866_v49 = vand.u32 4294901760, %v10123_v13  ;;  %v12873_v41 = vand.u32 4294901760, %v10151_v52  ;;  %v10155_v62 = vld [vmem:[#allocation7 + $0x360] sm:$0xff] }
  0xd9   :  { %7550 = vmatprep.subr.bf16.mxu0 %v7549_v44  ;;  %13405 = vst [vmem:[#allocation111_spill] sm:$0xff] %v10108_v20  ;;  %13407 = vst [vmem:[#allocation113_spill] sm:$0xff] %v10112_v5  ;;  %v10125_v44 = vld [vmem:[#allocation7 + $0x348] sm:$0xff]  ;;  %v10140_v55 = vsub.f32 %v10116_v61, %v12858_v0  ;;  %v10157_v0 = vld [vmem:[#allocation7 + $0x378] sm:$0xff]  ;;  %v12940_v27 = vand.u32 4294901760, %v10283_v19  ;;  %v12948_v11 = vand.u32 4294901760, %v10315_v4 }
  0xda   :  { %13408 = vst [vmem:[#allocation114_spill] sm:$0xff] %v10130_v42  ;;  %13409 = vst [vmem:[#allocation115_spill] sm:$0xff] %v10135_v24  ;;  %v12869_v12 = vand.u32 4294901760, %v10125_v44  ;;  %v10162_v23 = vsub.f32 %v10123_v13, %v12866_v49  ;;  %v12882_v49 = vand.u32 4294901760, %v10157_v0  ;;  %v10183_v24 = vld [vmem:[#allocation7 + $0x3b0] sm:$0xff]  ;;  %v10215_v29 = vld [vmem:[#allocation7 + $0x3e0] sm:$0xff] }
  0xdb   :  { %7484 = vmatpush1.bf16.msra.mxu1 %v10100_v26  ;;  %13410 = vst [vmem:[#allocation116_spill] sm:$0xff] %v10140_v55  ;;  %13411 = vst [vmem:[#allocation117_spill] sm:$0xff] %v10145_v6  ;;  %v10172_v6 = vsub.f32 %v10149_v10, %v12872_v3  ;;  %v10177_v55 = vsub.f32 %v10151_v52, %v12873_v41  ;;  %v12878_v26 = vand.u32 4294901760, %v10155_v62  ;;  %v10187_v42 = vld [vmem:[#allocation7 + $0x390] sm:$0xff]  ;;  %v10189_v3 = vld [vmem:[#allocation7 + $0x3a8] sm:$0xff] }
  0xdc   :  { %7806 = vmatprep.subr.bf16.mxu1 %v10108_v20  ;;  %13412 = vst [vmem:[#allocation118_spill] sm:$0xff] %v10162_v23  ;;  %v10167_v20 = vsub.f32 %v10125_v44, %v12869_v12  ;;  %v10181_v23 = vld [vmem:[#allocation7 + $0x398] sm:$0xff]  ;;  %v12892_v38 = vand.u32 4294901760, %v10187_v42  ;;  %v10219_v5 = vld [vmem:[#allocation7 + $0x3c0] sm:$0xff] }
  0xdd   :  { %13414 = vst [vmem:[#allocation120_spill] sm:$0xff] %v10172_v6  ;;  %13415 = vst [vmem:[#allocation121_spill] sm:$0xff] %v10177_v55  ;;  %v12885_v12 = vand.u32 4294901760, %v10181_v23  ;;  %v10194_v41 = vsub.f32 %v10155_v62, %v12878_v26  ;;  %v10199_v55 = vsub.f32 %v10157_v0, %v12882_v49  ;;  %v12896_v26 = vand.u32 4294901760, %v10189_v3 }
  0xde   :  { %13413 = vst [vmem:[#allocation119_spill] sm:$0xff] %v10167_v20  ;;  %v12886_v20 = vand.u32 4294901760, %v10183_v24  ;;  %v12908_v58 = vand.u32 4294901760, %v10219_v5 }
  0xdf   :  { %13416 = vst [vmem:[#allocation122_spill] sm:$0xff] %v10194_v41  ;;  %13417 = vst [vmem:[#allocation123_spill] sm:$0xff] %v10199_v55  ;;  %v10204_v6 = vsub.f32 %v10181_v23, %v12885_v12  ;;  %v10213_v41 = vld [vmem:[#allocation7 + $0x3c8] sm:$0xff]  ;;  %v12901_v55 = vand.u32 4294901760, %v10215_v29  ;;  %v10221_v12 = vld [vmem:[#allocation7 + $0x3d8] sm:$0xff] }
  0xe0   :  { %v10209_v39 = vsub.f32 %v10183_v24, %v12886_v20  ;;  %v12900_v49 = vand.u32 4294901760, %v10213_v41  ;;  %v10226_v20 = vsub.f32 %v10187_v42, %v12892_v38  ;;  %v12912_v38 = vand.u32 4294901760, %v10221_v12 }
  0xe1   :  { %13418 = vst [vmem:[#allocation124_spill] sm:$0xff] %v10204_v6  ;;  %v10241_v9 = vsub.f32 %v10215_v29, %v12901_v55  ;;  %v10258_v55 = vsub.f32 %v10219_v5, %v12908_v58 }
  0xe2   :  { %13419 = vst [vmem:[#allocation125_spill] sm:$0xff] %v10209_v39  ;;  %13420 = vst [vmem:[#allocation126_spill] sm:$0xff] %v10226_v20  ;;  %v10231_v39 = vsub.f32 %v10189_v3, %v12896_v26  ;;  %v10236_v6 = vsub.f32 %v10213_v41, %v12900_v49  ;;  %v10245_v20 = vld [vmem:[#allocation7 + $0x3f8] sm:$0xff]  ;;  %v10253_v49 = vld [vmem:[#allocation7 + $0x408] sm:$0xff] }
  0xe3   :  { %13423 = vst [vmem:[#allocation129_spill] sm:$0xff] %v10241_v9  ;;  %v12916_v26 = vand.u32 4294901760, %v10245_v20  ;;  %13424 = vst [vmem:[#allocation130_spill] sm:$0xff] %v10258_v55  ;;  %v10263_v9 = vsub.f32 %v10221_v12, %v12912_v38  ;;  %v12928_v58 = vand.u32 4294901760, %v10253_v49  ;;  %v10277_v55 = vld [vmem:[#allocation7 + $0x428] sm:$0xff] }
  0xe4   :  { %13421 = vst [vmem:[#allocation127_spill] sm:$0xff] %v10231_v39  ;;  %13422 = vst [vmem:[#allocation128_spill] sm:$0xff] %v10236_v6  ;;  %v12917_v39 = vand.u32 4294901760, %v10247_v56  ;;  %v12932_v38 = vand.u32 4294901760, %v10277_v55 }
  0xe5   :  { %13425 = vst [vmem:[#allocation131_spill] sm:$0xff] %v10263_v9  ;;  %v10268_v6 = vsub.f32 %v10245_v20, %v12916_v26  ;;  %v12933_v9 = vand.u32 4294901760, %v10279_v36  ;;  %v10285_v26 = vld [vmem:[#allocation7 + $0x438] sm:$0xff] }
  0xe6   :  { %v10273_v7 = vsub.f32 %v10247_v56, %v12917_v39  ;;  %v10290_v39 = vsub.f32 %v10251_v57, %v12924_v2  ;;  %v12942_v2 = vand.u32 4294901760, %v10285_v26 }
  0xe7   :  { %13426 = vst [vmem:[#allocation132_spill] sm:$0xff] %v10268_v6  ;;  %v10300_v6 = vsub.f32 %v10277_v55, %v12932_v38  ;;  %v10305_v40 = vsub.f32 %v10279_v36, %v12933_v9  ;;  %v10317_v38 = vld [vmem:[#allocation7 + $0x468] sm:$0xff]  ;;  %v10322_v9 = vsub.f32 %v10283_v19, %v12940_v27 }
  0xe8   :  { %13427 = vst [vmem:[#allocation133_spill] sm:$0xff] %v10273_v7  ;;  %13428 = vst [vmem:[#allocation134_spill] sm:$0xff] %v10290_v39  ;;  %v10295_v7 = vsub.f32 %v10253_v49, %v12928_v58  ;;  %v10309_v39 = vld [vmem:[#allocation7 + $0x458] sm:$0xff]  ;;  %v12950_v27 = vand.u32 4294901760, %v10317_v38 }
  0xe9   :  { %13430 = vst [vmem:[#allocation136_spill] sm:$0xff] %v10300_v6  ;;  %13431 = vst [vmem:[#allocation137_spill] sm:$0xff] %v10305_v40  ;;  %v12943_v58 = vand.u32 4294901760, %v10309_v39  ;;  %v10327_v40 = vsub.f32 %v10285_v26, %v12942_v2 }
  0xea   :  { %13429 = vst [vmem:[#allocation135_spill] sm:$0xff] %v10295_v7  ;;  %v12945_v7 = vand.u32 4294901760, %v10311_v60  ;;  %13432 = vst [vmem:[#allocation138_spill] sm:$0xff] %v10322_v9  ;;  %v10344_v9 = vsub.f32 %v10315_v4, %v12948_v11  ;;  %v10349_v2 = vsub.f32 %v10317_v38, %v12950_v27 }
  0xeb   :  { %13433 = vst [vmem:[#allocation139_spill] sm:$0xff] %v10327_v40  ;;  %v10332_v6 = vsub.f32 %v10309_v39, %v12943_v58  ;;  %v94_v40 = vld [vmem:[%s12679_s2] sm:$0x7] }
  0xec   :  { %v10337_v32 = vsub.f32 %v10311_v60, %v12945_v7  ;;  %13436 = vst [vmem:[#allocation142_spill] sm:$0xff] %v10344_v9  ;;  %13437 = vst [vmem:[#allocation143_spill] sm:$0xff] %v10349_v2 }
  0xed   :  { %13434 = vst [vmem:[#allocation140_spill] sm:$0xff] %v10332_v6  ;;  %v96_v6 = vlaneseq }
  0xee   :  { %13435 = vst [vmem:[#allocation141_spill] sm:$0xff] %v10337_v32 }
  0xef   :  { %v10353_v7 = vshrl.u32 %v96_v6, 7 }
  0xf1   :  { %13438 = vst [vmem:[#allocation144_spill] sm:$0xff] %v10353_v7  ;;  %v12968_v32 = vsub.s32 0, %v10353_v7  ;;  %v12969_v11 = vsub.s32 1, %v10353_v7  ;;  %v12970_v50 = vsub.s32 2, %v10353_v7  ;;  %v13444_v7 = vld [vmem:[#allocation25_spill] sm:$0xff] }
  0xf3   :  { %v99_v9 = vrot.slane %v94_v40, %v12968_v32  ;;  %v103_v27 = vrot.slane %v94_v40, %v12969_v11  ;;  %v7551_v32 = vpack.c.bf16 %v9084_v46, %v9077_v45 }
 0x162   :  { %v585_v2 = vpop.f32.mrb[0].mxu0  ;;  %v1032_v15 = vpop.f32.mrb[0].mxu1 }
 0x163   :  { %v8621_v58 = vadd.f32 %v585_v2, %v99_v9  ;;  %v587_v33 = vpop.f32.mrb[1].mxu0  ;;  %v6790_v6 = vpop.f32.mrb[1].mxu1  ;;  %v7553_v2 = vpack.c.bf16 %v9104_v54, %v9099_v53  ;;  %v13445_v54 = vld [vmem:[#allocation26_spill] sm:$0xff] }
 0x164   :  { %v8622_v43 = vadd.f32 %v587_v33, %v103_v27  ;;  %v107_v33 = vrot.slane %v94_v40, %v12970_v50 }
 0x165   :  { %8713 = vtanh.f32 %v8621_v58 }
 0x166   :  { %8715 = vtanh.f32 %v8622_v43  ;;  %v8623_v50 = vadd.f32 %v1032_v15, %v107_v33  ;;  %v13451_v15 = vand.u32 4294901760, %v10116_v61  ;;  %v13452_v33 = vand.u32 4294901760, %v10118_v17  ;;  %v13459_v17 = vld [vmem:[#allocation33_spill] sm:$0xff] }
 0x168   :  { %8717 = vtanh.f32 %v8623_v50 }
 0x16f   :  { %v8714_v30 = vpop.eup %8713 }
 0x170   :  { %v8716_v47 = vpop.eup %8715  ;;  %v10365_v59 = vand.u32 4294901760, %v8714_v30 }
 0x171   :  { %v10367_v51 = vand.u32 4294901760, %v8716_v47 }
 0x172   :  { %13439 = vst [vmem:[#allocation145_spill] sm:$0xff] %v10365_v59  ;;  %v10372_v11 = vsub.f32 %v8714_v30, %v10365_v59  ;;  %v7555_v30 = vpack.c.bf16 %v9128_v1, %v9123_v63  ;;  %v7559_v1 = vpack.c.bf16 %v13445_v54, %v13444_v7  ;;  %v13446_v63 = vand.u32 4294901760, %v10104_v21  ;;  %v13455_v21 = vld [vmem:[#allocation30_spill] sm:$0xff] }
 0x173   :  { %1730 = vmatprep.mubr.f32.mxu0 %v10367_v51  ;;  %v10378_v27 = vsub.f32 %v8716_v47, %v10367_v51  ;;  %v13443_v47 = vld [vmem:[#allocation24_spill] sm:$0xff] }
 0x174   :  { %13440 = vst [vmem:[#allocation146_spill] sm:$0xff] %v10372_v11  ;;  %1732 = vmatmul.mubr.f32.vlgmr.msra.gmra.mrb[2].mxu0 %v10365_v59  ;;  %v10384_v43 = vand.u32 4294901760, %v10372_v11  ;;  %v7557_v9 = vpack.c.bf16 %v13443_v47, %v9153_v28  ;;  %v13449_v28 = vld [vmem:[#allocation27_spill] sm:$0xff] }
 0x175   :  { %7552 = vmatpush1.bf16.msra.mxu0 %v7551_v32  ;;  %1932 = vmatprep.mubr.f32.mxu0 %v10378_v27  ;;  %v10390_v58 = vand.u32 4294901760, %v10378_v27 }
 0x176   :  { %13441 = vst [vmem:[#allocation147_spill] sm:$0xff] %v10384_v43  ;;  %7554 = vmatprep.subr.bf16.mxu0 %v7553_v2  ;;  %v1337_v40 = vsub.f32 %v10372_v11, %v10384_v43  ;;  %v13447_v2 = vand.u32 4294901760, %v10106_v22  ;;  %v13450_v43 = vld [vmem:[#allocation28_spill] sm:$0xff] }
 0x177   :  { %13442 = vst [vmem:[#allocation148_spill] sm:$0xff] %v10390_v58  ;;  %v1331_v6 = vsub.f32 %v10378_v27, %v10390_v58  ;;  %v7561_v46 = vpack.c.bf16 %v13450_v43, %v13449_v28 }
 0x178   :  { %v10406_v53 = vpack.c.bf16 %v13447_v2, %v13446_v63  ;;  %v10408_v47 = vand.u32 4294901760, %v1337_v40  ;;  %v13454_v63 = vld [vmem:[#allocation29_spill] sm:$0xff]  ;;  %v13457_v40 = vand.u32 4294901760, %v10125_v44  ;;  %v13461_v2 = vand.u32 4294901760, %v10149_v10  ;;  %v13466_v44 = vld [vmem:[#allocation39_spill] sm:$0xff] }
 0x179   :  { %7556 = vmatpush1.bf16.msra.mxu0 %v7555_v30  ;;  %v10398_v32 = vand.u32 4294901760, %v1331_v6  ;;  %v10416_v30 = vpack.c.bf16 %v13452_v33, %v13451_v15  ;;  %v7563_v22 = vpack.c.bf16 %v13455_v21, %v13454_v63  ;;  %v13460_v6 = vld [vmem:[#allocation35_spill] sm:$0xff]  ;;  %v13464_v33 = vmov 0.0   ;;  %v13471_v10 = vld [vmem:[#allocation41_spill] sm:$0xff] }
 0x17a   :  { %13448 = vst [vmem:[#allocation25_spill] sm:$0xff] %v10406_v53  ;;  %7558 = vmatprep.subr.bf16.mxu0 %v7557_v9  ;;  %v13456_v9 = vand.u32 4294901760, %v10123_v13  ;;  %v7565_v50 = vpack.c.bf16 %v13460_v6, %v13459_v17  ;;  %v13465_v13 = vld [vmem:[#allocation38_spill] sm:$0xff] }
 0x17b   :  { %13453 = vst [vmem:[#allocation26_spill] sm:$0xff] %v10416_v30  ;;  %1333 = vmatprep.mubr.f32.mxu1 %v10398_v32 }
 0x17c   :  { %1339 = vmatmul.mubr.f32.vlgmr.msra.gmra.mrb[2].mxu1 %v10408_v47  ;;  %v10427_v61 = vpack.c.bf16 %v13457_v40, %v13456_v9  ;;  %v7567_v9 = vpack.c.bf16 %v13466_v44, %v13465_v13  ;;  %v13468_v40 = vand.u32 4294901760, %v10157_v0  ;;  %v10702_v13 = vld [vmem:[#allocation7 + $0x100] sm:$0xff] }
 0x17d   :  { %7560 = vmatpush1.bf16.msra.mxu0 %v7559_v1  ;;  %7808 = vmatpush1.bf16.msra.mxu1 %v10406_v53  ;;  %v13462_v1 = vand.u32 4294901760, %v10151_v52  ;;  %v13470_v52 = vld [vmem:[#allocation40_spill] sm:$0xff]  ;;  %v10457_v53 = vpop.eup %8717 }
 0x17e   :  { %13458 = vst [vmem:[#allocation27_spill] sm:$0xff] %v10427_v61  ;;  %7562 = vmatprep.subr.bf16.mxu0 %v7561_v46  ;;  %7810 = vmatprep.subr.bf16.mxu1 %v10416_v30  ;;  %v13467_v46 = vand.u32 4294901760, %v10155_v62  ;;  %13475 = vst [vmem:[#allocation152_spill] sm:$0xff] %v10457_v53  ;;  %v13476_v62 = vld [vmem:[#allocation45_spill] sm:$0xff] }
 0x17f   :  { %v10436_v15 = vpack.c.bf16 %v13462_v1, %v13461_v2  ;;  %2580 = vmatprep.mubr.f32.mxu1 %v13464_v33  ;;  %v7569_v2 = vpack.c.bf16 %v13471_v10, %v13470_v52  ;;  %v13472_v1 = vand.u32 4294901760, %v10181_v23  ;;  %v7571_v0 = vpack.c.bf16 %v13476_v62, %v9409_v37  ;;  %v13480_v23 = vld [vmem:[#allocation46_spill] sm:$0xff]  ;;  %v10683_v52 = vld [vmem:[#allocation7 + $0x280] sm:$0xff] }
 0x180   :  { %v10446_v30 = vpack.c.bf16 %v13468_v40, %v13467_v46  ;;  %v13478_v46 = vand.u32 4294901760, %v10189_v3  ;;  %v7575_v3 = vpack.c.bf16 %v9471_v14, %v9466_v34  ;;  %v13540_v14 = vld [vmem:[#allocation87_spill] sm:$0xff]  ;;  %v13541_v34 = vld [vmem:[#allocation88_spill] sm:$0xff] }
 0x181   :  { %13463 = vst [vmem:[#allocation149_spill] sm:$0xff] %v10436_v15  ;;  %7564 = vmatpush1.bf16.msra.mxu0 %v7563_v22  ;;  %7812 = vmatpush1.bf16.msra.mxu1 %v10427_v61  ;;  %v13473_v22 = vand.u32 4294901760, %v10183_v24  ;;  %v7573_v24 = vpack.c.bf16 %v9433_v8, %v13480_v23 }
 0x182   :  { %13469 = vst [vmem:[#allocation150_spill] sm:$0xff] %v10446_v30  ;;  %7566 = vmatprep.subr.bf16.mxu0 %v7565_v50  ;;  %7814 = vmatprep.subr.bf16.mxu1 %v10436_v15  ;;  %v13477_v50 = vand.u32 4294901760, %v10187_v42  ;;  %v13485_v42 = vand.u32 4294901760, %v10219_v5  ;;  %v13493_v5 = vld [vmem:[#allocation55_spill] sm:$0xff] }
 0x183   :  { %v10455_v61 = vpack.c.bf16 %v13473_v22, %v13472_v1  ;;  %v13481_v1 = vand.u32 4294901760, %v10213_v41  ;;  %v13488_v41 = vand.u32 4294901760, %v10245_v20 }
 0x184   :  { %v10466_v40 = vpack.c.bf16 %v13478_v46, %v13477_v50 }
 0x185   :  { %13474 = vst [vmem:[#allocation151_spill] sm:$0xff] %v10455_v61  ;;  %7568 = vmatpush1.bf16.msra.mxu0 %v7567_v9  ;;  %7816 = vmatpush1.bf16.msra.mxu1 %v10446_v30  ;;  %v13482_v9 = vand.u32 4294901760, %v10215_v29  ;;  %v10478_v30 = vand.u32 4294901760, %v10457_v53  ;;  %v7577_v29 = vpack.c.bf16 %v9485_v48, %v9480_v18  ;;  %v1065_v48 = vld [vmem:[#allocation7 + $0xd0] sm:$0xff]  ;;  %v10652_v18 = vld [vmem:[#allocation7 + $0xe8] sm:$0xff] }
 0x186   :  { %13479 = vst [vmem:[#allocation153_spill] sm:$0xff] %v10466_v40  ;;  %7570 = vmatprep.subr.bf16.mxu0 %v7569_v2  ;;  %7818 = vmatprep.subr.bf16.mxu1 %v10455_v61  ;;  %v13486_v2 = vand.u32 4294901760, %v10221_v12  ;;  %v13492_v12 = vld [vmem:[#allocation54_spill] sm:$0xff] }
 0x187   :  { %v10475_v22 = vpack.c.bf16 %v13482_v9, %v13481_v1  ;;  %13484 = vst [vmem:[#allocation155_spill] sm:$0xff] %v10478_v30  ;;  %v10500_v1 = vsub.f32 %v10457_v53, %v10478_v30  ;;  %v13494_v9 = vand.u32 4294901760, %v10251_v57  ;;  %v10520_v53 = vld [vmem:[#allocation7 + $0x190] sm:$0xff] }
 0x188   :  { %v10487_v50 = vpack.c.bf16 %v13486_v2, %v13485_v42  ;;  %v13495_v42 = vand.u32 4294901760, %v10253_v49  ;;  %v13502_v49 = vld [vmem:[#allocation62_spill] sm:$0xff]  ;;  %v13544_v62 = vand.u32 4294901760, %v10520_v53 }
 0x189   :  { %13483 = vst [vmem:[#allocation154_spill] sm:$0xff] %v10475_v22  ;;  %7572 = vmatpush1.bf16.msra.mxu0 %v7571_v0  ;;  %7820 = vmatpush1.bf16.msra.mxu1 %v10466_v40  ;;  %v13489_v0 = vand.u32 4294901760, %v10247_v56  ;;  %13491 = vst [vmem:[#allocation158_spill] sm:$0xff] %v10500_v1  ;;  %v13497_v56 = vld [vmem:[#allocation59_spill] sm:$0xff]  ;;  %v10525_v57 = vand.u32 4294901760, %v10500_v1  ;;  %v10547_v61 = vld [vmem:[#allocation7 + $0x10] sm:$0xff] }
 0x18a   :  { %13487 = vst [vmem:[#allocation156_spill] sm:$0xff] %v10487_v50  ;;  %7574 = vmatprep.subr.bf16.mxu0 %v7573_v24  ;;  %7822 = vmatprep.subr.bf16.mxu1 %v10475_v22  ;;  %v7579_v24 = vpack.c.bf16 %v13493_v5, %v13492_v12  ;;  %v10509_v2 = vpack.c.bf16 %v13495_v42, %v13494_v9  ;;  %v13504_v42 = vand.u32 4294901760, %v10283_v19  ;;  %v13509_v22 = vand.u32 4294901760, %v10309_v39  ;;  %v10585_v40 = vld [vmem:[#allocation7 + $0x208] sm:$0xff]  ;;  %v10638_v5 = vld [vmem:[#allocation7 + $0xb8] sm:$0xff] }
 0x18b   :  { %v10496_v46 = vpack.c.bf16 %v13489_v0, %v13488_v41  ;;  %v7581_v20 = vpack.c.bf16 %v13497_v56, %v9578_v31  ;;  %v13498_v41 = vand.u32 4294901760, %v10277_v55  ;;  %13501 = vst [vmem:[#allocation161_spill] sm:$0xff] %v10525_v57  ;;  %v13505_v55 = vand.u32 4294901760, %v10285_v26  ;;  %v10549_v26 = vld [vmem:[#allocation7 + $0x28] sm:$0xff] }
 0x18c   :  { %13496 = vst [vmem:[#allocation159_spill] sm:$0xff] %v10509_v2  ;;  %v7587_v39 = vpack.c.bf16 %v9695_v16, %v9690_v35  ;;  %v13523_v30 = vand.u32 4294901760, %v10549_v26  ;;  %v10607_v35 = vld [vmem:[#allocation7 + $0x88] sm:$0xff]  ;;  %v13535_v56 = vand.u32 4294901760, %v10585_v40  ;;  %v3361_v12 = vand.u32 4294901760, %v10638_v5 }
 0x18d   :  { %13490 = vst [vmem:[#allocation157_spill] sm:$0xff] %v10496_v46  ;;  %7576 = vmatpush1.bf16.msra.mxu0 %v7575_v3  ;;  %7824 = vmatpush1.bf16.msra.mxu1 %v10487_v50  ;;  %v13499_v3 = vand.u32 4294901760, %v10279_v36  ;;  %v10522_v50 = vld [vmem:[#allocation7 + $0x1a8] sm:$0xff]  ;;  %v10534_v36 = vpack.c.bf16 %v13505_v55, %v13504_v42  ;;  %v10553_v42 = vld [vmem:[#allocation7 + $0x1c0] sm:$0xff]  ;;  %v10555_v55 = vld [vmem:[#allocation7 + $0x1d8] sm:$0xff]  ;;  %v10666_v37 = vsub.f32 %v10520_v53, %v13544_v62 }
 0x18e   :  { %7578 = vmatprep.subr.bf16.mxu0 %v7577_v29  ;;  %7826 = vmatprep.subr.bf16.mxu1 %v10496_v46  ;;  %v13503_v29 = vld [vmem:[#allocation63_spill] sm:$0xff] }
 0x18f   :  { %v10518_v0 = vpack.c.bf16 %v13499_v3, %v13498_v41  ;;  %v7583_v9 = vpack.c.bf16 %v13503_v29, %v13502_v49  ;;  %13506 = vst [vmem:[#allocation162_spill] sm:$0xff] %v10534_v36  ;;  %v13507_v41 = vld [vmem:[#allocation64_spill] sm:$0xff]  ;;  %v13508_v3 = vld [vmem:[#allocation65_spill] sm:$0xff]  ;;  %v13532_v29 = vld [vmem:[#allocation83_spill] sm:$0xff] }
 0x190   :  { %v7585_v46 = vpack.c.bf16 %v13508_v3, %v13507_v41  ;;  %v10613_v3 = vld [vmem:[#allocation7 + $0x238] sm:$0xff]  ;;  %v3355_v41 = vand.u32 4294901760, %v10607_v35  ;;  %v13533_v49 = vld [vmem:[#allocation84_spill] sm:$0xff] }
 0x191   :  { %13500 = vst [vmem:[#allocation160_spill] sm:$0xff] %v10518_v0  ;;  %7580 = vmatpush1.bf16.msra.mxu0 %v7579_v24  ;;  %7828 = vmatpush1.bf16.msra.mxu1 %v10509_v2  ;;  %v13510_v24 = vand.u32 4294901760, %v10311_v60  ;;  %v13512_v60 = vand.u32 4294901760, %v10315_v4  ;;  %v10577_v4 = vld [vmem:[#allocation7 + $0x40] sm:$0xff]  ;;  %v13542_v8 = vand.u32 4294901760, %v10613_v3 }
 0x192   :  { %7582 = vmatprep.subr.bf16.mxu0 %v7581_v20  ;;  %7830 = vmatprep.subr.bf16.mxu1 %v10518_v0  ;;  %v2584_v20 = vsub.f32 %v10500_v1, %v10525_v57  ;;  %v13515_v57 = vld [vmem:[#allocation71_spill] sm:$0xff]  ;;  %v13517_v0 = vand.u32 4294901760, %v10522_v50  ;;  %v13522_v1 = vand.u32 4294901760, %v10547_v61  ;;  %v10736_v17 = vsub.f32 %v10607_v35, %v3355_v41 }
 0x193   :  { %v10543_v2 = vpack.c.bf16 %v13510_v24, %v13509_v22  ;;  %v13513_v22 = vand.u32 4294901760, %v10317_v38  ;;  %v10579_v38 = vld [vmem:[#allocation7 + $0x58] sm:$0xff] }
 0x194   :  { %v10587_v19 = vand.u32 4294901760, %v2584_v20  ;;  %v10596_v33 = vpack.c.bf16 %v13523_v30, %v13522_v1  ;;  %v13525_v20 = vld [vmem:[#allocation75_spill] sm:$0xff] }
 0x195   :  { %13511 = vst [vmem:[#allocation163_spill] sm:$0xff] %v10543_v2  ;;  %7584 = vmatpush1.bf16.msra.mxu0 %v7583_v9  ;;  %7832 = vmatpush1.bf16.msra.mxu1 %v10534_v36  ;;  %v10564_v24 = vpack.c.bf16 %v13513_v22, %v13512_v60  ;;  %v7589_v9 = vpack.c.bf16 %v9717_v25, %v13515_v57  ;;  %v13516_v36 = vand.u32 4294901760, %v10520_v53  ;;  %v3394_v60 = vand.u32 4294901760, %v10553_v42  ;;  %v10611_v1 = vld [vmem:[#allocation7 + $0x220] sm:$0xff] }
 0x196   :  { %7586 = vmatprep.subr.bf16.mxu0 %v7585_v46  ;;  %7834 = vmatprep.subr.bf16.mxu1 %v10543_v2  ;;  %v3397_v22 = vand.u32 4294901760, %v10555_v55  ;;  %v10583_v46 = vld [vmem:[#allocation7 + $0x1f0] sm:$0xff]  ;;  %13519 = vst [vmem:[#allocation166_spill] sm:$0xff] %v10587_v19  ;;  %13524 = vst [vmem:[#allocation167_spill] sm:$0xff] %v10596_v33  ;;  %v3346_v25 = vand.u32 4294901760, %v10577_v4  ;;  %v13529_v57 = vld [vmem:[#allocation79_spill] sm:$0xff] }
 0x197   :  { %13514 = vst [vmem:[#allocation164_spill] sm:$0xff] %v10564_v24  ;;  %v10575_v15 = vpack.c.bf16 %v13517_v0, %v13516_v36  ;;  %v13520_v2 = vld [vmem:[#allocation73_spill] sm:$0xff]  ;;  %v13521_v0 = vld [vmem:[#allocation74_spill] sm:$0xff]  ;;  %v10688_v53 = vsub.f32 %v10553_v42, %v3394_v60 }
 0x198   :  { %v7591_v36 = vpack.c.bf16 %v13521_v0, %v13520_v2  ;;  %v10605_v2 = vld [vmem:[#allocation7 + $0x70] sm:$0xff]  ;;  %v10609_v30 = vpack.c.bf16 %v3397_v22, %v3394_v60  ;;  %v13530_v0 = vand.u32 4294901760, %v10579_v38  ;;  %v10691_v62 = vsub.f32 %v10555_v55, %v3397_v22  ;;  %v13552_v55 = vld [vmem:[#allocation96_spill] sm:$0xff] }
 0x199   :  { %13518 = vst [vmem:[#allocation165_spill] sm:$0xff] %v10575_v15  ;;  %7588 = vmatpush1.bf16.msra.mxu0 %v7587_v39  ;;  %7836 = vmatpush1.bf16.msra.mxu1 %v10564_v24  ;;  %v13526_v39 = vld [vmem:[#allocation76_spill] sm:$0xff]  ;;  %v13551_v42 = vld [vmem:[#allocation94_spill] sm:$0xff] }
 0x19a   :  { %7590 = vmatprep.subr.bf16.mxu0 %v7589_v9  ;;  %7998 = vmatprep.subr.bf16.mxu1 %v10575_v15  ;;  %v7593_v16 = vpack.c.bf16 %v13526_v39, %v13525_v20  ;;  %13527 = vst [vmem:[#allocation168_spill] sm:$0xff] %v10609_v30  ;;  %v13528_v9 = vld [vmem:[#allocation78_spill] sm:$0xff]  ;;  %v10621_v39 = vpack.c.bf16 %v13530_v0, %v3346_v25  ;;  %v3352_v20 = vand.u32 4294901760, %v10605_v2 }
 0x19b   :  { %v7595_v24 = vpack.c.bf16 %v13529_v57, %v13528_v9  ;;  %v3406_v57 = vand.u32 4294901760, %v10611_v1  ;;  %v10636_v9 = vld [vmem:[#allocation7 + $0xa0] sm:$0xff]  ;;  %v7605_v60 = vpack.c.bf16 %v13552_v55, %v13551_v42  ;;  %v13556_v42 = vand.u32 4294901760, %v10585_v40  ;;  %v13611_v15 = vld [vmem:[#allocation42_spill] sm:$0xff] }
 0x19c   :  { %2586 = vmatmul.mubr.f32.vlgmr.msra.gmra.mrb[4].mxu1 %v10587_v19  ;;  %13531 = vst [vmem:[#allocation169_spill] sm:$0xff] %v10621_v39  ;;  %v7597_v19 = vpack.c.bf16 %v13533_v49, %v13532_v29  ;;  %v13537_v49 = vld [vmem:[#allocation85_spill] sm:$0xff]  ;;  %v10648_v29 = vpack.c.bf16 %v3355_v41, %v3352_v20  ;;  %v3358_v0 = vand.u32 4294901760, %v10636_v9  ;;  %v10733_v6 = vsub.f32 %v10605_v2, %v3352_v20  ;;  %v13561_v20 = vld [vmem:[#allocation102_spill] sm:$0xff] }
 0x19d   :  { %7592 = vmatpush1.bf16.msra.mxu0 %v7591_v36  ;;  %8000 = vmatpush3.bf16.msra.mxu1 %v10596_v33  ;;  %v13534_v36 = vand.u32 4294901760, %v10583_v46  ;;  %v10659_v23 = vpack.c.bf16 %v13542_v8, %v3406_v57  ;;  %v13547_v8 = vand.u32 4294901760, %v10549_v26  ;;  %v10739_v33 = vsub.f32 %v10611_v1, %v3406_v57  ;;  %v10750_v41 = vld [vmem:[#allocation7 + $0x130] sm:$0xff]  ;;  %v10752_v57 = vld [vmem:[#allocation7 + $0x148] sm:$0xff] }
 0x19e   :  { %3440 = vmatprep.mubr.f32.mxu1 %v10398_v32  ;;  %7594 = vmatprep.subr.bf16.mxu0 %v7593_v16  ;;  %v10641_v16 = vld [vmem:[#allocation7 + $0x250] sm:$0xff]  ;;  %v10643_v32 = vld [vmem:[#allocation7 + $0x268] sm:$0xff]  ;;  %13539 = vst [vmem:[#allocation171_spill] sm:$0xff] %v10648_v29  ;;  %v10700_v44 = vpack.c.bf16 %v3361_v12, %v3358_v0 }
 0x19f   :  { %v10632_v31 = vpack.c.bf16 %v13535_v56, %v13534_v36  ;;  %8002 = vmatprep.subr.bf16.mxu1 %v10609_v30  ;;  %v13538_v56 = vld [vmem:[#allocation86_spill] sm:$0xff]  ;;  %13543 = vst [vmem:[#allocation172_spill] sm:$0xff] %v10659_v23  ;;  %v10681_v10 = vsub.f32 %v10549_v26, %v13547_v8  ;;  %v10730_v30 = vsub.f32 %v10585_v40, %v13556_v42  ;;  %v3370_v40 = vand.u32 4294901760, %v10702_v13 }
 0x1a0   :  { %v7599_v36 = vpack.c.bf16 %v13538_v56, %v13537_v49  ;;  %v3412_v56 = vand.u32 4294901760, %v10641_v16  ;;  %v3415_v49 = vand.u32 4294901760, %v10643_v32  ;;  %v13549_v26 = vld [vmem:[#allocation90_spill] sm:$0xff]  ;;  %13550 = vst [vmem:[#allocation173_spill] sm:$0xff] %v10700_v44 }
 0x1a1   :  { %13536 = vst [vmem:[#allocation170_spill] sm:$0xff] %v10632_v31  ;;  %7596 = vmatpush1.bf16.msra.mxu0 %v7595_v24  ;;  %8004 = vmatpush3.bf16.msra.mxu1 %v10621_v39  ;;  %v7601_v24 = vpack.c.bf16 %v13541_v34, %v13540_v14  ;;  %v13546_v34 = vand.u32 4294901760, %v10547_v61  ;;  %v10685_v39 = vld [vmem:[#allocation7 + $0x298] sm:$0xff] }
 0x1a2   :  { %7598 = vmatprep.subr.bf16.mxu0 %v7597_v19  ;;  %8006 = vmatprep.subr.bf16.mxu1 %v10632_v31  ;;  %v13545_v19 = vand.u32 4294901760, %v10522_v50  ;;  %v10707_v22 = vpack.c.bf16 %v3415_v49, %v3412_v56 }
 0x1a3   :  { %v10676_v14 = vsub.f32 %v10547_v61, %v13546_v34  ;;  %v10695_v34 = vsub.f32 %v10577_v4, %v3346_v25  ;;  %v13548_v61 = vld [vmem:[#allocation89_spill] sm:$0xff]  ;;  %v3418_v25 = vand.u32 4294901760, %v10683_v52  ;;  %v3421_v4 = vand.u32 4294901760, %v10685_v39 }
 0x1a4   :  { %v10671_v31 = vsub.f32 %v10522_v50, %v13545_v19  ;;  %v3364_v50 = vand.u32 4294901760, %v1065_v48  ;;  %v3367_v19 = vand.u32 4294901760, %v10652_v18  ;;  %v7603_v8 = vpack.c.bf16 %v13549_v26, %v13548_v61  ;;  %13553 = vst [vmem:[#allocation174_spill] sm:$0xff] %v10707_v22  ;;  %v10715_v26 = vld [vmem:[#allocation7 + $0x2c8] sm:$0xff] }
 0x1a5   :  { %7600 = vmatpush1.bf16.msra.mxu0 %v7599_v36  ;;  %8008 = vmatpush3.bf16.msra.mxu1 %v10648_v29  ;;  %v10711_v36 = vld [vmem:[#allocation7 + $0x118] sm:$0xff]  ;;  %v10713_v29 = vld [vmem:[#allocation7 + $0x2b0] sm:$0xff]  ;;  %v13554_v61 = vand.u32 4294901760, %v10579_v38 }
 0x1a6   :  { %7602 = vmatprep.subr.bf16.mxu0 %v7601_v24  ;;  %8010 = vmatprep.subr.bf16.mxu1 %v10659_v23  ;;  %v13555_v23 = vand.u32 4294901760, %v10583_v46  ;;  %v10743_v63 = vpack.c.bf16 %v3367_v19, %v3364_v50  ;;  %v3424_v2 = vand.u32 4294901760, %v10713_v29  ;;  %v10778_v42 = vsub.f32 %v1065_v48, %v3364_v50  ;;  %v10795_v48 = vld [vmem:[#allocation7 + $0x178] sm:$0xff] }
 0x1a7   :  { %v10720_v24 = vsub.f32 %v10579_v38, %v13554_v61  ;;  %v13557_v38 = vld [vmem:[#allocation97_spill] sm:$0xff]  ;;  %v13558_v61 = vld [vmem:[#allocation98_spill] sm:$0xff] }
 0x1a8   :  { %v10725_v55 = vsub.f32 %v10583_v46, %v13555_v23  ;;  %v7607_v21 = vpack.c.bf16 %v13558_v61, %v13557_v38  ;;  %13559 = vst [vmem:[#allocation175_spill] sm:$0xff] %v10743_v63  ;;  %v3373_v23 = vand.u32 4294901760, %v10711_v36  ;;  %v13560_v46 = vld [vmem:[#allocation100_spill] sm:$0xff]  ;;  %v13563_v38 = vand.u32 4294901760, %v10613_v3  ;;  %13567 = vst [vmem:[#allocation180_spill] sm:$0xff] %v10778_v42 }
 0x1a9   :  { %7604 = vmatpush1.bf16.msra.mxu0 %v7603_v8  ;;  %8012 = vmatpush3.bf16.msra.mxu1 %v10700_v44  ;;  %v7609_v1 = vpack.c.bf16 %v13561_v20, %v13560_v46  ;;  %v10757_v8 = vpack.c.bf16 %v3421_v4, %v3418_v25  ;;  %v10767_v44 = vsub.f32 %v10636_v9, %v3358_v0  ;;  %v13582_v0 = vand.u32 4294901760, %v10676_v14  ;;  %v13584_v46 = vld [vmem:[#allocation31_spill] sm:$0xff] }
 0x1aa   :  { %7606 = vmatprep.subr.bf16.mxu0 %v7605_v60  ;;  %8014 = vmatprep.subr.bf16.mxu1 %v10707_v22  ;;  %v10764_v35 = vsub.f32 %v10613_v3, %v13563_v38  ;;  %v10770_v60 = vsub.f32 %v10638_v5, %v3361_v12  ;;  %v10773_v22 = vsub.f32 %v10641_v16, %v3412_v56  ;;  %v10782_v3 = vld [vmem:[#allocation7 + $0x2e0] sm:$0xff]  ;;  %v10784_v38 = vld [vmem:[#allocation7 + $0x2f8] sm:$0xff]  ;;  %v13569_v5 = vand.u32 4294901760, %v10715_v26 }
 0x1ab   :  { %13562 = vst [vmem:[#allocation176_spill] sm:$0xff] %v10757_v8  ;;  %v10776_v20 = vsub.f32 %v10643_v32, %v3415_v49  ;;  %v10787_v12 = vpack.c.bf16 %v3373_v23, %v3370_v40  ;;  %v10793_v49 = vld [vmem:[#allocation7 + $0x160] sm:$0xff]  ;;  %v13572_v56 = vand.u32 4294901760, %v10671_v31  ;;  %v10809_v61 = vsub.f32 %v10652_v18, %v3367_v19  ;;  %v13579_v19 = vld [vmem:[#allocation105_spill] sm:$0xff] }
 0x1ac   :  { %13564 = vst [vmem:[#allocation177_spill] sm:$0xff] %v10770_v60  ;;  %13565 = vst [vmem:[#allocation178_spill] sm:$0xff] %v10773_v22  ;;  %v10791_v9 = vpack.c.bf16 %v13569_v5, %v3424_v2  ;;  %v10812_v16 = vsub.f32 %v10683_v52, %v3418_v25  ;;  %v13580_v52 = vld [vmem:[#allocation103_spill] sm:$0xff] }
 0x1ad   :  { %13566 = vst [vmem:[#allocation179_spill] sm:$0xff] %v10776_v20  ;;  %7608 = vmatpush1.bf16.msra.mxu0 %v7607_v21  ;;  %8016 = vmatpush3.bf16.msra.mxu1 %v10743_v63  ;;  %13568 = vst [vmem:[#allocation181_spill] sm:$0xff] %v10787_v12  ;;  %v13571_v21 = vand.u32 4294901760, %v10666_v37  ;;  %v3574_v50 = vsub.f32 %v10671_v31, %v13572_v56  ;;  %v13577_v56 = vand.u32 4294901760, %v10752_v57 }
 0x1ae   :  { %13570 = vst [vmem:[#allocation182_spill] sm:$0xff] %v10791_v9  ;;  %7610 = vmatprep.subr.bf16.mxu0 %v7609_v1  ;;  %8018 = vmatprep.subr.bf16.mxu1 %v10757_v8  ;;  %13573 = vst [vmem:[#allocation183_spill] sm:$0xff] %v10809_v61  ;;  %v13576_v8 = vand.u32 4294901760, %v10750_v41  ;;  %v13581_v25 = vpack.c.bf16 %v13579_v19, %v13580_v52  ;;  %v13585_v19 = vand.u32 4294901760, %v10688_v53 }
 0x1af   :  { %v3567_v32 = vsub.f32 %v10666_v37, %v13571_v21  ;;  %13574 = vst [vmem:[#allocation184_spill] sm:$0xff] %v10812_v16  ;;  %v10817_v21 = vsub.f32 %v10685_v39, %v3421_v4  ;;  %v3455_v39 = vsub.f32 %v10676_v14, %v13582_v0  ;;  %v13583_v4 = vand.u32 4294901760, %v10681_v10 }
 0x1b0   :  { %v10823_v5 = vpack.c.bf16 %v13577_v56, %v13576_v8  ;;  %v3581_v52 = vsub.f32 %v10688_v53, %v13585_v19  ;;  %v13586_v0 = vand.u32 4294901760, %v10691_v62  ;;  %v13588_v8 = vand.u32 4294901760, %v10782_v3 }
 0x1b1   :  { %13575 = vst [vmem:[#allocation185_spill] sm:$0xff] %v10817_v21  ;;  %7612 = vmatpush1.bf16.msra.mxu0 %v13581_v25  ;;  %8020 = vmatpush3.bf16.msra.mxu1 %v10787_v12  ;;  %v3462_v1 = vsub.f32 %v10681_v10, %v13583_v4  ;;  %v3568_v18 = vand.u32 4294901760, %v3567_v32  ;;  %v3575_v25 = vand.u32 4294901760, %v3574_v50  ;;  %v10848_v4 = vsub.f32 %v10702_v13, %v3370_v40 }
 0x1b2   :  { %13578 = vst [vmem:[#allocation186_spill] sm:$0xff] %v10823_v5  ;;  %7614 = vmatprep.subr.bf16.mxu0 %v13584_v46  ;;  %8022 = vmatprep.subr.bf16.mxu1 %v10791_v9  ;;  %v3588_v12 = vsub.f32 %v10691_v62, %v13586_v0  ;;  %v13589_v56 = vand.u32 4294901760, %v10784_v38  ;;  %v10859_v9 = vsub.f32 %v10711_v36, %v3373_v23  ;;  %v13593_v0 = vld [vmem:[#allocation32_spill] sm:$0xff]  ;;  %v13594_v50 = vand.u32 4294901760, %v10695_v34 }
 0x1b3   :  { %13587 = vst [vmem:[#allocation187_spill] sm:$0xff] %v10848_v4  ;;  %v10863_v19 = vsub.f32 %v10713_v29, %v3424_v2  ;;  %v13595_v23 = vand.u32 4294901760, %v10720_v24  ;;  %v13596_v29 = vld [vmem:[#allocation34_spill] sm:$0xff]  ;;  %v13597_v2 = vand.u32 4294901760, %v10793_v49  ;;  %v13598_v40 = vand.u32 4294901760, %v10795_v48 }
 0x1b4   :  { %v10854_v46 = vpack.c.bf16 %v13589_v56, %v13588_v8  ;;  %13591 = vst [vmem:[#allocation189_spill] sm:$0xff] %v10859_v9  ;;  %1935 = vmatmul.mubr.f32.vlgmr.msra.gmra.mrb[2].mxu0 %v10372_v11  ;;  %v3456_v8 = vand.u32 4294901760, %v3455_v39  ;;  %v3463_v56 = vand.u32 4294901760, %v3462_v1  ;;  %v3469_v36 = vsub.f32 %v10695_v34, %v13594_v50 }
 0x1b5   :  { %13592 = vst [vmem:[#allocation190_spill] sm:$0xff] %v10863_v19  ;;  %7616 = vmatpush1.bf16.msra.mxu0 %v13593_v0  ;;  %2072 = vmatprep.mubr.f32.mxu0 %v10390_v58  ;;  %v3476_v32 = vsub.f32 %v10720_v24, %v13595_v23  ;;  %v10881_v13 = vpack.c.bf16 %v13598_v40, %v13597_v2  ;;  %v3582_v1 = vand.u32 4294901760, %v3581_v52  ;;  %v3589_v0 = vand.u32 4294901760, %v3588_v12 }
 0x1b6   :  { %13590 = vst [vmem:[#allocation188_spill] sm:$0xff] %v10854_v46  ;;  %8024 = vmatpush3.bf16.msra.mxu1 %v10823_v5  ;;  %7618 = vmatprep.subr.bf16.mxu0 %v13596_v29  ;;  %v8029_v39 = vpack.c.bf16 %v3575_v25, %v3568_v18  ;;  %v13599_v50 = vand.u32 4294901760, %v10725_v55  ;;  %v13600_v23 = vand.u32 4294901760, %v10730_v30  ;;  %v13601_v40 = vand.u32 4294901760, %v10715_v26  ;;  %v13607_v29 = vld [vmem:[#allocation36_spill] sm:$0xff] }
 0x1b7   :  { %8026 = vmatprep.subr.bf16.mxu1 %v10854_v46  ;;  %v13603_v12 = vand.u32 4294901760, %v10750_v41  ;;  %v13605_v25 = vand.u32 4294901760, %v10733_v6  ;;  %v8031_v58 = vpack.c.bf16 %v3463_v56, %v3456_v8  ;;  %v3470_v46 = vand.u32 4294901760, %v3469_v36 }
 0x1b8   :  { %v3595_v63 = vsub.f32 %v10725_v55, %v13599_v50  ;;  %v3602_v5 = vsub.f32 %v10730_v30, %v13600_v23  ;;  %v10895_v18 = vsub.f32 %v10715_v26, %v13601_v40  ;;  %v13606_v50 = vand.u32 4294901760, %v10736_v17  ;;  %v13608_v40 = vld [vmem:[#allocation37_spill] sm:$0xff] }
 0x1b9   :  { %v10900_v52 = vsub.f32 %v10750_v41, %v13603_v12  ;;  %v3483_v2 = vsub.f32 %v10733_v6, %v13605_v25  ;;  %7620 = vmatpush1.bf16.msra.mxu0 %v13607_v29  ;;  %v3477_v11 = vand.u32 4294901760, %v3476_v32  ;;  %v8033_v41 = vpack.c.bf16 %v3589_v0, %v3582_v1 }
 0x1ba   :  { %13602 = vst [vmem:[#allocation191_spill] sm:$0xff] %v10895_v18  ;;  %v3490_v23 = vsub.f32 %v10736_v17, %v13606_v50  ;;  %8028 = vmatpush3.bf16.msra.mxu1 %v10881_v13  ;;  %7622 = vmatprep.subr.bf16.mxu0 %v13608_v40  ;;  %v13061_v12 = vand.u32 4294901760, %v10770_v60  ;;  %v3596_v50 = vand.u32 4294901760, %v3595_v63  ;;  %v3603_v43 = vand.u32 4294901760, %v3602_v5 }
 0x1bb   :  { %13604 = vst [vmem:[#allocation192_spill] sm:$0xff] %v10900_v52  ;;  %8030 = vmatprep.subr.bf16.mxu1 %v8029_v39  ;;  %v13609_v8 = vand.u32 4294901760, %v10739_v33  ;;  %v13610_v56 = vand.u32 4294901760, %v10764_v35  ;;  %v3484_v26 = vand.u32 4294901760, %v3483_v2  ;;  %v8035_v63 = vpack.c.bf16 %v3477_v11, %v3470_v46 }
 0x1bc   :  { %v3491_v40 = vand.u32 4294901760, %v3490_v23  ;;  %v13612_v5 = vand.u32 4294901760, %v10767_v44  ;;  %v3504_v2 = vsub.f32 %v10770_v60, %v13061_v12  ;;  %v13614_v11 = vand.u32 4294901760, %v10776_v20 }
 0x1bd   :  { %v3609_v32 = vsub.f32 %v10739_v33, %v13609_v8  ;;  %v3616_v36 = vsub.f32 %v10764_v35, %v13610_v56  ;;  %3446 = vmatmul.mubr.f32.vlgmr.msra.gmra.mrb[6].mxu1 %v10408_v47  ;;  %7624 = vmatpush1.bf16.msra.mxu0 %v13611_v15  ;;  %v13613_v47 = vand.u32 4294901760, %v10773_v22  ;;  %v13615_v56 = vand.u32 4294901760, %v10752_v57 }
 0x1be   :  { %v3497_v39 = vsub.f32 %v10767_v44, %v13612_v5  ;;  %8032 = vmatpush3.bf16.msra.mxu1 %v8031_v58  ;;  %3676 = vmatprep.mubr.f32.mxu1 %v10367_v51  ;;  %v3630_v46 = vsub.f32 %v10776_v20, %v13614_v11  ;;  %v13617_v58 = vld [vmem:[#allocation43_spill] sm:$0xff]  ;;  %v8037_v25 = vpack.c.bf16 %v3603_v43, %v3596_v50  ;;  %v13618_v12 = vand.u32 4294901760, %v10782_v3 }
 0x1bf   :  { %v3623_v23 = vsub.f32 %v10773_v22, %v13613_v47  ;;  %v10943_v5 = vsub.f32 %v10752_v57, %v13615_v56  ;;  %7626 = vmatprep.subr.bf16.mxu0 %v13617_v58  ;;  %8034 = vmatprep.subr.bf16.mxu1 %v8033_v41  ;;  %v3610_v8 = vand.u32 4294901760, %v3609_v32  ;;  %v3617_v1 = vand.u32 4294901760, %v3616_v36  ;;  %v13622_v56 = vld [vmem:[#allocation48_spill] sm:$0xff] }
 0x1c0   :  { %v10949_v0 = vsub.f32 %v10782_v3, %v13618_v12  ;;  %v8039_v47 = vpack.c.bf16 %v3491_v40, %v3484_v26  ;;  %v13620_v15 = vand.u32 4294901760, %v10778_v42  ;;  %v13621_v29 = vand.u32 4294901760, %v10809_v61 }
 0x1c1   :  { %13616 = vst [vmem:[#allocation193_spill] sm:$0xff] %v10943_v5  ;;  %7628 = vmatpush1.bf16.msra.mxu0 %v13622_v56  ;;  %v13623_v43 = vand.u32 4294901760, %v10812_v16  ;;  %v13624_v50 = vand.u32 4294901760, %v10817_v21  ;;  %v3498_v12 = vand.u32 4294901760, %v3497_v39  ;;  %v3505_v32 = vand.u32 4294901760, %v3504_v2 }
 0x1c2   :  { %13619 = vst [vmem:[#allocation194_spill] sm:$0xff] %v10949_v0  ;;  %v3511_v11 = vsub.f32 %v10778_v42, %v13620_v15  ;;  %v3518_v57 = vsub.f32 %v10809_v61, %v13621_v29  ;;  %8036 = vmatpush3.bf16.msra.mxu1 %v8035_v63  ;;  %v13625_v15 = vld [vmem:[#allocation53_spill] sm:$0xff]  ;;  %v3624_v29 = vand.u32 4294901760, %v3623_v23  ;;  %v3631_v36 = vand.u32 4294901760, %v3630_v46 }
 0x1c3   :  { %v3637_v41 = vsub.f32 %v10812_v16, %v13623_v43  ;;  %v3644_v3 = vsub.f32 %v10817_v21, %v13624_v50  ;;  %7630 = vmatprep.subr.bf16.mxu0 %v13625_v15  ;;  %v13626_v56 = vand.u32 4294901760, %v10784_v38  ;;  %8038 = vmatprep.subr.bf16.mxu1 %v8037_v25  ;;  %v8041_v43 = vpack.c.bf16 %v3617_v1, %v3610_v8  ;;  %v13682_v15 = vld [vmem:[#allocation22_spill] sm:$0xff] }
 0x1c4   :  { %v13628_v40 = vand.u32 4294901760, %v10793_v49  ;;  %v13630_v39 = vand.u32 4294901760, %v10795_v48  ;;  %v3512_v23 = vand.u32 4294901760, %v3511_v11  ;;  %v3519_v46 = vand.u32 4294901760, %v3518_v57 }
 0x1c5   :  { %v10970_v58 = vsub.f32 %v10784_v38, %v13626_v56  ;;  %v13632_v38 = vld [vmem:[#allocation56_spill] sm:$0xff]  ;;  %v3638_v25 = vand.u32 4294901760, %v3637_v41  ;;  %v3645_v1 = vand.u32 4294901760, %v3644_v3  ;;  %v13633_v8 = vand.u32 4294901760, %v10848_v4 }
 0x1c6   :  { %v10977_v63 = vsub.f32 %v10793_v49, %v13628_v40  ;;  %v10982_v2 = vsub.f32 %v10795_v48, %v13630_v39  ;;  %7632 = vmatpush1.bf16.msra.mxu0 %v13632_v38  ;;  %v13634_v26 = vand.u32 4294901760, %v10859_v9  ;;  %8040 = vmatpush3.bf16.msra.mxu1 %v8039_v47  ;;  %v13635_v40 = vld [vmem:[#allocation57_spill] sm:$0xff]  ;;  %v8043_v50 = vpack.c.bf16 %v3505_v32, %v3498_v12  ;;  %v13645_v38 = vld [vmem:[#allocation70_spill] sm:$0xff] }
 0x1c7   :  { %13627 = vst [vmem:[#allocation195_spill] sm:$0xff] %v10970_v58  ;;  %v3525_v56 = vsub.f32 %v10848_v4, %v13633_v8  ;;  %7634 = vmatprep.subr.bf16.mxu0 %v13635_v40  ;;  %v8045_v48 = vpack.c.bf16 %v3631_v36, %v3624_v29  ;;  %v13062_v11 = vand.u32 4294901760, %v10900_v52  ;;  %v13063_v57 = vand.u32 4294901760, %v10943_v5  ;;  %8042 = vmatprep.subr.bf16.mxu1 %v8041_v43  ;;  %v13638_v40 = vld [vmem:[#allocation60_spill] sm:$0xff]  ;;  %v13639_v43 = vld [vmem:[#allocation61_spill] sm:$0xff] }
 0x1c8   :  { %13629 = vst [vmem:[#allocation196_spill] sm:$0xff] %v10977_v63  ;;  %13631 = vst [vmem:[#allocation197_spill] sm:$0xff] %v10982_v2  ;;  %v3532_v49 = vsub.f32 %v10859_v9, %v13634_v26  ;;  %v13636_v41 = vand.u32 4294901760, %v10863_v19  ;;  %v13637_v39 = vand.u32 4294901760, %v10895_v18  ;;  %v8047_v12 = vpack.c.bf16 %v3519_v46, %v3512_v23 }
 0x1c9   :  { %v8049_v32 = vpack.c.bf16 %v3645_v1, %v3638_v25  ;;  %v3526_v29 = vand.u32 4294901760, %v3525_v56  ;;  %v13064_v47 = vand.u32 4294901760, %v10982_v2  ;;  %v13640_v25 = vand.u32 4294901760, %v10949_v0 }
 0x1ca   :  { %v3651_v3 = vsub.f32 %v10863_v19, %v13636_v41  ;;  %v3658_v8 = vsub.f32 %v10895_v18, %v13637_v39  ;;  %7636 = vmatpush1.bf16.msra.mxu0 %v13638_v40  ;;  %v3533_v36 = vand.u32 4294901760, %v3532_v49  ;;  %8044 = vmatpush3.bf16.msra.mxu1 %v8043_v50  ;;  %v3539_v41 = vsub.f32 %v10900_v52, %v13062_v11  ;;  %v13642_v49 = vld [vmem:[#allocation66_spill] sm:$0xff] }
 0x1cb   :  { %7638 = vmatprep.subr.bf16.mxu0 %v13639_v43  ;;  %v3546_v39 = vsub.f32 %v10943_v5, %v13063_v57  ;;  %8046 = vmatprep.subr.bf16.mxu1 %v8045_v48  ;;  %v3665_v50 = vsub.f32 %v10949_v0, %v13640_v25  ;;  %v13641_v1 = vand.u32 4294901760, %v10970_v58  ;;  %v13643_v57 = vld [vmem:[#allocation67_spill] sm:$0xff]  ;;  %v13644_v48 = vand.u32 4294901760, %v10977_v63 }
 0x1cc   :  { %v3652_v23 = vand.u32 4294901760, %v3651_v3  ;;  %v3659_v46 = vand.u32 4294901760, %v3658_v8  ;;  %v8051_v11 = vpack.c.bf16 %v3533_v36, %v3526_v29  ;;  %v3540_v26 = vand.u32 4294901760, %v3539_v41 }
 0x1cd   :  { %v3672_v56 = vsub.f32 %v10970_v58, %v13641_v1  ;;  %v3547_v43 = vand.u32 4294901760, %v3546_v39  ;;  %v3553_v3 = vsub.f32 %v10977_v63, %v13644_v48  ;;  %v3560_v8 = vsub.f32 %v10982_v2, %v13064_v47  ;;  %v13648_v48 = vld [vmem:[#allocation81_spill] sm:$0xff] }
 0x1ce   :  { %7640 = vmatpush1.bf16.msra.mxu0 %v13642_v49  ;;  %8048 = vmatpush3.bf16.msra.mxu1 %v8047_v12  ;;  %v8053_v25 = vpack.c.bf16 %v3659_v46, %v3652_v23  ;;  %v3666_v40 = vand.u32 4294901760, %v3665_v50  ;;  %v13646_v12 = vld [vmem:[#allocation77_spill] sm:$0xff]  ;;  %v13649_v23 = vld [vmem:[#allocation82_spill] sm:$0xff]  ;;  %v8067_v46 = vpack.c.bf16 %v10720_v24, %v10695_v34  ;;  %v8069_v50 = vpack.c.bf16 %v10730_v30, %v10725_v55 }
 0x1cf   :  { %7642 = vmatprep.subr.bf16.mxu0 %v13643_v57  ;;  %8050 = vmatprep.subr.bf16.mxu1 %v8049_v32  ;;  %v3673_v1 = vand.u32 4294901760, %v3672_v56  ;;  %v8055_v29 = vpack.c.bf16 %v3547_v43, %v3540_v26  ;;  %v3554_v36 = vand.u32 4294901760, %v3553_v3  ;;  %v3561_v41 = vand.u32 4294901760, %v3560_v8  ;;  %v13647_v57 = vld [vmem:[#allocation80_spill] sm:$0xff]  ;;  %v13653_v56 = vld [vmem:[#allocation95_spill] sm:$0xff] }
 0x1d0   :  { %v8061_v32 = vpack.c.bf16 %v10671_v31, %v10666_v37  ;;  %v8063_v26 = vpack.c.bf16 %v10681_v10, %v10676_v14  ;;  %v13651_v43 = vld [vmem:[#allocation92_spill] sm:$0xff]  ;;  %v13654_v3 = vld [vmem:[#allocation99_spill] sm:$0xff]  ;;  %v8071_v8 = vpack.c.bf16 %v10736_v17, %v10733_v6 }
 0x1d1   :  { %v8057_v39 = vpack.c.bf16 %v3673_v1, %v3666_v40  ;;  %v8059_v47 = vpack.c.bf16 %v3561_v41, %v3554_v36  ;;  %v8065_v40 = vpack.c.bf16 %v10691_v62, %v10688_v53  ;;  %v13656_v1 = vld [vmem:[#allocation104_spill] sm:$0xff]  ;;  %v8077_v36 = vpack.c.bf16 %v10776_v20, %v10773_v22  ;;  %v13657_v41 = vld [vmem:[#allocation106_spill] sm:$0xff]  ;;  %v13781_v22 = vld [vmem:[#allocation59_spill] sm:$0xff] }
 0x1d2   :  { %7644 = vmatpush1.bf16.msra.mxu0 %v13645_v38  ;;  %8052 = vmatpush3.bf16.msra.mxu1 %v8051_v11  ;;  %v13650_v11 = vld [vmem:[#allocation91_spill] sm:$0xff]  ;;  %v13678_v38 = vld [vmem:[#allocation116_spill] sm:$0xff] }
 0x1d3   :  { %7646 = vmatprep.subr.bf16.mxu0 %v13646_v12  ;;  %8054 = vmatprep.subr.bf16.mxu1 %v8053_v25  ;;  %v13655_v25 = vld [vmem:[#allocation101_spill] sm:$0xff] }
 0x1d6   :  { %7648 = vmatpush1.bf16.msra.mxu0 %v13647_v57  ;;  %8056 = vmatpush3.bf16.msra.mxu1 %v8055_v29  ;;  %v8075_v29 = vpack.c.bf16 %v10770_v60, %v10767_v44  ;;  %v13673_v57 = vld [vmem:[#allocation19_spill] sm:$0xff]  ;;  %v13783_v60 = vld [vmem:[#allocation138_spill] sm:$0xff] }
 0x1d7   :  { %7650 = vmatprep.subr.bf16.mxu0 %v13648_v48  ;;  %8058 = vmatprep.subr.bf16.mxu1 %v8057_v39  ;;  %v13658_v39 = vld [vmem:[#allocation107_spill] sm:$0xff] }
 0x1da   :  { %7652 = vmatpush1.bf16.msra.mxu0 %v13649_v23  ;;  %8060 = vmatpush3.bf16.msra.mxu1 %v8059_v47  ;;  %v13652_v47 = vld [vmem:[#allocation93_spill] sm:$0xff]  ;;  %v13672_v23 = vld [vmem:[#allocation110_spill] sm:$0xff] }
 0x1db   :  { %7654 = vmatprep.subr.bf16.mxu0 %v13650_v11  ;;  %8062 = vmatprep.subr.bf16.mxu1 %v8061_v32  ;;  %v8079_v32 = vpack.c.bf16 %v10809_v61, %v10778_v42  ;;  %v13765_v42 = vld [vmem:[#allocation135_spill] sm:$0xff] }
 0x1dd   :  { %3678 = vmatmul.mubr.f32.vlgmr.msra.gmra.mrb[8].mxu1 %v10365_v59  ;;  %v13683_v59 = vand.u32 4294901760, %v13682_v15 }
 0x1de   :  { %7656 = vmatpush1.bf16.msra.mxu0 %v13651_v43  ;;  %8064 = vmatpush3.bf16.msra.mxu1 %v8063_v26  ;;  %v8081_v26 = vpack.c.bf16 %v10817_v21, %v10812_v16  ;;  %v13668_v43 = vld [vmem:[#allocation115_spill] sm:$0xff]  ;;  %v13740_v21 = vld [vmem:[#allocation170_spill] sm:$0xff] }
 0x1df   :  { %3813 = vmatprep.mubr.f32.mxu1 %v10378_v27  ;;  %7658 = vmatprep.subr.bf16.mxu0 %v13652_v47  ;;  %v8073_v27 = vpack.c.bf16 %v10764_v35, %v10739_v33  ;;  %v13068_v11 = vand.u32 4294901760, %v13668_v43  ;;  %v13764_v16 = vld [vmem:[#allocation134_spill] sm:$0xff] }
 0x1e0   :  { %8066 = vmatprep.subr.bf16.mxu1 %v8065_v40  ;;  %v13659_v40 = vld [vmem:[#allocation108_spill] sm:$0xff]  ;;  %v13097_v61 = vand.u32 4294901760, %v13764_v16 }
 0x1e2   :  { %7660 = vmatpush1.bf16.msra.mxu0 %v13653_v56  ;;  %8068 = vmatpush3.bf16.msra.mxu1 %v8067_v46  ;;  %v13660_v46 = vld [vmem:[#allocation112_spill] sm:$0xff]  ;;  %v8085_v56 = vpack.c.bf16 %v10895_v18, %v10863_v19 }
 0x1e3   :  { %7662 = vmatprep.subr.bf16.mxu0 %v13654_v3  ;;  %8070 = vmatprep.subr.bf16.mxu1 %v8069_v50  ;;  %v13065_v50 = vand.u32 4294901760, %v13660_v46 }
 0x1e6   :  { %7664 = vmatpush1.bf16.msra.mxu0 %v13655_v25  ;;  %8072 = vmatpush3.bf16.msra.mxu1 %v8071_v8  ;;  %v13661_v8 = vld [vmem:[#allocation113_spill] sm:$0xff] }
 0x1e7   :  { %7666 = vmatprep.subr.bf16.mxu0 %v13656_v1  ;;  %8074 = vmatprep.subr.bf16.mxu1 %v8073_v27  ;;  %v13066_v27 = vand.u32 4294901760, %v13661_v8  ;;  %v13662_v1 = vld [vmem:[#allocation109_spill] sm:$0xff] }
 0x1e8   :  { %v13665_v25 = vld [vmem:[#allocation17_spill] sm:$0xff] }
 0x1e9   :  { %v13666_v3 = vand.u32 4294901760, %v13665_v25  ;;  %v13670_v25 = vld [vmem:[#allocation18_spill] sm:$0xff] }
 0x1ea   :  { %7668 = vmatpush1.bf16.msra.mxu0 %v13657_v41  ;;  %8076 = vmatpush3.bf16.msra.mxu1 %v8075_v29  ;;  %v8083_v29 = vpack.c.bf16 %v10859_v9, %v10848_v4  ;;  %v13738_v9 = vld [vmem:[#allocation128_spill] sm:$0xff] }
 0x1eb   :  { %7670 = vmatprep.subr.bf16.mxu0 %v13658_v39  ;;  %8078 = vmatprep.subr.bf16.mxu1 %v8077_v36  ;;  %v13663_v39 = vld [vmem:[#allocation16_spill] sm:$0xff]  ;;  %v13087_v4 = vand.u32 4294901760, %v13738_v9 }
 0x1ec   :  { %v13664_v41 = vand.u32 4294901760, %v13663_v39  ;;  %v13669_v39 = vand.u32 4294901760, %v9077_v45  ;;  %v8087_v45 = vpack.c.bf16 %v10943_v5, %v10900_v52  ;;  %v13684_v5 = vld [vmem:[#allocation117_spill] sm:$0xff]  ;;  %v13686_v52 = vld [vmem:[#allocation119_spill] sm:$0xff] }
 0x1ee   :  { %7672 = vmatpush1.bf16.msra.mxu0 %v13659_v40  ;;  %8080 = vmatpush3.bf16.msra.mxu1 %v8079_v32  ;;  %v7677_v36 = vpack.c.bf16 %v13666_v3, %v13664_v41  ;;  %v2595_v40 = vsub.f32 %v13660_v46, %v13065_v50  ;;  %v2607_v32 = vsub.f32 %v13661_v8, %v13066_v27  ;;  %v13671_v3 = vand.u32 4294901760, %v13670_v25 }
 0x1ef   :  { %7674 = vmatprep.subr.bf16.mxu0 %v13662_v1  ;;  %8082 = vmatprep.subr.bf16.mxu1 %v8081_v26  ;;  %v13667_v1 = vld [vmem:[#allocation114_spill] sm:$0xff]  ;;  %v2613_v27 = vsub.f32 %v13668_v43, %v13068_v11  ;;  %v13674_v25 = vand.u32 4294901760, %v13673_v57  ;;  %v13074_v11 = vand.u32 4294901760, %v13678_v38 }
 0x1f0   :  { %v13067_v47 = vand.u32 4294901760, %v13667_v1  ;;  %v7679_v41 = vpack.c.bf16 %v13671_v3, %v13669_v39  ;;  %v2596_v26 = vand.u32 4294901760, %v2595_v40  ;;  %v2608_v48 = vand.u32 4294901760, %v2607_v32  ;;  %v13675_v39 = vld [vmem:[#allocation20_spill] sm:$0xff] }
 0x1f1   :  { %v13676_v3 = vand.u32 4294901760, %v13675_v39  ;;  %v8089_v40 = vpack.c.bf16 %v10970_v58, %v10949_v0  ;;  %v2614_v12 = vand.u32 4294901760, %v2613_v27  ;;  %v13075_v39 = vand.u32 4294901760, %v13684_v5 }
 0x1f2   :  { %7676 = vmatpush1.bf16.msra.mxu0 %v13672_v23  ;;  %v2601_v50 = vsub.f32 %v13667_v1, %v13067_v47  ;;  %8084 = vmatpush3.bf16.msra.mxu1 %v8083_v29  ;;  %v11103_v32 = vpack.c.bf16 %v2608_v48, %v2596_v26  ;;  %v13679_v29 = vld [vmem:[#allocation147_spill] sm:$0xff]  ;;  %v13689_v26 = vld [vmem:[#allocation121_spill] sm:$0xff] }
 0x1f3   :  { %7678 = vmatprep.subr.bf16.mxu0 %v7677_v36  ;;  %v7681_v23 = vpack.c.bf16 %v13676_v3, %v13674_v25  ;;  %8086 = vmatprep.subr.bf16.mxu1 %v8085_v56  ;;  %v13680_v36 = vld [vmem:[#allocation21_spill] sm:$0xff]  ;;  %v13685_v25 = vld [vmem:[#allocation118_spill] sm:$0xff]  ;;  %v2619_v56 = vsub.f32 %v13678_v38, %v13074_v11 }
 0x1f4   :  { %13677 = vst [vmem:[#allocation112_spill] sm:$0xff] %v11103_v32  ;;  %v2602_v47 = vand.u32 4294901760, %v2601_v50  ;;  %v13681_v49 = vand.u32 4294901760, %v13680_v36  ;;  %v13688_v50 = vld [vmem:[#allocation120_spill] sm:$0xff]  ;;  %v13694_v11 = vand.u32 4294901760, %v13685_v25 }
 0x1f5   :  { %2076 = vmatmul.mubr.f32.vlgmr.msra.gmra.mrb[2].mxu0 %v13679_v29 }
 0x1f6   :  { %v7683_v57 = vpack.c.bf16 %v13683_v59, %v13681_v49  ;;  %7680 = vmatpush1.bf16.msra.mxu0 %v7679_v41  ;;  %2339 = vmatprep.mubr.f32.mxu0 %v10367_v51  ;;  %v11115_v48 = vpack.c.bf16 %v2614_v12, %v2602_v47  ;;  %v8091_v59 = vpack.c.bf16 %v10982_v2, %v10977_v63  ;;  %v13690_v49 = vld [vmem:[#allocation23_spill] sm:$0xff]  ;;  %v13692_v41 = vld [vmem:[#allocation24_spill] sm:$0xff]  ;;  %v2620_v47 = vand.u32 4294901760, %v2619_v56 }
 0x1f7   :  { %8088 = vmatpush3.bf16.msra.mxu1 %v8087_v45  ;;  %7682 = vmatprep.subr.bf16.mxu0 %v7681_v23  ;;  %v13691_v36 = vand.u32 4294901760, %v13690_v49  ;;  %v13693_v58 = vand.u32 4294901760, %v13692_v41  ;;  %v2631_v12 = vsub.f32 %v13684_v5, %v13075_v39  ;;  %v2625_v15 = vsub.f32 %v13685_v25, %v13694_v11  ;;  %v13698_v39 = vld [vmem:[#allocation122_spill] sm:$0xff]  ;;  %v13703_v63 = vld [vmem:[#allocation28_spill] sm:$0xff] }
 0x1f8   :  { %13687 = vst [vmem:[#allocation113_spill] sm:$0xff] %v11115_v48  ;;  %8090 = vmatprep.subr.bf16.mxu1 %v8089_v40  ;;  %v13695_v23 = vand.u32 4294901760, %v13686_v52  ;;  %v13696_v49 = vand.u32 4294901760, %v13688_v50  ;;  %v13699_v56 = vand.u32 4294901760, %v13444_v7  ;;  %v13700_v11 = vand.u32 4294901760, %v13445_v54 }
 0x1f9   :  { %v7685_v3 = vpack.c.bf16 %v13693_v58, %v13691_v36  ;;  %v2632_v27 = vand.u32 4294901760, %v2631_v12  ;;  %v13697_v58 = vand.u32 4294901760, %v13689_v26  ;;  %v2626_v32 = vand.u32 4294901760, %v2625_v15 }
 0x1fa   :  { %v2637_v45 = vsub.f32 %v13686_v52, %v13695_v23  ;;  %v2643_v41 = vsub.f32 %v13688_v50, %v13696_v49  ;;  %7684 = vmatpush1.bf16.msra.mxu0 %v7683_v57  ;;  %v7687_v48 = vpack.c.bf16 %v13700_v11, %v13699_v56  ;;  %v13701_v23 = vld [vmem:[#allocation123_spill] sm:$0xff]  ;;  %v13702_v49 = vand.u32 4294901760, %v13449_v28  ;;  %v13706_v57 = vld [vmem:[#allocation165_spill] sm:$0xff] }
 0x1fb   :  { %v2655_v36 = vsub.f32 %v13689_v26, %v13697_v58  ;;  %v13080_v12 = vand.u32 4294901760, %v13701_v23  ;;  %8092 = vmatpush3.bf16.msra.mxu1 %v8091_v59  ;;  %7686 = vmatprep.subr.bf16.mxu0 %v7685_v3  ;;  %v13704_v0 = vand.u32 4294901760, %v13703_v63  ;;  %v11153_v58 = vpack.c.bf16 %v2632_v27, %v2620_v47  ;;  %v13709_v28 = vld [vmem:[#allocation29_spill] sm:$0xff]  ;;  %v13711_v63 = vld [vmem:[#allocation30_spill] sm:$0xff]  ;;  %v13713_v47 = vld [vmem:[#allocation124_spill] sm:$0xff] }
 0x1fc   :  { %v2638_v2 = vand.u32 4294901760, %v2637_v45  ;;  %v2644_v40 = vand.u32 4294901760, %v2643_v41  ;;  %8094 = vmatprep.subr.bf16.mxu1 %v13706_v57  ;;  %v13708_v15 = vand.u32 4294901760, %v13698_v39  ;;  %v13710_v59 = vand.u32 4294901760, %v13709_v28  ;;  %v13714_v56 = vld [vmem:[#allocation125_spill] sm:$0xff] }
 0x1fd   :  { %v7689_v18 = vpack.c.bf16 %v13704_v0, %v13702_v49  ;;  %13705 = vst [vmem:[#allocation16_spill] sm:$0xff] %v11153_v58  ;;  %v2656_v54 = vand.u32 4294901760, %v2655_v36  ;;  %v2661_v3 = vsub.f32 %v13701_v23, %v13080_v12  ;;  %v13712_v0 = vand.u32 4294901760, %v13711_v63  ;;  %v13718_v58 = vld [vmem:[#allocation167_spill] sm:$0xff]  ;;  %v13719_v12 = vld [vmem:[#allocation148_spill] sm:$0xff]  ;;  %v13720_v28 = vld [vmem:[#allocation33_spill] sm:$0xff] }
 0x1fe   :  { %v11156_v7 = vpack.c.bf16 %v2638_v2, %v2626_v32  ;;  %v2649_v45 = vsub.f32 %v13698_v39, %v13708_v15  ;;  %v13715_v2 = vld [vmem:[#allocation146_spill] sm:$0xff]  ;;  %7688 = vmatpush1.bf16.msra.mxu0 %v7687_v48  ;;  %v13721_v63 = vand.u32 4294901760, %v13720_v28  ;;  %v13724_v11 = vand.u32 4294901760, %v13713_v47  ;;  %v13725_v48 = vld [vmem:[#allocation127_spill] sm:$0xff]  ;;  %v13736_v57 = vld [vmem:[#allocation41_spill] sm:$0xff] }
 0x1ff   :  { %v7691_v27 = vpack.c.bf16 %v13712_v0, %v13710_v59  ;;  %3816 = vmatmul.mubr.f32.vlgmr.msra.gmra.mrb[10].mxu1 %v13715_v2  ;;  %v11171_v32 = vpack.c.bf16 %v2656_v54, %v2644_v40  ;;  %v2662_v49 = vand.u32 4294901760, %v2661_v3  ;;  %v13717_v15 = vld [vmem:[#allocation126_spill] sm:$0xff]  ;;  %v13722_v59 = vld [vmem:[#allocation35_spill] sm:$0xff]  ;;  %v13085_v40 = vand.u32 4294901760, %v13725_v48  ;;  %7690 = vmatprep.subr.bf16.mxu0 %v7689_v18  ;;  %v13726_v54 = vld [vmem:[#allocation168_spill] sm:$0xff] }
 0x200   :  { %13707 = vst [vmem:[#allocation17_spill] sm:$0xff] %v11156_v7  ;;  %v2650_v36 = vand.u32 4294901760, %v2649_v45  ;;  %v13081_v7 = vand.u32 4294901760, %v13717_v15  ;;  %8096 = vmatpush3.bf16.msra.mxu1 %v13718_v58  ;;  %3920 = vmatprep.mubr.f32.mxu1 %v13719_v12  ;;  %v13723_v0 = vand.u32 4294901760, %v13722_v59  ;;  %v2667_v2 = vsub.f32 %v13713_v47, %v13724_v11  ;;  %v13729_v59 = vld [vmem:[#allocation38_spill] sm:$0xff] }
 0x201   :  { %13716 = vst [vmem:[#allocation114_spill] sm:$0xff] %v11171_v32  ;;  %8098 = vmatprep.subr.bf16.mxu1 %v13726_v54  ;;  %v13728_v3 = vand.u32 4294901760, %v13714_v56  ;;  %v2685_v11 = vsub.f32 %v13725_v48, %v13085_v40  ;;  %v13730_v18 = vand.u32 4294901760, %v13729_v59  ;;  %v13733_v54 = vld [vmem:[#allocation169_spill] sm:$0xff] }
 0x202   :  { %v7693_v41 = vpack.c.bf16 %v13723_v0, %v13721_v63  ;;  %v11185_v45 = vpack.c.bf16 %v2662_v49, %v2650_v36  ;;  %v2673_v28 = vsub.f32 %v13717_v15, %v13081_v7  ;;  %v2668_v63 = vand.u32 4294901760, %v2667_v2  ;;  %7692 = vmatpush1.bf16.msra.mxu0 %v7691_v27  ;;  %v13731_v0 = vld [vmem:[#allocation39_spill] sm:$0xff]  ;;  %v13739_v40 = vld [vmem:[#allocation129_spill] sm:$0xff] }
 0x203   :  { %v2679_v12 = vsub.f32 %v13714_v56, %v13728_v3  ;;  %v13732_v32 = vand.u32 4294901760, %v13731_v0  ;;  %v13734_v3 = vld [vmem:[#allocation40_spill] sm:$0xff]  ;;  %v13737_v7 = vand.u32 4294901760, %v13736_v57  ;;  %v2686_v19 = vand.u32 4294901760, %v2685_v11  ;;  %v13744_v57 = vld [vmem:[#allocation131_spill] sm:$0xff]  ;;  %v13747_v0 = vld [vmem:[#allocation45_spill] sm:$0xff] }
 0x204   :  { %13727 = vst [vmem:[#allocation115_spill] sm:$0xff] %v11185_v45  ;;  %v2674_v45 = vand.u32 4294901760, %v2673_v28  ;;  %8100 = vmatpush3.bf16.msra.mxu1 %v13733_v54  ;;  %7694 = vmatprep.subr.bf16.mxu0 %v7693_v41  ;;  %v13735_v58 = vand.u32 4294901760, %v13734_v3  ;;  %v13088_v27 = vand.u32 4294901760, %v13739_v40  ;;  %v2691_v41 = vsub.f32 %v13738_v9, %v13087_v4  ;;  %v13745_v11 = vld [vmem:[#allocation44_spill] sm:$0xff]  ;;  %v13749_v3 = vld [vmem:[#allocation46_spill] sm:$0xff] }
 0x205   :  { %v7695_v36 = vpack.c.bf16 %v13732_v32, %v13730_v18  ;;  %v2680_v49 = vand.u32 4294901760, %v2679_v12  ;;  %8102 = vmatprep.subr.bf16.mxu1 %v13740_v21  ;;  %v13742_v32 = vld [vmem:[#allocation130_spill] sm:$0xff]  ;;  %v13746_v18 = vand.u32 4294901760, %v13745_v11  ;;  %v13750_v12 = vand.u32 4294901760, %v13749_v3  ;;  %v13754_v21 = vld [vmem:[#allocation171_spill] sm:$0xff] }
 0x206   :  { %v7697_v2 = vpack.c.bf16 %v13737_v7, %v13735_v58  ;;  %v11211_v28 = vpack.c.bf16 %v2686_v19, %v2674_v45  ;;  %v2703_v58 = vsub.f32 %v13739_v40, %v13088_v27  ;;  %v13751_v19 = vld [vmem:[#allocation47_spill] sm:$0xff]  ;;  %v2692_v27 = vand.u32 4294901760, %v2691_v41  ;;  %v13760_v41 = vld [vmem:[#allocation49_spill] sm:$0xff] }
 0x207   :  { %v11208_v59 = vpack.c.bf16 %v2680_v49, %v2668_v63  ;;  %7696 = vmatpush1.bf16.msra.mxu0 %v7695_v36  ;;  %v13748_v63 = vand.u32 4294901760, %v13747_v0  ;;  %v13752_v45 = vand.u32 4294901760, %v13751_v19  ;;  %v13755_v36 = vand.u32 4294901760, %v13744_v57  ;;  %v13756_v0 = vld [vmem:[#allocation132_spill] sm:$0xff] }
 0x208   :  { %13743 = vst [vmem:[#allocation19_spill] sm:$0xff] %v11211_v28  ;;  %8104 = vmatpush3.bf16.msra.mxu1 %v13754_v21  ;;  %7698 = vmatprep.subr.bf16.mxu0 %v7697_v2  ;;  %v2704_v7 = vand.u32 4294901760, %v2703_v58  ;;  %v13761_v58 = vand.u32 4294901760, %v13760_v41  ;;  %v13762_v21 = vld [vmem:[#allocation50_spill] sm:$0xff]  ;;  %v2721_v41 = vsub.f32 %v13764_v16, %v13097_v61 }
 0x209   :  { %13741 = vst [vmem:[#allocation18_spill] sm:$0xff] %v11208_v59  ;;  %v7699_v49 = vpack.c.bf16 %v13748_v63, %v13746_v18  ;;  %v7701_v28 = vpack.c.bf16 %v13752_v45, %v13750_v12  ;;  %v13753_v59 = vand.u32 4294901760, %v13742_v32  ;;  %v2709_v11 = vsub.f32 %v13744_v57, %v13755_v36  ;;  %v13757_v63 = vld [vmem:[#allocation172_spill] sm:$0xff]  ;;  %v13759_v45 = vld [vmem:[#allocation133_spill] sm:$0xff] }
 0x20a   :  { %v13092_v18 = vand.u32 4294901760, %v13756_v0  ;;  %8106 = vmatprep.subr.bf16.mxu1 %v13757_v63  ;;  %v11237_v19 = vpack.c.bf16 %v2704_v7, %v2692_v27  ;;  %v13094_v2 = vand.u32 4294901760, %v13759_v45  ;;  %v13763_v54 = vand.u32 4294901760, %v13762_v21  ;;  %v13767_v27 = vld [vmem:[#allocation51_spill] sm:$0xff] }
 0x20b   :  { %v2697_v4 = vsub.f32 %v13742_v32, %v13753_v59  ;;  %v2710_v12 = vand.u32 4294901760, %v2709_v11  ;;  %7700 = vmatpush1.bf16.msra.mxu0 %v7699_v49  ;;  %v13101_v63 = vand.u32 4294901760, %v13765_v42  ;;  %v13768_v7 = vand.u32 4294901760, %v13767_v27  ;;  %v13769_v11 = vld [vmem:[#allocation52_spill] sm:$0xff] }
 0x20c   :  { %13758 = vst [vmem:[#allocation20_spill] sm:$0xff] %v11237_v19  ;;  %v2715_v59 = vsub.f32 %v13756_v0, %v13092_v18  ;;  %v7703_v36 = vpack.c.bf16 %v13763_v54, %v13761_v58  ;;  %7702 = vmatprep.subr.bf16.mxu0 %v7701_v28  ;;  %v13770_v19 = vand.u32 4294901760, %v13769_v11  ;;  %v2727_v21 = vsub.f32 %v13759_v45, %v13094_v2  ;;  %v13772_v54 = vld [vmem:[#allocation174_spill] sm:$0xff] }
 0x20d   :  { %v2698_v3 = vand.u32 4294901760, %v2697_v4  ;;  %v13766_v4 = vld [vmem:[#allocation173_spill] sm:$0xff]  ;;  %v2733_v28 = vsub.f32 %v13765_v42, %v13101_v63  ;;  %v13773_v58 = vld [vmem:[#allocation54_spill] sm:$0xff]  ;;  %v13782_v45 = vand.u32 4294901760, %v13781_v22  ;;  %v2722_v16 = vand.u32 4294901760, %v2721_v41  ;;  %v13784_v42 = vld [vmem:[#allocation175_spill] sm:$0xff] }
 0x20e   :  { %8108 = vmatpush3.bf16.msra.mxu1 %v13766_v4  ;;  %v7705_v18 = vpack.c.bf16 %v13770_v19, %v13768_v7  ;;  %v2716_v49 = vand.u32 4294901760, %v2715_v59  ;;  %v13774_v27 = vand.u32 4294901760, %v13773_v58  ;;  %v13775_v19 = vld [vmem:[#allocation55_spill] sm:$0xff]  ;;  %v2728_v59 = vand.u32 4294901760, %v2727_v21  ;;  %v13777_v7 = vld [vmem:[#allocation136_spill] sm:$0xff] }
 0x20f   :  { %v11254_v20 = vpack.c.bf16 %v2710_v12, %v2698_v3  ;;  %8110 = vmatprep.subr.bf16.mxu1 %v13772_v54  ;;  %v13776_v3 = vand.u32 4294901760, %v13775_v19  ;;  %v13103_v11 = vand.u32 4294901760, %v13777_v7  ;;  %7704 = vmatpush1.bf16.msra.mxu0 %v7703_v36  ;;  %v13779_v54 = vld [vmem:[#allocation58_spill] sm:$0xff]  ;;  %v2734_v0 = vand.u32 4294901760, %v2733_v28  ;;  %v13791_v19 = vld [vmem:[#allocation63_spill] sm:$0xff] }
 0x210   :  { %v13780_v4 = vand.u32 4294901760, %v13779_v54  ;;  %v13105_v63 = vand.u32 4294901760, %v13783_v60  ;;  %7706 = vmatprep.subr.bf16.mxu0 %v7705_v18  ;;  %v11278_v58 = vpack.c.bf16 %v2728_v59, %v2716_v49  ;;  %v13786_v54 = vld [vmem:[#allocation176_spill] sm:$0xff]  ;;  %v13789_v28 = vld [vmem:[#allocation62_spill] sm:$0xff] }
 0x211   :  { %13771 = vst [vmem:[#allocation116_spill] sm:$0xff] %v11254_v20  ;;  %v7707_v12 = vpack.c.bf16 %v13776_v3, %v13774_v27  ;;  %v13778_v20 = vld [vmem:[#allocation137_spill] sm:$0xff]  ;;  %v2739_v21 = vsub.f32 %v13777_v7, %v13103_v11  ;;  %v11287_v22 = vpack.c.bf16 %v2734_v0, %v2722_v16  ;;  %v13790_v27 = vand.u32 4294901760, %v13789_v28  ;;  %v13793_v0 = vld [vmem:[#allocation140_spill] sm:$0xff] }
 0x212   :  { %v13104_v2 = vand.u32 4294901760, %v13778_v20  ;;  %v7709_v61 = vpack.c.bf16 %v13782_v45, %v13780_v4  ;;  %8112 = vmatpush3.bf16.msra.mxu1 %v13784_v42  ;;  %13785 = vst [vmem:[#allocation147_spill] sm:$0xff] %v11278_v58  ;;  %v2745_v45 = vsub.f32 %v13783_v60, %v13105_v63  ;;  %v13788_v4 = vld [vmem:[#allocation139_spill] sm:$0xff]  ;;  %v13792_v3 = vand.u32 4294901760, %v13791_v19  ;;  %v13795_v63 = vld [vmem:[#allocation64_spill] sm:$0xff]  ;;  %v13800_v28 = vld [vmem:[#allocation141_spill] sm:$0xff] }
 0x213   :  { %8114 = vmatprep.subr.bf16.mxu1 %v13786_v54  ;;  %13787 = vst [vmem:[#allocation21_spill] sm:$0xff] %v11287_v22  ;;  %v13106_v18 = vand.u32 4294901760, %v13788_v4  ;;  %v2740_v49 = vand.u32 4294901760, %v2739_v21  ;;  %7708 = vmatpush1.bf16.msra.mxu0 %v7707_v12  ;;  %v13794_v22 = vld [vmem:[#allocation181_spill] sm:$0xff]  ;;  %v13796_v58 = vand.u32 4294901760, %v13795_v63  ;;  %v13109_v19 = vand.u32 4294901760, %v13800_v28 }
 0x214   :  { %v2751_v36 = vsub.f32 %v13778_v20, %v13104_v2  ;;  %v7711_v59 = vpack.c.bf16 %v13792_v3, %v13790_v27  ;;  %v2746_v11 = vand.u32 4294901760, %v2745_v45  ;;  %v13107_v2 = vand.u32 4294901760, %v13793_v0  ;;  %7710 = vmatprep.subr.bf16.mxu0 %v7709_v61  ;;  %v13797_v21 = vld [vmem:[#allocation65_spill] sm:$0xff]  ;;  %v13801_v27 = vld [vmem:[#allocation182_spill] sm:$0xff]  ;;  %v13803_v63 = vld [vmem:[#allocation143_spill] sm:$0xff] }
 0x215   :  { %v2757_v16 = vsub.f32 %v13788_v4, %v13106_v18  ;;  %v13802_v18 = vld [vmem:[#allocation142_spill] sm:$0xff]  ;;  %v2775_v61 = vsub.f32 %v13800_v28, %v13109_v19  ;;  %v13812_v28 = vld [vmem:[#allocation72_spill] sm:$0xff] }
 0x216   :  { %v2752_v41 = vand.u32 4294901760, %v2751_v36  ;;  %8116 = vmatpush3.bf16.msra.mxu1 %v13794_v22  ;;  %v13798_v36 = vand.u32 4294901760, %v13797_v21  ;;  %v2763_v3 = vsub.f32 %v13793_v0, %v13107_v2  ;;  %v13112_v42 = vand.u32 4294901760, %v13802_v18  ;;  %v13809_v22 = vld [vmem:[#allocation186_spill] sm:$0xff]  ;;  %v13810_v0 = vld [vmem:[#allocation71_spill] sm:$0xff] }
 0x217   :  { %8118 = vmatprep.subr.bf16.mxu1 %v13801_v27  ;;  %v2758_v45 = vand.u32 4294901760, %v2757_v16  ;;  %7712 = vmatpush1.bf16.msra.mxu0 %v7711_v59  ;;  %v13811_v19 = vand.u32 4294901760, %v13810_v0  ;;  %v13813_v21 = vand.u32 4294901760, %v13812_v28  ;;  %v2776_v4 = vand.u32 4294901760, %v2775_v61  ;;  %v13818_v61 = vld [vmem:[#allocation73_spill] sm:$0xff] }
 0x218   :  { %v7713_v12 = vpack.c.bf16 %v13798_v36, %v13796_v58  ;;  %v11306_v54 = vpack.c.bf16 %v2752_v41, %v2740_v49  ;;  %v13804_v58 = vld [vmem:[#allocation68_spill] sm:$0xff]  ;;  %v13806_v41 = vld [vmem:[#allocation69_spill] sm:$0xff]  ;;  %v2764_v16 = vand.u32 4294901760, %v2763_v3  ;;  %v2769_v2 = vsub.f32 %v13802_v18, %v13112_v42 }
 0x219   :  { %v13805_v49 = vand.u32 4294901760, %v13804_v58  ;;  %v13807_v36 = vand.u32 4294901760, %v13806_v41  ;;  %v11322_v27 = vpack.c.bf16 %v2758_v45, %v2746_v11  ;;  %v7717_v59 = vpack.c.bf16 %v13813_v21, %v13811_v19  ;;  %v13815_v11 = vld [vmem:[#allocation188_spill] sm:$0xff]  ;;  %v13961_v0 = vld [vmem:[#allocation101_spill] sm:$0xff] }
 0x21a   :  { %13799 = vst [vmem:[#allocation22_spill] sm:$0xff] %v11306_v54  ;;  %8120 = vmatpush3.bf16.msra.mxu1 %v13809_v22  ;;  %7714 = vmatprep.subr.bf16.mxu0 %v7713_v12  ;;  %v13814_v58 = vand.u32 4294901760, %v13803_v63  ;;  %v13816_v45 = vand.u32 4294901760, %v10666_v37  ;;  %v13817_v3 = vand.u32 4294901760, %v10671_v31  ;;  %v11344_v28 = vpack.c.bf16 %v2776_v4, %v2764_v16  ;;  %v11551_v37 = vld [vmem:[#allocation7 + $0x3e8] sm:$0xff] }
 0x21b   :  { %v7715_v54 = vpack.c.bf16 %v13807_v36, %v13805_v49  ;;  %13808 = vst [vmem:[#allocation117_spill] sm:$0xff] %v11322_v27  ;;  %8122 = vmatprep.subr.bf16.mxu1 %v13815_v11  ;;  %v2770_v36 = vand.u32 4294901760, %v2769_v2  ;;  %v13819_v21 = vand.u32 4294901760, %v13818_v61  ;;  %v13822_v2 = vand.u32 4294901760, %v10676_v14 }
 0x21c   :  { %v2781_v49 = vsub.f32 %v13803_v63, %v13814_v58  ;;  %v8125_v41 = vpack.c.bf16 %v13817_v3, %v13816_v45  ;;  %v13820_v58 = vld [vmem:[#allocation74_spill] sm:$0xff]  ;;  %v13823_v4 = vand.u32 4294901760, %v10681_v10 }
 0x21d   :  { %7716 = vmatpush1.bf16.msra.mxu0 %v7715_v54  ;;  %v13821_v42 = vand.u32 4294901760, %v13820_v58  ;;  %v13829_v58 = vand.u32 4294901760, %v10691_v62  ;;  %v13830_v10 = vld [vmem:[#allocation78_spill] sm:$0xff]  ;;  %v13835_v62 = vand.u32 4294901760, %v10720_v24  ;;  %v13842_v24 = vld [vmem:[#allocation85_spill] sm:$0xff] }
 0x21e   :  { %v2782_v19 = vand.u32 4294901760, %v2781_v49  ;;  %8124 = vmatpush3.bf16.msra.mxu1 %v10881_v13  ;;  %7718 = vmatprep.subr.bf16.mxu0 %v7717_v59  ;;  %v8127_v16 = vpack.c.bf16 %v13823_v4, %v13822_v2  ;;  %v13824_v49 = vld [vmem:[#allocation75_spill] sm:$0xff]  ;;  %v11549_v59 = vld [vmem:[#allocation7 + $0x3d0] sm:$0xff] }
 0x21f   :  { %v7719_v27 = vpack.c.bf16 %v13821_v42, %v13819_v21  ;;  %8126 = vmatprep.subr.bf16.mxu1 %v8125_v41  ;;  %v13825_v45 = vand.u32 4294901760, %v13824_v49  ;;  %v13826_v42 = vld [vmem:[#allocation76_spill] sm:$0xff]  ;;  %v13828_v21 = vand.u32 4294901760, %v10688_v53  ;;  %v13831_v41 = vand.u32 4294901760, %v13830_v10  ;;  %v13836_v49 = vld [vmem:[#allocation83_spill] sm:$0xff] }
 0x220   :  { %v11359_v54 = vpack.c.bf16 %v2782_v19, %v2770_v36  ;;  %v13827_v3 = vand.u32 4294901760, %v13826_v42  ;;  %v13832_v36 = vld [vmem:[#allocation79_spill] sm:$0xff]  ;;  %v13834_v53 = vand.u32 4294901760, %v10695_v34  ;;  %v13838_v42 = vld [vmem:[#allocation84_spill] sm:$0xff]  ;;  %v13843_v10 = vand.u32 4294901760, %v13842_v24 }
 0x221   :  { %v8129_v31 = vpack.c.bf16 %v13829_v58, %v13828_v21  ;;  %3924 = vmatmul.mubr.f32.vlgmr.msra.gmra.mrb[12].mxu1 %v13679_v29  ;;  %7720 = vmatpush1.bf16.msra.mxu0 %v7719_v27  ;;  %v13833_v19 = vand.u32 4294901760, %v13832_v36  ;;  %v13840_v27 = vand.u32 4294901760, %v10725_v55  ;;  %v13848_v55 = vld [vmem:[#allocation87_spill] sm:$0xff] }
 0x222   :  { %v7721_v61 = vpack.c.bf16 %v13827_v3, %v13825_v45  ;;  %8128 = vmatpush3.bf16.msra.mxu1 %v8127_v16  ;;  %4090 = vmatprep.mubr.f32.mxu1 %v10367_v51  ;;  %v8131_v4 = vpack.c.bf16 %v13835_v62, %v13834_v53  ;;  %v13837_v45 = vand.u32 4294901760, %v13836_v49  ;;  %v13839_v3 = vand.u32 4294901760, %v13838_v42  ;;  %v13958_v34 = vld [vmem:[#allocation95_spill] sm:$0xff] }
 0x223   :  { %v7723_v2 = vpack.c.bf16 %v13833_v19, %v13831_v41  ;;  %8130 = vmatprep.subr.bf16.mxu1 %v8129_v31  ;;  %v13841_v16 = vand.u32 4294901760, %v10730_v30  ;;  %v13844_v41 = vld [vmem:[#allocation86_spill] sm:$0xff]  ;;  %v13846_v53 = vand.u32 4294901760, %v10733_v6  ;;  %v13847_v31 = vand.u32 4294901760, %v10736_v17  ;;  %v13850_v30 = vld [vmem:[#allocation88_spill] sm:$0xff]  ;;  %v13854_v17 = vld [vmem:[#allocation89_spill] sm:$0xff] }
 0x224   :  { %v7725_v21 = vpack.c.bf16 %v13839_v3, %v13837_v45  ;;  %7722 = vmatprep.subr.bf16.mxu0 %v7721_v61  ;;  %v13845_v36 = vand.u32 4294901760, %v13844_v41  ;;  %v13849_v62 = vand.u32 4294901760, %v13848_v55  ;;  %v13851_v49 = vand.u32 4294901760, %v13850_v30  ;;  %v13859_v41 = vld [vmem:[#allocation177_spill] sm:$0xff] }
 0x225   :  { %v8133_v58 = vpack.c.bf16 %v13841_v16, %v13840_v27  ;;  %7724 = vmatpush1.bf16.msra.mxu0 %v7723_v2  ;;  %v8135_v61 = vpack.c.bf16 %v13847_v31, %v13846_v53  ;;  %v13852_v42 = vand.u32 4294901760, %v10739_v33  ;;  %v13853_v3 = vand.u32 4294901760, %v10764_v35  ;;  %v13856_v27 = vld [vmem:[#allocation90_spill] sm:$0xff]  ;;  %v13863_v35 = vld [vmem:[#allocation96_spill] sm:$0xff]  ;;  %v13866_v30 = vld [vmem:[#allocation133_spill] sm:$0xff] }
 0x226   :  { %v7727_v19 = vpack.c.bf16 %v13845_v36, %v13843_v10  ;;  %8132 = vmatpush3.bf16.msra.mxu1 %v8131_v4  ;;  %7726 = vmatprep.subr.bf16.mxu0 %v7725_v21  ;;  %v7729_v45 = vpack.c.bf16 %v13851_v49, %v13849_v62  ;;  %v13855_v21 = vand.u32 4294901760, %v13854_v17  ;;  %v13857_v16 = vand.u32 4294901760, %v13856_v27  ;;  %v13861_v33 = vld [vmem:[#allocation94_spill] sm:$0xff]  ;;  %v13865_v62 = vld [vmem:[#allocation132_spill] sm:$0xff]  ;;  %v13873_v27 = vld [vmem:[#allocation97_spill] sm:$0xff] }
 0x227   :  { %8134 = vmatprep.subr.bf16.mxu1 %v8133_v58  ;;  %v8137_v4 = vpack.c.bf16 %v13853_v3, %v13852_v42  ;;  %v13858_v10 = vand.u32 4294901760, %v10767_v44  ;;  %v13860_v58 = vand.u32 4294901760, %v13859_v41  ;;  %v13862_v53 = vand.u32 4294901760, %v13861_v33  ;;  %v13867_v49 = vld [vmem:[#allocation178_spill] sm:$0xff]  ;;  %v13869_v3 = vld [vmem:[#allocation179_spill] sm:$0xff]  ;;  %v13877_v33 = vld [vmem:[#allocation180_spill] sm:$0xff] }
 0x228   :  { %v7731_v24 = vpack.c.bf16 %v13857_v16, %v13855_v21  ;;  %v13864_v31 = vand.u32 4294901760, %v13863_v35  ;;  %v13868_v42 = vand.u32 4294901760, %v13867_v49  ;;  %v13870_v17 = vand.u32 4294901760, %v13869_v3  ;;  %v13872_v21 = vld [vmem:[#allocation135_spill] sm:$0xff]  ;;  %v13881_v49 = vld [vmem:[#allocation100_spill] sm:$0xff]  ;;  %v13883_v3 = vld [vmem:[#allocation102_spill] sm:$0xff] }
 0x229   :  { %7728 = vmatpush1.bf16.msra.mxu0 %v7727_v19  ;;  %v8139_v36 = vpack.c.bf16 %v13860_v58, %v13858_v10  ;;  %v13874_v16 = vand.u32 4294901760, %v13873_v27  ;;  %v13875_v10 = vld [vmem:[#allocation98_spill] sm:$0xff]  ;;  %v13879_v35 = vld [vmem:[#allocation183_spill] sm:$0xff]  ;;  %v13882_v19 = vand.u32 4294901760, %v13881_v49  ;;  %v13885_v27 = vld [vmem:[#allocation184_spill] sm:$0xff]  ;;  %v13957_v2 = vmov 0.0  }
 0x22a   :  { %8136 = vmatpush3.bf16.msra.mxu1 %v8135_v61  ;;  %7730 = vmatprep.subr.bf16.mxu0 %v7729_v45  ;;  %v7733_v55 = vpack.c.bf16 %v13864_v31, %v13862_v53  ;;  %v8141_v61 = vpack.c.bf16 %v13870_v17, %v13868_v42  ;;  %v13876_v41 = vand.u32 4294901760, %v13875_v10  ;;  %v13878_v53 = vand.u32 4294901760, %v13877_v33  ;;  %v13887_v10 = vld [vmem:[#allocation185_spill] sm:$0xff]  ;;  %v13890_v33 = vld [vmem:[#allocation103_spill] sm:$0xff] }
 0x22b   :  { %8138 = vmatprep.subr.bf16.mxu1 %v8137_v4  ;;  %v13880_v4 = vand.u32 4294901760, %v13879_v35  ;;  %v13884_v42 = vand.u32 4294901760, %v13883_v3  ;;  %v13886_v44 = vand.u32 4294901760, %v13885_v27  ;;  %v13892_v35 = vld [vmem:[#allocation105_spill] sm:$0xff]  ;;  %v13898_v27 = vld [vmem:[#allocation190_spill] sm:$0xff] }
 0x22c   :  { %v7735_v58 = vpack.c.bf16 %v13876_v41, %v13874_v16  ;;  %v13888_v16 = vand.u32 4294901760, %v13887_v10  ;;  %v13899_v10 = vand.u32 4294901760, %v13898_v27  ;;  %v13967_v41 = vmov 0.0|0.0  }
 0x22d   :  { %7732 = vmatpush1.bf16.msra.mxu0 %v7731_v24  ;;  %v8143_v31 = vpack.c.bf16 %v13880_v4, %v13878_v53  ;;  %v7737_v17 = vpack.c.bf16 %v13884_v42, %v13882_v19  ;;  %v13891_v53 = vand.u32 4294901760, %v13890_v33  ;;  %v13893_v4 = vand.u32 4294901760, %v13892_v35  ;;  %v13894_v19 = vld [vmem:[#allocation187_spill] sm:$0xff]  ;;  %v13896_v42 = vld [vmem:[#allocation189_spill] sm:$0xff] }
 0x22e   :  { %8140 = vmatpush3.bf16.msra.mxu1 %v8139_v36  ;;  %7734 = vmatprep.subr.bf16.mxu0 %v7733_v55  ;;  %v8145_v36 = vpack.c.bf16 %v13888_v16, %v13886_v44  ;;  %v13895_v3 = vand.u32 4294901760, %v13894_v19  ;;  %v13900_v44 = vld [vmem:[#allocation191_spill] sm:$0xff]  ;;  %v13907_v35 = vld [vmem:[#allocation193_spill] sm:$0xff]  ;;  %v13909_v19 = vld [vmem:[#allocation194_spill] sm:$0xff] }
 0x22f   :  { %8142 = vmatprep.subr.bf16.mxu1 %v8141_v61  ;;  %v7739_v49 = vpack.c.bf16 %v13893_v4, %v13891_v53  ;;  %v13897_v61 = vand.u32 4294901760, %v13896_v42  ;;  %v13901_v16 = vand.u32 4294901760, %v13900_v44  ;;  %v13908_v4 = vand.u32 4294901760, %v13907_v35  ;;  %v13911_v42 = vld [vmem:[#allocation195_spill] sm:$0xff]  ;;  %v13914_v44 = vld [vmem:[#allocation32_spill] sm:$0xff]  ;;  %v13921_v35 = vld [vmem:[#allocation37_spill] sm:$0xff] }
 0x230   :  { %v11538_v33 = vld [vmem:[#allocation7 + $0x3b8] sm:$0xff] }
 0x231   :  { %7736 = vmatpush1.bf16.msra.mxu0 %v7735_v58  ;;  %v8147_v24 = vpack.c.bf16 %v13897_v61, %v13895_v3  ;;  %v8149_v6 = vpack.c.bf16 %v13901_v16, %v13899_v10  ;;  %v13910_v3 = vand.u32 4294901760, %v13909_v19  ;;  %v13912_v61 = vand.u32 4294901760, %v13911_v42  ;;  %v13913_v10 = vld [vmem:[#allocation145_spill] sm:$0xff]  ;;  %v13923_v19 = vld [vmem:[#allocation42_spill] sm:$0xff]  ;;  %v13926_v42 = vld [vmem:[#allocation168_spill] sm:$0xff] }
 0x232   :  { %8144 = vmatpush3.bf16.msra.mxu1 %v8143_v31  ;;  %7738 = vmatprep.subr.bf16.mxu0 %v7737_v17  ;;  %v13904_v31 = vld [vmem:[#allocation31_spill] sm:$0xff]  ;;  %v13905_v17 = vld [vmem:[#allocation192_spill] sm:$0xff]  ;;  %v4223_v14 = vand.u32 4294901760, %v11538_v33  ;;  %v11577_v58 = vld [vmem:[#allocation7 + $0x430] sm:$0xff] }
 0x233   :  { %8146 = vmatprep.subr.bf16.mxu1 %v8145_v36  ;;  %v13906_v53 = vand.u32 4294901760, %v13905_v17  ;;  %v8153_v27 = vpack.c.bf16 %v13912_v61, %v13910_v3  ;;  %v13925_v3 = vld [vmem:[#allocation43_spill] sm:$0xff]  ;;  %v13927_v61 = vld [vmem:[#allocation48_spill] sm:$0xff] }
 0x235   :  { %7740 = vmatpush1.bf16.msra.mxu0 %v7739_v49  ;;  %v8151_v36 = vpack.c.bf16 %v13908_v4, %v13906_v53  ;;  %v13916_v49 = vld [vmem:[#allocation196_spill] sm:$0xff]  ;;  %v13922_v4 = vld [vmem:[#allocation165_spill] sm:$0xff] }
 0x236   :  { %8148 = vmatpush3.bf16.msra.mxu1 %v8147_v24  ;;  %7742 = vmatprep.subr.bf16.mxu0 %v13904_v31  ;;  %v13915_v24 = vld [vmem:[#allocation34_spill] sm:$0xff]  ;;  %v13917_v16 = vand.u32 4294901760, %v13916_v49  ;;  %v13918_v31 = vld [vmem:[#allocation197_spill] sm:$0xff]  ;;  %v13931_v49 = vld [vmem:[#allocation56_spill] sm:$0xff] }
 0x237   :  { %8150 = vmatprep.subr.bf16.mxu1 %v8149_v6  ;;  %v13919_v17 = vand.u32 4294901760, %v13918_v31  ;;  %v13920_v6 = vld [vmem:[#allocation36_spill] sm:$0xff]  ;;  %v13933_v31 = vld [vmem:[#allocation57_spill] sm:$0xff] }
 0x238   :  { %2341 = vmatmul.mubr.f32.vlgmr.msra.gmra.mrb[2].mxu0 %v13913_v10 }
 0x239   :  { %7744 = vmatpush1.bf16.msra.mxu0 %v13914_v44  ;;  %2476 = vmatprep.mubr.f32.mxu0 %v10367_v51  ;;  %v8155_v53 = vpack.c.bf16 %v13919_v17, %v13917_v16  ;;  %v13929_v44 = vld [vmem:[#allocation53_spill] sm:$0xff]  ;;  %v13932_v16 = vld [vmem:[#allocation171_spill] sm:$0xff]  ;;  %v13934_v17 = vld [vmem:[#allocation172_spill] sm:$0xff] }
 0x23a   :  { %8152 = vmatpush3.bf16.msra.mxu1 %v8151_v36  ;;  %7746 = vmatprep.subr.bf16.mxu0 %v13915_v24  ;;  %v13924_v36 = vld [vmem:[#allocation167_spill] sm:$0xff]  ;;  %v13930_v24 = vld [vmem:[#allocation170_spill] sm:$0xff] }
 0x23b   :  { %8154 = vmatprep.subr.bf16.mxu1 %v8153_v27  ;;  %v13928_v27 = vld [vmem:[#allocation169_spill] sm:$0xff] }
 0x23d   :  { %7748 = vmatpush1.bf16.msra.mxu0 %v13920_v6  ;;  %v13937_v6 = vld [vmem:[#allocation61_spill] sm:$0xff] }
 0x23e   :  { %8156 = vmatpush3.bf16.msra.mxu1 %v8155_v53  ;;  %7750 = vmatprep.subr.bf16.mxu0 %v13921_v35  ;;  %v13936_v53 = vld [vmem:[#allocation173_spill] sm:$0xff]  ;;  %v13938_v35 = vld [vmem:[#allocation174_spill] sm:$0xff] }
 0x23f   :  { %8158 = vmatprep.subr.bf16.mxu1 %v13922_v4  ;;  %v13939_v4 = vld [vmem:[#allocation66_spill] sm:$0xff] }
 0x241   :  { %4092 = vmatmul.mubr.f32.vlgmr.msra.gmra.mrb[14].mxu1 %v13913_v10  ;;  %7752 = vmatpush1.bf16.msra.mxu0 %v13923_v19  ;;  %v13940_v19 = vld [vmem:[#allocation175_spill] sm:$0xff] }
 0x242   :  { %8160 = vmatpush3.bf16.msra.mxu1 %v13924_v36  ;;  %4194 = vmatprep.mubr.f32.mxu1 %v10367_v51  ;;  %v13935_v51 = vld [vmem:[#allocation60_spill] sm:$0xff]  ;;  %v13941_v36 = vld [vmem:[#allocation67_spill] sm:$0xff] }
 0x243   :  { %7754 = vmatprep.subr.bf16.mxu0 %v13925_v3  ;;  %8162 = vmatprep.subr.bf16.mxu1 %v13926_v42  ;;  %v13943_v42 = vld [vmem:[#allocation176_spill] sm:$0xff] }
 0x245   :  { %7756 = vmatpush1.bf16.msra.mxu0 %v13927_v61 }
 0x246   :  { %8164 = vmatpush3.bf16.msra.mxu1 %v13928_v27  ;;  %7758 = vmatprep.subr.bf16.mxu0 %v13929_v44  ;;  %v13945_v27 = vld [vmem:[#allocation70_spill] sm:$0xff]  ;;  %v13946_v44 = vld [vmem:[#allocation181_spill] sm:$0xff] }
 0x247   :  { %8166 = vmatprep.subr.bf16.mxu1 %v13930_v24  ;;  %v13947_v24 = vld [vmem:[#allocation77_spill] sm:$0xff] }
 0x249   :  { %7760 = vmatpush1.bf16.msra.mxu0 %v13931_v49  ;;  %v13948_v49 = vld [vmem:[#allocation182_spill] sm:$0xff] }
 0x24a   :  { %8168 = vmatpush3.bf16.msra.mxu1 %v13932_v16  ;;  %7762 = vmatprep.subr.bf16.mxu0 %v13933_v31  ;;  %v1137_v16 = vld [vmem:[#allocation7 + $0x310] sm:$0xff]  ;;  %v1140_v31 = vld [vmem:[#allocation7 + $0x328] sm:$0xff] }
 0x24b   :  { %8170 = vmatprep.subr.bf16.mxu1 %v13934_v17  ;;  %v13949_v17 = vld [vmem:[#allocation80_spill] sm:$0xff] }
 0x24d   :  { %7764 = vmatpush1.bf16.msra.mxu0 %v13935_v51  ;;  %v13950_v51 = vld [vmem:[#allocation81_spill] sm:$0xff] }
 0x24e   :  { %8172 = vmatpush3.bf16.msra.mxu1 %v13936_v53  ;;  %7766 = vmatprep.subr.bf16.mxu0 %v13937_v6  ;;  %v4202_v53 = vand.u32 4294901760, %v1137_v16  ;;  %v4205_v6 = vand.u32 4294901760, %v1140_v31 }
 0x24f   :  { %8174 = vmatprep.subr.bf16.mxu1 %v13938_v35  ;;  %v11512_v3 = vpop.f32.mrb[2].mxu1  ;;  %v1143_v35 = vld [vmem:[#allocation7 + $0x340] sm:$0xff] }
 0x250   :  { %13942 = vst [vmem:[#allocation118_spill] sm:$0xff] %v11512_v3  ;;  %v11515_v61 = vpop.f32.mrb[3].mxu1  ;;  %v11561_v3 = vld [vmem:[#allocation7 + $0x400] sm:$0xff]  ;;  %v11567_v18 = vsub.f32 %v1140_v31, %v4205_v6 }
 0x251   :  { %7768 = vmatpush1.bf16.msra.mxu0 %v13939_v4  ;;  %13944 = vst [vmem:[#allocation119_spill] sm:$0xff] %v11515_v61  ;;  %v1146_v4 = vld [vmem:[#allocation7 + $0x358] sm:$0xff]  ;;  %v4229_v61 = vand.u32 4294901760, %v11551_v37  ;;  %v4232_v63 = vand.u32 4294901760, %v11561_v3 }
 0x252   :  { %8176 = vmatpush3.bf16.msra.mxu1 %v13940_v19  ;;  %7770 = vmatprep.subr.bf16.mxu0 %v13941_v36  ;;  %v13951_v19 = vld [vmem:[#allocation82_spill] sm:$0xff]  ;;  %v13952_v36 = vld [vmem:[#allocation91_spill] sm:$0xff]  ;;  %v13973_v7 = vand.u32 4294901760, %v11567_v18 }
 0x253   :  { %8178 = vmatprep.subr.bf16.mxu1 %v13943_v42  ;;  %v11528_v42 = vpack.c.bf16 %v4205_v6, %v4202_v53  ;;  %v13968_v6 = vld [vmem:[#allocation108_spill] sm:$0xff] }
 0x254   :  { %v4303_v55 = vsub.f32 %v11567_v18, %v13973_v7  ;;  %v11639_v7 = vsub.f32 %v11538_v33, %v4223_v14  ;;  %v13983_v33 = vld [vmem:[#allocation17_spill] sm:$0xff] }
 0x255   :  { %7772 = vmatpush1.bf16.msra.mxu0 %v13945_v27  ;;  %13953 = vst [vmem:[#allocation120_spill] sm:$0xff] %v11528_v42  ;;  %v4208_v27 = vand.u32 4294901760, %v1143_v35 }
 0x256   :  { %8180 = vmatpush3.bf16.msra.mxu1 %v13946_v44  ;;  %7774 = vmatprep.subr.bf16.mxu0 %v13947_v24  ;;  %v4211_v44 = vand.u32 4294901760, %v1146_v4  ;;  %v13121_v24 = vmov 0.0|0.0  }
 0x257   :  { %8182 = vmatprep.subr.bf16.mxu1 %v13948_v49  ;;  %v1152_v49 = vld [vmem:[#allocation7 + $0x388] sm:$0xff]  ;;  %v11581_v31 = vsub.f32 %v1143_v35, %v4208_v27  ;;  %v11595_v35 = vld [vmem:[#allocation7 + $0x460] sm:$0xff] }
 0x259   :  { %7776 = vmatpush1.bf16.msra.mxu0 %v13949_v17  ;;  %v13955_v17 = vld [vmem:[#allocation93_spill] sm:$0xff]  ;;  %v13979_v20 = vand.u32 4294901760, %v11581_v31 }
 0x25a   :  { %8184 = vmatpush3.bf16.msra.mxu1 %v13809_v22  ;;  %7778 = vmatprep.subr.bf16.mxu0 %v13950_v51  ;;  %v1149_v22 = vld [vmem:[#allocation7 + $0x370] sm:$0xff] }
 0x25b   :  { %8186 = vmatprep.subr.bf16.mxu1 %v13815_v11  ;;  %v13954_v11 = vld [vmem:[#allocation92_spill] sm:$0xff]  ;;  %v4214_v51 = vand.u32 4294901760, %v1149_v22 }
 0x25d   :  { %7780 = vmatpush1.bf16.msra.mxu0 %v13951_v19  ;;  %v4217_v19 = vand.u32 4294901760, %v1152_v49 }
 0x25e   :  { %8188 = vmatpush3.bf16.msra.mxu1 %v10881_v13  ;;  %7782 = vmatprep.subr.bf16.mxu0 %v13952_v36  ;;  %v11535_v13 = vpack.c.bf16 %v4211_v44, %v4208_v27  ;;  %v1155_v36 = vld [vmem:[#allocation7 + $0x3a0] sm:$0xff] }
 0x25f   :  { %8189 = vmatprep.subr.bf16.mxu1 %v13121_v24  ;;  %v11545_v29 = vpack.c.bf16 %v4217_v19, %v4214_v51  ;;  %v11614_v45 = vsub.f32 %v1152_v49, %v4217_v19  ;;  %v13978_v49 = vld [vmem:[#allocation113_spill] sm:$0xff] }
 0x260   :  { %13956 = vst [vmem:[#allocation121_spill] sm:$0xff] %v11535_v13 }
 0x261   :  { %4196 = vmatmul.mubr.f32.vlgmr.msra.gmra.mrb[16].mxu1 %v13913_v10  ;;  %7784 = vmatpush1.bf16.msra.mxu0 %v13954_v11  ;;  %v13959_v11 = vld [vmem:[#allocation99_spill] sm:$0xff]  ;;  %13960 = vst [vmem:[#allocation23_spill] sm:$0xff] %v11545_v29 }
 0x262   :  { %8191 = vmatpush3.bf16.msra.mxu1 %v11528_v42  ;;  %7786 = vmatprep.subr.bf16.mxu0 %v13955_v17  ;;  %v4220_v17 = vand.u32 4294901760, %v1155_v36  ;;  %v11565_v42 = vsub.f32 %v1137_v16, %v4202_v53  ;;  %v11579_v16 = vld [vmem:[#allocation7 + $0x448] sm:$0xff]  ;;  %v11583_v53 = vsub.f32 %v1146_v4, %v4211_v44  ;;  %v11597_v4 = vld [vmem:[#allocation7 + $0x478] sm:$0xff]  ;;  %v11601_v44 = vsub.f32 %v1149_v22, %v4214_v51 }
 0x263   :  { %8192 = vmatprep.subr.bf16.mxu1 %v13121_v24  ;;  %6823 = vmatprep.mubr.msk.f32.mxu1 %vm8873_vm0, %v13957_v2  ;;  %v13974_v22 = vld [vmem:[#allocation112_spill] sm:$0xff]  ;;  %v13975_v51 = vand.u32 4294901760, %v11577_v58 }
 0x264   :  { %v11556_v12 = vpack.c.bf16 %v4223_v14, %v4220_v17  ;;  %v11654_v14 = vsub.f32 %v11551_v37, %v4229_v61 }
 0x265   :  { %7788 = vmatpush1.bf16.msra.mxu0 %v13958_v34  ;;  %v13962_v34 = vld [vmem:[#allocation104_spill] sm:$0xff] }
 0x266   :  { %8194 = vmatpush3.bf16.msra.mxu1 %v11535_v13  ;;  %7790 = vmatprep.subr.bf16.mxu0 %v13959_v11  ;;  %13963 = vst [vmem:[#allocation24_spill] sm:$0xff] %v11556_v12  ;;  %v4226_v11 = vand.u32 4294901760, %v11549_v59  ;;  %v11563_v13 = vld [vmem:[#allocation7 + $0x418] sm:$0xff] }
 0x267   :  { %8195 = vmatprep.subr.bf16.mxu1 %v13121_v24 }
 0x269   :  { %7792 = vmatpush1.bf16.msra.mxu0 %v13961_v0  ;;  %v13964_v0 = vld [vmem:[#allocation106_spill] sm:$0xff] }
 0x26a   :  { %8197 = vmatpush3.bf16.msra.mxu1 %v11545_v29  ;;  %7794 = vmatprep.subr.bf16.mxu0 %v13962_v34  ;;  %v13965_v34 = vld [vmem:[#allocation107_spill] sm:$0xff]  ;;  %v11572_v29 = vpack.c.bf16 %v4229_v61, %v4226_v11 }
 0x26b   :  { %8198 = vmatprep.subr.bf16.mxu1 %v13121_v24  ;;  %v4235_v24 = vand.u32 4294901760, %v11563_v13 }
 0x26c   :  { %13966 = vst [vmem:[#allocation122_spill] sm:$0xff] %v11572_v29 }
 0x26d   :  { %7796 = vmatpush1.bf16.msra.mxu0 %v13964_v0  ;;  %v13130_v0 = vand.u32 4294901760, %v11565_v42  ;;  %v11590_v60 = vpack.c.bf16 %v4235_v24, %v4232_v63 }
 0x26e   :  { %8200 = vmatpush3.bf16.msra.mxu1 %v11556_v12  ;;  %7798 = vmatprep.subr.bf16.mxu0 %v13965_v34  ;;  %v13969_v12 = vld [vmem:[#allocation109_spill] sm:$0xff]  ;;  %v13972_v34 = vld [vmem:[#allocation110_spill] sm:$0xff] }
 0x26f   :  { %8201 = vmatprep.subr.bf16.mxu1 %v13967_v41  ;;  %v11599_v27 = vpop.f32.mrb[4].mxu1 }
 0x270   :  { %13970 = vst [vmem:[#allocation123_spill] sm:$0xff] %v11599_v27  ;;  %v4310_v27 = vsub.f32 %v11581_v31, %v13979_v20 }
 0x271   :  { %7800 = vmatpush1.bf16.msra.mxu0 %v13968_v6  ;;  %v11603_v6 = vpop.f32.mrb[5].mxu1 }
 0x272   :  { %8203 = vmatpush3.bf16.msra.mxu1 %v11572_v29  ;;  %7802 = vmatprep.subr.bf16.mxu0 %v13969_v12  ;;  %13971 = vst [vmem:[#allocation28_spill] sm:$0xff] %v11603_v6  ;;  %v4296_v12 = vsub.f32 %v11565_v42, %v13130_v0  ;;  %v4244_v0 = vand.u32 4294901760, %v11595_v35  ;;  %v11627_v29 = vsub.f32 %v1155_v36, %v4220_v17  ;;  %v13982_v36 = vand.u32 4294901760, %v11597_v4 }
 0x273   :  { %8204 = vmatprep.subr.bf16.mxu1 %v13967_v41  ;;  %v13133_v17 = vand.u32 4294901760, %v11601_v44 }
 0x274   :  { %v4297_v19 = vand.u32 4294901760, %v4296_v12  ;;  %v11651_v12 = vsub.f32 %v11549_v59, %v4226_v11  ;;  %v13136_v37 = vand.u32 4294901760, %v11627_v29  ;;  %v11669_v11 = vsub.f32 %v11561_v3, %v4232_v63 }
 0x275   :  { %7804 = vmatpush1.bf16.msra.mxu0 %v13972_v34  ;;  %v13976_v34 = vand.u32 4294901760, %v11579_v16  ;;  %v4324_v20 = vsub.f32 %v11601_v44, %v13133_v17  ;;  %v13991_v3 = vand.u32 4294901760, %v11639_v7 }
 0x276   :  { %8206 = vmatpush3.bf16.msra.mxu1 %v11590_v60  ;;  %7838 = vmatprep.subr.bf16.mxu0 %v13974_v22  ;;  %v4304_v22 = vand.u32 4294901760, %v4303_v55  ;;  %v11645_v55 = vpack.c.bf16 %v13982_v36, %v4244_v0  ;;  %v13984_v36 = vld [vmem:[#allocation114_spill] sm:$0xff]  ;;  %13986 = vst [vmem:[#allocation30_spill] sm:$0xff] %v11669_v11  ;;  %v4338_v63 = vsub.f32 %v11627_v29, %v13136_v37 }
 0x277   :  { %v11622_v6 = vpack.c.bf16 %v13976_v34, %v13975_v51  ;;  %8207 = vmatprep.subr.bf16.mxu1 %v13967_v41  ;;  %v13980_v51 = vand.u32 4294901760, %v11583_v53  ;;  %v4325_v17 = vand.u32 4294901760, %v4324_v20  ;;  %v13994_v20 = vld [vmem:[#allocation19_spill] sm:$0xff] }
 0x278   :  { %2478 = vmatmul.mubr.f32.vlgmr.msra.gmra.mrb[2].mxu0 %v13913_v10  ;;  %v13981_v10 = vld [vmem:[#allocation16_spill] sm:$0xff] }
 0x279   :  { %13977 = vst [vmem:[#allocation29_spill] sm:$0xff] %v11622_v6  ;;  %7840 = vmatpush1.bf16.msra.mxu0 %v13978_v49  ;;  %v4317_v34 = vsub.f32 %v11583_v53, %v13980_v51  ;;  %2816 = vmatprep.mubr.f32.mxu0 %v13957_v2  ;;  %v8214_v49 = vpack.c.bf16 %v4304_v22, %v4297_v19  ;;  %v4311_v51 = vand.u32 4294901760, %v4310_v27  ;;  %v13988_v19 = vld [vmem:[#allocation166_spill] sm:$0xff]  ;;  %v13989_v22 = vld [vmem:[#allocation115_spill] sm:$0xff] }
 0x27a   :  { %8209 = vmatpush3.bf16.msra.mxu1 %v11622_v6  ;;  %7842 = vmatprep.subr.bf16.mxu0 %v13981_v10  ;;  %v13985_v6 = vand.u32 4294901760, %v11614_v45  ;;  %v11672_v27 = vsub.f32 %v11563_v13, %v4235_v24  ;;  %v4345_v24 = vsub.f32 %v11639_v7, %v13991_v3  ;;  %v13992_v13 = vand.u32 4294901760, %v11577_v58 }
 0x27b   :  { %8210 = vmatprep.subr.bf16.mxu1 %v13967_v41  ;;  %v4318_v10 = vand.u32 4294901760, %v4317_v34 }
 0x27c   :  { %v4331_v59 = vsub.f32 %v11614_v45, %v13985_v6  ;;  %13987 = vst [vmem:[#allocation124_spill] sm:$0xff] %v11672_v27  ;;  %v13135_v6 = vand.u32 4294901760, %v11654_v14 }
 0x27d   :  { %7844 = vmatpush1.bf16.msra.mxu0 %v13983_v33  ;;  %v8217_v34 = vpack.c.bf16 %v4318_v10, %v4311_v51  ;;  %v13134_v33 = vand.u32 4294901760, %v11651_v12 }
 0x27e   :  { %8212 = vmatpush3.bf16.msra.mxu1 %v11645_v55  ;;  %7846 = vmatprep.subr.bf16.mxu0 %v13984_v36  ;;  %v13990_v36 = vld [vmem:[#allocation18_spill] sm:$0xff]  ;;  %v4332_v61 = vand.u32 4294901760, %v4331_v59  ;;  %v4359_v10 = vsub.f32 %v11654_v14, %v13135_v6  ;;  %v13141_v59 = vand.u32 4294901760, %v11669_v11  ;;  %v13999_v6 = vld [vmem:[#allocation116_spill] sm:$0xff] }
 0x27f   :  { %8213 = vmatprep.subr.bf16.mxu1 %v13967_v41  ;;  %v4352_v51 = vsub.f32 %v11651_v12, %v13134_v33  ;;  %v11710_v33 = vsub.f32 %v11595_v35, %v4244_v0  ;;  %v14003_v0 = vld [vmem:[#allocation147_spill] sm:$0xff] }
 0x280   :  { %v8220_v3 = vpack.c.bf16 %v4332_v61, %v4325_v17  ;;  %v14001_v17 = vand.u32 4294901760, %v11597_v4 }
 0x281   :  { %6824 = vmatmul.mubr.f32.vlgmr.msra.gmra.mrb[18].mxu1 %v13988_v19  ;;  %7848 = vmatpush1.bf16.msra.mxu0 %v13989_v22  ;;  %v13995_v22 = vand.u32 4294901760, %v11579_v16  ;;  %13998 = vst [vmem:[#allocation126_spill] sm:$0xff] %v11710_v33  ;;  %v4353_v37 = vand.u32 4294901760, %v4352_v51  ;;  %v4360_v19 = vand.u32 4294901760, %v4359_v10 }
 0x282   :  { %8215 = vmatpush3.bf16.msra.mxu1 %v8214_v49  ;;  %7850 = vmatprep.subr.bf16.mxu0 %v13990_v36  ;;  %v11691_v49 = vsub.f32 %v11577_v58, %v13992_v13  ;;  %v13997_v58 = vld [vmem:[#allocation20_spill] sm:$0xff]  ;;  %v4339_v13 = vand.u32 4294901760, %v4338_v63  ;;  %v11722_v61 = vsub.f32 %v11597_v4, %v14001_v17 }
 0x283   :  { %8216 = vmatprep.subr.bf16.mxu1 %v13967_v41  ;;  %6858 = vmatprep.mubr.msk.f32.mxu1 %vm8873_vm0, %v13957_v2  ;;  %v11705_v36 = vsub.f32 %v11579_v16, %v13995_v22  ;;  %v4366_v16 = vsub.f32 %v11669_v11, %v13141_v59  ;;  %v8226_v51 = vpack.c.bf16 %v4360_v19, %v4353_v37  ;;  %v14006_v37 = vld [vmem:[#allocation117_spill] sm:$0xff]  ;;  %v14034_v59 = vld [vmem:[#allocation142_spill] sm:$0xff] }
 0x284   :  { %13993 = vst [vmem:[#allocation125_spill] sm:$0xff] %v11691_v49  ;;  %14002 = vst [vmem:[#allocation148_spill] sm:$0xff] %v11722_v61 }
 0x285   :  { %7852 = vmatpush1.bf16.msra.mxu0 %v13994_v20  ;;  %13996 = vst [vmem:[#allocation146_spill] sm:$0xff] %v11705_v36  ;;  %v4346_v20 = vand.u32 4294901760, %v4345_v24  ;;  %v13139_v63 = vand.u32 4294901760, %v11705_v36  ;;  %v14004_v24 = vld [vmem:[#allocation21_spill] sm:$0xff]  ;;  %v4367_v10 = vand.u32 4294901760, %v4366_v16 }
 0x286   :  { %8218 = vmatpush3.bf16.msra.mxu1 %v8217_v34  ;;  %7854 = vmatprep.subr.bf16.mxu0 %v13997_v58  ;;  %v14000_v34 = vand.u32 4294901760, %v11672_v27 }
 0x287   :  { %8219 = vmatprep.subr.bf16.mxu1 %v13967_v41  ;;  %v8223_v35 = vpack.c.bf16 %v4346_v20, %v4339_v13  ;;  %v13138_v13 = vand.u32 4294901760, %v11710_v33  ;;  %v13137_v20 = vand.u32 4294901760, %v11722_v61 }
 0x288   :  { %v4373_v22 = vsub.f32 %v11672_v27, %v14000_v34  ;;  %v14005_v34 = vld [vmem:[#allocation22_spill] sm:$0xff] }
 0x289   :  { %7856 = vmatpush1.bf16.msra.mxu0 %v13999_v6  ;;  %v13140_v6 = vand.u32 4294901760, %v11691_v49  ;;  %v4394_v17 = vsub.f32 %v11710_v33, %v13138_v13 }
 0x28a   :  { %8221 = vmatpush3.bf16.msra.mxu1 %v8220_v3  ;;  %7858 = vmatprep.subr.bf16.mxu0 %v14003_v0  ;;  %v4374_v58 = vand.u32 4294901760, %v4373_v22  ;;  %v4387_v3 = vsub.f32 %v11705_v36, %v13139_v63  ;;  %v4401_v0 = vsub.f32 %v11722_v61, %v13137_v20  ;;  %v8253_v20 = vpack.c.bf16 %v11672_v27, %v11669_v11  ;;  %v14038_v27 = vld [vmem:[#allocation25_spill] sm:$0xff] }
 0x28b   :  { %8222 = vmatprep.subr.bf16.mxu1 %v13967_v41  ;;  %v4380_v4 = vsub.f32 %v11691_v49, %v13140_v6  ;;  %v14033_v6 = vld [vmem:[#allocation143_spill] sm:$0xff] }
 0x28c   :  { %v8229_v19 = vpack.c.bf16 %v4374_v58, %v4367_v10  ;;  %v4388_v22 = vand.u32 4294901760, %v4387_v3  ;;  %v4395_v58 = vand.u32 4294901760, %v4394_v17  ;;  %v14009_v3 = vpack.c.bf16 %v13668_v43, %v13667_v1 }
 0x28d   :  { %7860 = vmatpush1.bf16.msra.mxu0 %v14004_v24  ;;  %v4381_v16 = vand.u32 4294901760, %v4380_v4  ;;  %v14008_v4 = vld [vmem:[#allocation155_spill] sm:$0xff]  ;;  %v14013_v17 = vpack.c.bf16 %v13701_v23, %v13698_v39 }
 0x28e   :  { %8224 = vmatpush3.bf16.msra.mxu1 %v8223_v35  ;;  %7862 = vmatprep.subr.bf16.mxu0 %v14005_v34  ;;  %v4402_v34 = vand.u32 4294901760, %v4401_v0  ;;  %v14014_v0 = vpack.c.bf16 %v13714_v56, %v13713_v47 }
 0x28f   :  { %8225 = vmatprep.subr.bf16.mxu1 %v13967_v41 }
 0x290   :  { %v6277_v35 = vpop.f32.mrb[6].mxu1 }
 0x291   :  { %7864 = vmatpush1.bf16.msra.mxu0 %v14006_v37  ;;  %v6278_v24 = vpop.f32.mrb[7].mxu1  ;;  %v8235_v37 = vpack.c.bf16 %v4402_v34, %v4395_v58  ;;  %v14017_v58 = vpack.c.bf16 %v13744_v57, %v13742_v32  ;;  %v14018_v34 = vpack.c.bf16 %v13866_v30, %v13865_v62 }
 0x292   :  { %8227 = vmatpush3.bf16.msra.mxu1 %v8226_v51  ;;  %7866 = vmatprep.subr.bf16.mxu0 %v11344_v28  ;;  %v6279_v10 = vadd.f32 %v6278_v24, %v6277_v35  ;;  %v14007_v28 = vpack.c.bf16 %v13661_v8, %v13660_v46  ;;  %v8232_v51 = vpack.c.bf16 %v4388_v22, %v4381_v16 }
 0x293   :  { %8228 = vmatprep.subr.bf16.mxu1 %v13967_v41  ;;  %v14012_v16 = vpack.c.bf16 %v13689_v26, %v13688_v50  ;;  %v8238_v22 = vpack.c.bf16 %v11567_v18, %v11565_v42  ;;  %v8241_v35 = vpack.c.bf16 %v11583_v53, %v11581_v31  ;;  %v14015_v24 = vpack.c.bf16 %v13725_v48, %v13717_v15 }
 0x295   :  { %7868 = vmatpush1.bf16.msra.mxu0 %v11359_v54  ;;  %v14010_v54 = vpack.c.bf16 %v13684_v5, %v13678_v38 }
 0x296   :  { %8230 = vmatpush3.bf16.msra.mxu1 %v8229_v19  ;;  %7870 = vmatprep.subr.bf16.mxu0 %v14007_v28  ;;  %v14011_v19 = vpack.c.bf16 %v13686_v52, %v13685_v25  ;;  %v14016_v28 = vpack.c.bf16 %v13739_v40, %v13738_v9 }
 0x297   :  { %8231 = vmatprep.subr.bf16.mxu1 %v13967_v41 }
 0x298   :  { %2818 = vmatmul.mubr.f32.vlgmr.msra.gmra.mrb[4].mxu0 %v14008_v4 }
 0x299   :  { %7872 = vmatpush1.bf16.msra.mxu0 %v14009_v3  ;;  %2952 = vmatprep.mubr.f32.mxu0 %v13957_v2  ;;  %v8247_v3 = vpack.c.bf16 %v11639_v7, %v11627_v29 }
 0x29a   :  { %8233 = vmatpush3.bf16.msra.mxu1 %v8232_v51  ;;  %7874 = vmatprep.subr.bf16.mxu0 %v14010_v54  ;;  %v8244_v51 = vpack.c.bf16 %v11614_v45, %v11601_v44  ;;  %v14019_v54 = vld [vmem:[#allocation134_spill] sm:$0xff] }
 0x29b   :  { %8234 = vmatprep.subr.bf16.mxu1 %v13967_v41 }
 0x29d   :  { %7876 = vmatpush1.bf16.msra.mxu0 %v14011_v19  ;;  %v14021_v19 = vld [vmem:[#allocation137_spill] sm:$0xff] }
 0x29e   :  { %8236 = vmatpush3.bf16.msra.mxu1 %v8235_v37  ;;  %7878 = vmatprep.subr.bf16.mxu0 %v14012_v16  ;;  %v14020_v37 = vpack.c.bf16 %v13872_v21, %v14019_v54  ;;  %v14022_v16 = vld [vmem:[#allocation136_spill] sm:$0xff] }
 0x29f   :  { %8237 = vmatprep.subr.bf16.mxu1 %v13967_v41 }
 0x2a1   :  { %6859 = vmatmul.mubr.f32.vlgmr.msra.gmra.mrb[18].mxu1 %v14008_v4  ;;  %7880 = vmatpush1.bf16.msra.mxu0 %v14013_v17  ;;  %v8250_v17 = vpack.c.bf16 %v11654_v14, %v11651_v12  ;;  %v14035_v4 = vpack.c.bf16 %v14033_v6, %v14034_v59 }
 0x2a2   :  { %8239 = vmatpush3.bf16.msra.mxu1 %v8238_v22  ;;  %7882 = vmatprep.subr.bf16.mxu0 %v14014_v0  ;;  %v14023_v22 = vpack.c.bf16 %v14021_v19, %v14022_v16  ;;  %v11813_v0 = vld [vmem:[%s12681_s4] sm:$0x7]  ;;  %s8875_s4 = smov [#allocation11]  }
 0x2a3   :  { %8240 = vmatprep.subr.bf16.mxu1 %v13967_v41  ;;  %6893 = vmatprep.mubr.msk.f32.mxu1 %vm8873_vm0, %v13957_v2  ;;  %14024 = vst [vmem:[#allocation33_spill] sm:$0xff] %v11813_v0  ;;  %s6222_s15 = sshll.u32 %s8875_s4, 4  ;;  %s6223_s15 = int_to_ptr.vmem [resolvable:$true] %s6222_s15 }
 0x2a4   :  { %s8833_s16 = scalar_lea.vmem %s6223_s15, 32  ;;  %p8838_p13 = scmp.lt.s32.totalorder %s6223_s15, %s6223_s15 }
 0x2a5   :  { %7884 = vmatpush1.bf16.msra.mxu0 %v14015_v24  ;;  %v14026_v24 = vld [vmem:[#allocation138_spill] sm:$0xff]  ;;  %p8834_p12 = scmp.ne.s32.totalorder %s6223_s15, %s8833_s16  ;;  %p8839_p0 = scmp.lt.s32.totalorder %s8833_s16, %s8833_s16 }
 0x2a6   :  { %8242 = vmatpush3.bf16.msra.mxu1 %v8241_v35  ;;  %7886 = vmatprep.subr.bf16.mxu0 %v14016_v28  ;;  %v14025_v35 = vld [vmem:[#allocation139_spill] sm:$0xff] }
 0x2a7   :  { %8243 = vmatprep.subr.bf16.mxu1 %v13967_v41  ;;  %v14027_v28 = vpack.c.bf16 %v14025_v35, %v14026_v24  ;;  %p8840_p1 = por %p8839_p0, %p8838_p13 }
 0x2a9   :  { %7888 = vmatpush1.bf16.msra.mxu0 %v14017_v58  ;;  %p8841_p2 = pnand %p8840_p1, %p8834_p12 }
 0x2aa   :  { %8245 = vmatpush3.bf16.msra.mxu1 %v8244_v51  ;;  %7890 = vmatprep.subr.bf16.mxu0 %v14018_v34  ;;  %v14028_v51 = vld [vmem:[#allocation144_spill] sm:$0xff] }
 0x2ab   :  { %8246 = vmatprep.subr.bf16.mxu1 %v13967_v41  ;;  %v14029_v58 = vsub.s32 2, %v14028_v51 }
 0x2ad   :  { %7892 = vmatpush1.bf16.msra.mxu0 %v14020_v37  ;;  %v1196_v34 = vrot.slane %v11813_v0, %v14029_v58  ;;  %v14031_v37 = vld [vmem:[#allocation140_spill] sm:$0xff]  ;;  %v14036_v58 = vld [vmem:[#allocation111_spill] sm:$0xff]  ;;  %v14037_v0 = vld [vmem:[#allocation158_spill] sm:$0xff] }
 0x2ae   :  { %8248 = vmatpush3.bf16.msra.mxu1 %v8247_v3  ;;  %7894 = vmatprep.subr.bf16.mxu0 %v14023_v22  ;;  %v14030_v3 = vld [vmem:[#allocation141_spill] sm:$0xff] }
 0x2af   :  { %8249 = vmatprep.subr.bf16.mxu1 %v13967_v41  ;;  %v14032_v22 = vpack.c.bf16 %v14030_v3, %v14031_v37 }
 0x2b0   :  { %v6312_v13 = vpop.f32.mrb[8].mxu1 }
 0x2b1   :  { %7896 = vmatpush1.bf16.msra.mxu0 %v14027_v28  ;;  %v6313_v63 = vpop.f32.mrb[9].mxu1  ;;  %v3448_v28 = vadd.f32 %v6279_v10, %v1196_v34  ;;  %v14042_v10 = vld [vmem:[#allocation150_spill] sm:$0xff]  ;;  %v14044_v34 = vld [vmem:[#allocation151_spill] sm:$0xff] }
 0x2b2   :  { %8251 = vmatpush3.bf16.msra.mxu1 %v8250_v17  ;;  %7898 = vmatprep.subr.bf16.mxu0 %v14032_v22  ;;  %v6314_v51 = vadd.f32 %v6313_v63, %v6312_v13  ;;  %v8256_v17 = vpack.c.bf16 %v11705_v36, %v11691_v49  ;;  %v8259_v63 = vpack.c.bf16 %v11722_v61, %v11710_v33  ;;  %v14040_v13 = vld [vmem:[#allocation27_spill] sm:$0xff] }
 0x2b3   :  { %8252 = vmatprep.subr.bf16.mxu1 %v13967_v41  ;;  %v11872_v61 = vld [vmem:[#allocation8 + $0x18] sm:$0xff]  ;;  %v11875_v33 = vld [vmem:[#allocation8 + $0x20] sm:$0xff] }
 0x2b4   :  { %v11834_v22 = vadd.f32 %v6314_v51, %v3448_v28  ;;  %v14043_v51 = vld [vmem:[#allocation120_spill] sm:$0xff]  ;;  %v14045_v28 = vld [vmem:[#allocation153_spill] sm:$0xff]  ;;  %v14064_v11 = vand.u32 4294901760, %v11872_v61 }
 0x2b5   :  { %7900 = vmatpush1.bf16.msra.mxu0 %v14035_v4  ;;  %v14039_v4 = vld [vmem:[#allocation26_spill] sm:$0xff] }
 0x2b6   :  { %8254 = vmatpush3.bf16.msra.mxu1 %v8253_v20  ;;  %7902 = vmatprep.subr.bf16.mxu0 %v14036_v58  ;;  %v14041_v20 = vld [vmem:[#allocation149_spill] sm:$0xff]  ;;  %v14063_v58 = vld [vmem:[#allocation162_spill] sm:$0xff]  ;;  %v11906_v6 = vsub.f32 %v11872_v61, %v14064_v11 }
 0x2b7   :  { %8255 = vmatprep.subr.bf16.mxu1 %v13967_v41 }
 0x2b8   :  { %2955 = vmatmul.mubr.f32.vlgmr.msra.gmra.mrb[4].mxu0 %v14037_v0  ;;  %14065 = vst [vmem:[#allocation129_spill] sm:$0xff] %v11906_v6 }
 0x2b9   :  { %7904 = vmatpush1.bf16.msra.mxu0 %v14038_v27  ;;  %3057 = vmatprep.mubr.f32.mxu0 %v13957_v2  ;;  %v11882_v27 = vld [vmem:[#allocation8 + $0x30] sm:$0xff] }
 0x2ba   :  { %8257 = vmatpush3.bf16.msra.mxu1 %v8256_v17  ;;  %7906 = vmatprep.subr.bf16.mxu0 %v14039_v4  ;;  %v14046_v17 = vld [vmem:[#allocation121_spill] sm:$0xff]  ;;  %14057 = vst [vmem:[#allocation39_spill] sm:$0xff] %v11882_v27  ;;  %v13161_v11 = vand.u32 4294901760, %v11882_v27 }
 0x2bb   :  { %8258 = vmatprep.subr.bf16.mxu1 %v13967_v41 }
 0x2bd   :  { %7908 = vmatpush1.bf16.msra.mxu0 %v14040_v13  ;;  %v11864_v13 = vld [vmem:[#allocation8 + $0x8] sm:$0xff] }
 0x2be   :  { %8260 = vmatpush3.bf16.msra.mxu1 %v8259_v63  ;;  %7910 = vmatprep.subr.bf16.mxu0 %v14041_v20  ;;  %v14047_v63 = vld [vmem:[#allocation154_spill] sm:$0xff]  ;;  %v11862_v20 = vld [vmem:[#allocation8] sm:$0xff]  ;;  %14052 = vst [vmem:[#allocation35_spill] sm:$0xff] %v11864_v13 }
 0x2bf   :  { %8261 = vmatprep.subr.bf16.mxu1 %v13967_v41 }
 0x2c1   :  { %6894 = vmatmul.mubr.f32.vlgmr.msra.gmra.mrb[18].mxu1 %v14037_v0  ;;  %7912 = vmatpush1.bf16.msra.mxu0 %v14042_v10  ;;  %v14048_v0 = vld [vmem:[#allocation156_spill] sm:$0xff]  ;;  %v14049_v10 = vld [vmem:[#allocation23_spill] sm:$0xff] }
 0x2c2   :  { %8263 = vmatpush3.bf16.msra.mxu1 %v14043_v51  ;;  %7914 = vmatprep.subr.bf16.mxu0 %v14044_v34  ;;  %v14050_v51 = vld [vmem:[#allocation157_spill] sm:$0xff]  ;;  %v14051_v34 = vld [vmem:[#allocation159_spill] sm:$0xff] }
 0x2c3   :  { %8264 = vmatprep.subr.bf16.mxu1 %v13967_v41  ;;  %6928 = vmatprep.mubr.msk.f32.mxu1 %vm8873_vm0, %v13957_v2 }
 0x2c5   :  { %7916 = vmatpush1.bf16.msra.mxu0 %v14045_v28  ;;  %v11866_v28 = vld [vmem:[#allocation8 + $0x10] sm:$0xff] }
 0x2c6   :  { %8266 = vmatpush3.bf16.msra.mxu1 %v14046_v17  ;;  %7918 = vmatprep.subr.bf16.mxu0 %v14047_v63  ;;  %14053 = vst [vmem:[#allocation127_spill] sm:$0xff] %v11866_v28  ;;  %v14054_v17 = vld [vmem:[#allocation24_spill] sm:$0xff]  ;;  %v14061_v49 = vand.u32 4294901760, %v11866_v28 }
 0x2c7   :  { %8267 = vmatprep.subr.bf16.mxu1 %v13967_v41  ;;  %v14055_v63 = vld [vmem:[#allocation160_spill] sm:$0xff] }
 0x2c8   :  { %v11899_v4 = vsub.f32 %v11866_v28, %v14061_v49  ;;  %v14070_v49 = vand.u32 4294901760, %v13660_v46 }
 0x2c9   :  { %7920 = vmatpush1.bf16.msra.mxu0 %v14048_v0  ;;  %v13151_v0 = vand.u32 4294901760, %v11862_v20 }
 0x2ca   :  { %8269 = vmatpush3.bf16.msra.mxu1 %v14049_v10  ;;  %7922 = vmatprep.subr.bf16.mxu0 %v14050_v51  ;;  %v14059_v51 = vand.u32 4294901760, %v11864_v13  ;;  %14062 = vst [vmem:[#allocation128_spill] sm:$0xff] %v11899_v4 }
 0x2cb   :  { %8270 = vmatprep.subr.bf16.mxu1 %v13967_v41  ;;  %v11889_v10 = vsub.f32 %v11862_v20, %v13151_v0  ;;  %v14066_v0 = vand.u32 4294901760, %v11875_v33 }
 0x2cc   :  { %v11894_v36 = vsub.f32 %v11864_v13, %v14059_v51  ;;  %v14068_v51 = vld [vmem:[#allocation122_spill] sm:$0xff] }
 0x2cd   :  { %7924 = vmatpush1.bf16.msra.mxu0 %v14051_v34  ;;  %v11877_v34 = vld [vmem:[#allocation8 + $0x28] sm:$0xff]  ;;  %14058 = vst [vmem:[#allocation40_spill] sm:$0xff] %v11889_v10  ;;  %v11911_v10 = vsub.f32 %v11875_v33, %v14066_v0 }
 0x2ce   :  { %8272 = vmatpush3.bf16.msra.mxu1 %v14054_v17  ;;  %7926 = vmatprep.subr.bf16.mxu0 %v14055_v63  ;;  %14056 = vst [vmem:[#allocation38_spill] sm:$0xff] %v11877_v34  ;;  %v11884_v63 = vld [vmem:[#allocation8 + $0x38] sm:$0xff]  ;;  %14060 = vst [vmem:[#allocation41_spill] sm:$0xff] %v11894_v36  ;;  %v14071_v17 = vand.u32 4294901760, %v13661_v8  ;;  %v14072_v28 = vand.u32 4294901760, %v11877_v34 }
 0x2cf   :  { %8273 = vmatprep.subr.bf16.mxu1 %v13967_v41  ;;  %14067 = vst [vmem:[#allocation130_spill] sm:$0xff] %v11911_v10  ;;  %v14069_v36 = vld [vmem:[#allocation163_spill] sm:$0xff]  ;;  %v13164_v6 = vand.u32 4294901760, %v11884_v63  ;;  %v11930_v10 = vsub.f32 %v11882_v27, %v13161_v11  ;;  %v14079_v11 = vand.u32 4294901760, %v13678_v38  ;;  %v14086_v38 = vand.u32 4294901760, %v13689_v26 }
 0x2d0   :  { %v7933_v4 = vpack.c.bf16 %v14071_v17, %v14070_v49  ;;  %v11922_v13 = vsub.f32 %v11877_v34, %v14072_v28  ;;  %v14076_v28 = vld [vmem:[#allocation164_spill] sm:$0xff]  ;;  %v14077_v17 = vand.u32 4294901760, %v13667_v1  ;;  %v14078_v49 = vand.u32 4294901760, %v13668_v43 }
 0x2d1   :  { %7928 = vmatpush1.bf16.msra.mxu0 %v14063_v58  ;;  %14074 = vst [vmem:[#allocation44_spill] sm:$0xff] %v11930_v10  ;;  %v11935_v46 = vsub.f32 %v11884_v63, %v13164_v6  ;;  %v14080_v10 = vand.u32 4294901760, %v13684_v5  ;;  %v14082_v1 = vand.u32 4294901760, %v13685_v25  ;;  %v14083_v43 = vand.u32 4294901760, %v13686_v52 }
 0x2d2   :  { %8275 = vmatpush3.bf16.msra.mxu1 %v14068_v51  ;;  %7930 = vmatprep.subr.bf16.mxu0 %v14069_v36  ;;  %14073 = vst [vmem:[#allocation131_spill] sm:$0xff] %v11922_v13  ;;  %v6347_v0 = vpop.f32.mrb[10].mxu1  ;;  %v7935_v13 = vpack.c.bf16 %v14078_v49, %v14077_v17  ;;  %v14085_v5 = vand.u32 4294901760, %v13688_v50  ;;  %v14088_v25 = vand.u32 4294901760, %v13701_v23  ;;  %v14089_v52 = vand.u32 4294901760, %v11565_v42 }
 0x2d3   :  { %8276 = vmatprep.subr.bf16.mxu1 %v13967_v41  ;;  %14075 = vst [vmem:[#allocation45_spill] sm:$0xff] %v11935_v46  ;;  %v6348_v8 = vpop.f32.mrb[11].mxu1  ;;  %v7937_v27 = vpack.c.bf16 %v14080_v10, %v14079_v11  ;;  %v14081_v46 = vld [vmem:[#allocation161_spill] sm:$0xff]  ;;  %v14091_v50 = vand.u32 4294901760, %v13713_v47  ;;  %v14092_v26 = vand.u32 4294901760, %v13714_v56  ;;  %v14094_v23 = vand.u32 4294901760, %v13725_v48 }
 0x2d4   :  { %v6349_v34 = vadd.f32 %v6348_v8, %v6347_v0  ;;  %v7939_v0 = vpack.c.bf16 %v14083_v43, %v14082_v1  ;;  %v7941_v10 = vpack.c.bf16 %v14086_v38, %v14085_v5  ;;  %v14096_v42 = vand.u32 4294901760, %v11583_v53 }
 0x2d5   :  { %7932 = vmatpush1.bf16.msra.mxu0 %v14076_v28  ;;  %v7945_v11 = vpack.c.bf16 %v14092_v26, %v14091_v50  ;;  %v14097_v56 = vand.u32 4294901760, %v13738_v9  ;;  %v14098_v17 = vand.u32 4294901760, %v13739_v40  ;;  %v14100_v48 = vand.u32 4294901760, %v13744_v57 }
 0x2d6   :  { %8278 = vmatpush3.bf16.msra.mxu1 %v11590_v60  ;;  %7934 = vmatprep.subr.bf16.mxu0 %v7933_v4  ;;  %v3818_v6 = vadd.f32 %v6349_v34, %v11834_v22  ;;  %v14084_v4 = vld [vmem:[#allocation29_spill] sm:$0xff]  ;;  %v14087_v22 = vand.u32 4294901760, %v13698_v39  ;;  %v14093_v39 = vand.u32 4294901760, %v13717_v15  ;;  %v14099_v15 = vand.u32 4294901760, %v13742_v32 }
 0x2d7   :  { %8279 = vmatprep.subr.bf16.mxu1 %v13967_v41  ;;  %v7949_v49 = vpack.c.bf16 %v14098_v17, %v14097_v56  ;;  %v14102_v9 = vand.u32 4294901760, %v11614_v45  ;;  %v14103_v40 = vand.u32 4294901760, %v13865_v62  ;;  %v14104_v1 = vand.u32 4294901760, %v13866_v30  ;;  %v14130_v56 = vld [vmem:[#allocation25_spill] sm:$0xff]  ;;  %v14131_v17 = vld [vmem:[#allocation26_spill] sm:$0xff] }
 0x2d8   :  { %3061 = vmatmul.mubr.f32.vlgmr.msra.gmra.mrb[4].mxu0 %v14081_v46  ;;  %v7947_v8 = vpack.c.bf16 %v14094_v23, %v14093_v39  ;;  %v14105_v32 = vand.u32 4294901760, %v14019_v54  ;;  %v14106_v57 = vand.u32 4294901760, %v13872_v21  ;;  %v14108_v45 = vand.u32 4294901760, %v11639_v7  ;;  %v14127_v23 = vld [vmem:[#allocation146_spill] sm:$0xff] }
 0x2d9   :  { %7936 = vmatpush1.bf16.msra.mxu0 %v7935_v13  ;;  %3227 = vmatprep.mubr.f32.mxu0 %v13957_v2  ;;  %v7943_v13 = vpack.c.bf16 %v14088_v25, %v14087_v22  ;;  %v7953_v43 = vpack.c.bf16 %v14104_v1, %v14103_v40  ;;  %v14109_v62 = vand.u32 4294901760, %v14022_v16  ;;  %v14110_v30 = vand.u32 4294901760, %v14021_v19  ;;  %v14139_v40 = vld [vmem:[#allocation120_spill] sm:$0xff]  ;;  %v14140_v1 = vld [vmem:[#allocation151_spill] sm:$0xff] }
 0x2da   :  { %8281 = vmatpush3.bf16.msra.mxu1 %v14084_v4  ;;  %7938 = vmatprep.subr.bf16.mxu0 %v7937_v27  ;;  %v14090_v27 = vand.u32 4294901760, %v11567_v18  ;;  %v14095_v18 = vand.u32 4294901760, %v11581_v31  ;;  %v14101_v31 = vand.u32 4294901760, %v11601_v44  ;;  %v14107_v44 = vand.u32 4294901760, %v11627_v29 }
 0x2db   :  { %8282 = vmatprep.subr.bf16.mxu1 %v13967_v41  ;;  %v7957_v38 = vpack.c.bf16 %v14110_v30, %v14109_v62  ;;  %v14111_v54 = vand.u32 4294901760, %v14026_v24  ;;  %v14112_v21 = vand.u32 4294901760, %v14025_v35  ;;  %v14113_v29 = vand.u32 4294901760, %v11651_v12  ;;  %v14148_v62 = vld [vmem:[#allocation24_spill] sm:$0xff] }
 0x2dc   :  { %v8286_v34 = vpack.c.bf16 %v14090_v27, %v14089_v52  ;;  %v8289_v47 = vpack.c.bf16 %v14096_v42, %v14095_v18  ;;  %v8292_v53 = vpack.c.bf16 %v14102_v9, %v14101_v31  ;;  %v8295_v5 = vpack.c.bf16 %v14108_v45, %v14107_v44  ;;  %v14120_v27 = vld [vmem:[#allocation30_spill] sm:$0xff]  ;;  %v14136_v9 = vld [vmem:[#allocation27_spill] sm:$0xff]  ;;  %v14146_v45 = vld [vmem:[#allocation157_spill] sm:$0xff] }
 0x2dd   :  { %7940 = vmatpush1.bf16.msra.mxu0 %v7939_v0  ;;  %v7955_v0 = vpack.c.bf16 %v14106_v57, %v14105_v32  ;;  %v14114_v7 = vand.u32 4294901760, %v11654_v14  ;;  %v14115_v16 = vand.u32 4294901760, %v14031_v37  ;;  %v14116_v19 = vand.u32 4294901760, %v14030_v3  ;;  %v14142_v32 = vld [vmem:[#allocation121_spill] sm:$0xff]  ;;  %v14143_v57 = vld [vmem:[#allocation154_spill] sm:$0xff]  ;;  %v14145_v44 = vld [vmem:[#allocation23_spill] sm:$0xff] }
 0x2de   :  { %8284 = vmatpush3.bf16.msra.mxu1 %v11645_v55  ;;  %7942 = vmatprep.subr.bf16.mxu0 %v7941_v10  ;;  %v7959_v10 = vpack.c.bf16 %v14112_v21, %v14111_v54  ;;  %v14117_v24 = vand.u32 4294901760, %v14034_v59  ;;  %v14121_v12 = vand.u32 4294901760, %v14120_v27  ;;  %v14125_v59 = vld [vmem:[#allocation125_spill] sm:$0xff]  ;;  %v14149_v30 = vld [vmem:[#allocation160_spill] sm:$0xff] }
 0x2df   :  { %8285 = vmatprep.subr.bf16.mxu1 %v13967_v41  ;;  %v8298_v22 = vpack.c.bf16 %v14114_v7, %v14113_v29  ;;  %v7961_v25 = vpack.c.bf16 %v14116_v19, %v14115_v16  ;;  %v14126_v39 = vand.u32 4294901760, %v14125_v59  ;;  %v14162_v27 = vld [vmem:[#allocation144_spill] sm:$0xff] }
 0x2e1   :  { %6929 = vmatmul.mubr.f32.vlgmr.msra.gmra.mrb[18].mxu1 %v14081_v46  ;;  %7944 = vmatpush1.bf16.msra.mxu0 %v7943_v13  ;;  %v7951_v46 = vpack.c.bf16 %v14100_v48, %v14099_v15  ;;  %v14118_v13 = vld [vmem:[#allocation143_spill] sm:$0xff]  ;;  %v14134_v48 = vld [vmem:[#allocation148_spill] sm:$0xff] }
 0x2e2   :  { %8287 = vmatpush3.bf16.msra.mxu1 %v8286_v34  ;;  %7946 = vmatprep.subr.bf16.mxu0 %v7945_v11  ;;  %v14119_v35 = vand.u32 4294901760, %v14118_v13  ;;  %v14122_v34 = vld [vmem:[#allocation124_spill] sm:$0xff]  ;;  %v14124_v11 = vld [vmem:[#allocation111_spill] sm:$0xff] }
 0x2e3   :  { %8288 = vmatprep.subr.bf16.mxu1 %v13967_v41  ;;  %6963 = vmatprep.mubr.msk.f32.mxu1 %vm8873_vm0, %v13957_v2  ;;  %v14123_v14 = vand.u32 4294901760, %v14122_v34  ;;  %v14164_v34 = vld [vmem:[#allocation33_spill] sm:$0xff] }
 0x2e4   :  { %v7963_v52 = vpack.c.bf16 %v14119_v35, %v14117_v24 }
 0x2e5   :  { %7948 = vmatpush1.bf16.msra.mxu0 %v7947_v8  ;;  %v8301_v50 = vpack.c.bf16 %v14123_v14, %v14121_v12  ;;  %v14128_v8 = vand.u32 4294901760, %v14127_v23  ;;  %v14163_v12 = vsub.s32 0, %v14162_v27 }
 0x2e6   :  { %8290 = vmatpush3.bf16.msra.mxu1 %v8289_v47  ;;  %7950 = vmatprep.subr.bf16.mxu0 %v7949_v49  ;;  %v14129_v47 = vld [vmem:[#allocation155_spill] sm:$0xff]  ;;  %v14132_v49 = vld [vmem:[#allocation126_spill] sm:$0xff] }
 0x2e7   :  { %8291 = vmatprep.subr.bf16.mxu1 %v13967_v41  ;;  %v8304_v18 = vpack.c.bf16 %v14128_v8, %v14126_v39  ;;  %v14133_v15 = vand.u32 4294901760, %v14132_v49  ;;  %v1188_v14 = vrot.slane %v14164_v34, %v14163_v12  ;;  %v4863_v49 = vld [vmem:[#allocation8 + $0x48] sm:$0xff] }
 0x2e9   :  { %7952 = vmatpush1.bf16.msra.mxu0 %v7951_v46  ;;  %v14135_v46 = vand.u32 4294901760, %v14134_v48  ;;  %v4898_v48 = vand.u32 4294901760, %v4863_v49 }
 0x2ea   :  { %8293 = vmatpush3.bf16.msra.mxu1 %v8292_v53  ;;  %7954 = vmatprep.subr.bf16.mxu0 %v7953_v43  ;;  %v14138_v53 = vld [vmem:[#allocation150_spill] sm:$0xff]  ;;  %v14141_v43 = vld [vmem:[#allocation153_spill] sm:$0xff] }
 0x2eb   :  { %8294 = vmatprep.subr.bf16.mxu1 %v13967_v41  ;;  %v8307_v31 = vpack.c.bf16 %v14135_v46, %v14133_v15 }
 0x2ed   :  { %7956 = vmatpush1.bf16.msra.mxu0 %v7955_v0  ;;  %v14144_v0 = vld [vmem:[#allocation156_spill] sm:$0xff] }
 0x2ee   :  { %8296 = vmatpush3.bf16.msra.mxu1 %v8295_v5  ;;  %7958 = vmatprep.subr.bf16.mxu0 %v7957_v38  ;;  %v14147_v5 = vld [vmem:[#allocation159_spill] sm:$0xff] }
 0x2ef   :  { %8297 = vmatprep.subr.bf16.mxu1 %v13967_v41 }
 0x2f1   :  { %7960 = vmatpush1.bf16.msra.mxu0 %v7959_v10 }
 0x2f2   :  { %8299 = vmatpush3.bf16.msra.mxu1 %v8298_v22  ;;  %7962 = vmatprep.subr.bf16.mxu0 %v7961_v25  ;;  %v14161_v25 = vand.u32 4294901760, %v11884_v63 }
 0x2f3   :  { %8300 = vmatprep.subr.bf16.mxu1 %v13967_v41 }
 0x2f4   :  { %v6382_v37 = vpop.f32.mrb[12].mxu1 }
 0x2f5   :  { %v6383_v3 = vpop.f32.mrb[13].mxu1  ;;  %7964 = vmatpush1.bf16.msra.mxu0 %v7963_v52 }
 0x2f6   :  { %v6384_v26 = vadd.f32 %v6383_v3, %v6382_v37  ;;  %8302 = vmatpush3.bf16.msra.mxu1 %v8301_v50  ;;  %7966 = vmatprep.subr.bf16.mxu0 %v14124_v11  ;;  %v14165_v50 = vsub.s32 1, %v14162_v27  ;;  %v14166_v37 = vld [vmem:[#allocation118_spill] sm:$0xff] }
 0x2f7   :  { %8303 = vmatprep.subr.bf16.mxu1 %v13967_v41  ;;  %v1341_v3 = vadd.f32 %v14166_v37, %v1188_v14  ;;  %v14174_v37 = vld [vmem:[#allocation130_spill] sm:$0xff] }
 0x2f8   :  { %v3926_v42 = vadd.f32 %v6384_v26, %v3818_v6  ;;  %3229 = vmatmul.mubr.f32.vlgmr.msra.gmra.mrb[4].mxu0 %v14129_v47  ;;  %v14137_v6 = vld [vmem:[#allocation149_spill] sm:$0xff]  ;;  %v1192_v63 = vrot.slane %v14164_v34, %v14165_v50  ;;  %v14167_v26 = vld [vmem:[#allocation119_spill] sm:$0xff] }
 0x2f9   :  { %7968 = vmatpush1.bf16.msra.mxu0 %v14130_v56  ;;  %3331 = vmatprep.mubr.f32.mxu0 %v13957_v2 }
 0x2fa   :  { %8305 = vmatpush3.bf16.msra.mxu1 %v8304_v18  ;;  %7970 = vmatprep.subr.bf16.mxu0 %v14131_v17  ;;  %v1343_v11 = vadd.f32 %v14167_v26, %v1192_v63  ;;  %v14168_v18 = vld [vmem:[#allocation123_spill] sm:$0xff] }
 0x2fb   :  { %8306 = vmatprep.subr.bf16.mxu1 %v13967_v41  ;;  %v4862_v17 = vld [vmem:[#allocation8 + $0x40] sm:$0xff] }
 0x2fc   :  { %v4895_v15 = vand.u32 4294901760, %v4862_v17  ;;  %v14175_v26 = vld [vmem:[#allocation131_spill] sm:$0xff] }
 0x2fd   :  { %7972 = vmatpush1.bf16.msra.mxu0 %v14136_v9  ;;  %v4865_v9 = vld [vmem:[#allocation8 + $0x58] sm:$0xff] }
 0x2fe   :  { %8308 = vmatpush3.bf16.msra.mxu1 %v8307_v31  ;;  %7974 = vmatprep.subr.bf16.mxu0 %v14137_v6  ;;  %v12142_v46 = vpack.c.bf16 %v4898_v48, %v4895_v15  ;;  %v4864_v31 = vld [vmem:[#allocation8 + $0x50] sm:$0xff] }
 0x2ff   :  { %8309 = vmatprep.subr.bf16.mxu1 %v13967_v41  ;;  %v4901_v6 = vand.u32 4294901760, %v4864_v31 }
 0x301   :  { %6964 = vmatmul.mubr.f32.vlgmr.msra.gmra.mrb[18].mxu1 %v14129_v47  ;;  %7976 = vmatpush1.bf16.msra.mxu0 %v14138_v53  ;;  %v4904_v53 = vand.u32 4294901760, %v4865_v9 }
 0x302   :  { %8311 = vmatpush3.bf16.msra.mxu1 %v14139_v40  ;;  %7978 = vmatprep.subr.bf16.mxu0 %v14140_v1  ;;  %v12146_v40 = vsub.f32 %v4862_v17, %v4895_v15  ;;  %v12148_v1 = vsub.f32 %v4863_v49, %v4898_v48  ;;  %v14177_v49 = vld [vmem:[#allocation45_spill] sm:$0xff] }
 0x303   :  { %8312 = vmatprep.subr.bf16.mxu1 %v13967_v41  ;;  %6998 = vmatprep.mubr.msk.f32.mxu1 %vm8873_vm0, %v13957_v2  ;;  %v13174_v15 = vand.u32 4294901760, %v14177_v49 }
 0x305   :  { %7980 = vmatpush1.bf16.msra.mxu0 %v14141_v43  ;;  %v12150_v43 = vpack.c.bf16 %v4904_v53, %v4901_v6 }
 0x306   :  { %8314 = vmatpush3.bf16.msra.mxu1 %v14142_v32  ;;  %7982 = vmatprep.subr.bf16.mxu0 %v14143_v57  ;;  %v12152_v32 = vsub.f32 %v4864_v31, %v4901_v6  ;;  %v12154_v57 = vsub.f32 %v4865_v9, %v4904_v53  ;;  %v5014_v9 = vsub.f32 %v14177_v49, %v13174_v15 }
 0x307   :  { %8315 = vmatprep.subr.bf16.mxu1 %v13967_v41 }
 0x308   :  { %v5015_v53 = vand.u32 4294901760, %v5014_v9 }
 0x309   :  { %7984 = vmatpush1.bf16.msra.mxu0 %v14144_v0  ;;  %v4866_v0 = vld [vmem:[#allocation8 + $0x60] sm:$0xff] }
 0x30a   :  { %8317 = vmatpush3.bf16.msra.mxu1 %v14145_v44  ;;  %7986 = vmatprep.subr.bf16.mxu0 %v14146_v45  ;;  %v4867_v44 = vld [vmem:[#allocation8 + $0x68] sm:$0xff]  ;;  %v4907_v45 = vand.u32 4294901760, %v4866_v0 }
 0x30b   :  { %8318 = vmatprep.subr.bf16.mxu1 %v13967_v41 }
 0x30d   :  { %7988 = vmatpush1.bf16.msra.mxu0 %v14147_v5  ;;  %v4910_v5 = vand.u32 4294901760, %v4867_v44 }
 0x30e   :  { %8320 = vmatpush3.bf16.msra.mxu1 %v14148_v62  ;;  %7990 = vmatprep.subr.bf16.mxu0 %v14149_v30  ;;  %v4868_v30 = vld [vmem:[#allocation8 + $0x70] sm:$0xff] }
 0x30f   :  { %8321 = vmatprep.subr.bf16.mxu1 %v13967_v41  ;;  %v12158_v62 = vpack.c.bf16 %v4910_v5, %v4907_v45 }
 0x311   :  { %7992 = vmatpush1.bf16.msra.mxu0 %v14063_v58  ;;  %v14151_v58 = vld [vmem:[#allocation35_spill] sm:$0xff] }
 0x312   :  { %8323 = vmatpush3.bf16.msra.mxu1 %v14068_v51  ;;  %7994 = vmatprep.subr.bf16.mxu0 %v14069_v36  ;;  %v14150_v36 = vand.u32 4294901760, %v11862_v20  ;;  %v14157_v20 = vld [vmem:[#allocation38_spill] sm:$0xff] }
 0x313   :  { %8324 = vmatprep.subr.bf16.mxu1 %v13967_v41  ;;  %v14158_v22 = vand.u32 4294901760, %v14157_v20 }
 0x314   :  { %v6417_v38 = vpop.f32.mrb[14].mxu1 }
 0x315   :  { %v6418_v54 = vpop.f32.mrb[15].mxu1  ;;  %7996 = vmatpush1.bf16.msra.mxu0 %v14076_v28  ;;  %v14153_v28 = vld [vmem:[#allocation127_spill] sm:$0xff] }
 0x316   :  { %v6419_v21 = vadd.f32 %v6418_v54, %v6417_v38  ;;  %8326 = vmatpush3.bf16.msra.mxu1 %v11590_v60  ;;  %8477 = vmatprep.subr.bf16.mxu0 %v13967_v41  ;;  %v14152_v60 = vand.u32 4294901760, %v14151_v58  ;;  %v14154_v29 = vand.u32 4294901760, %v14153_v28  ;;  %v4869_v38 = vld [vmem:[#allocation8 + $0x78] sm:$0xff]  ;;  %v12161_v54 = vsub.f32 %v4866_v0, %v4907_v45  ;;  %v14170_v58 = vld [vmem:[#allocation40_spill] sm:$0xff]  ;;  %v14171_v28 = vld [vmem:[#allocation41_spill] sm:$0xff] }
 0x317   :  { %8327 = vmatprep.subr.bf16.mxu1 %v13967_v41  ;;  %v13173_v0 = vand.u32 4294901760, %v12146_v40 }
 0x318   :  { %v4094_v10 = vadd.f32 %v6419_v21, %v3926_v42  ;;  %3333 = vmatmul.mubr.f32.vlgmr.msra.gmra.mrb[4].mxu0 %v14129_v47  ;;  %v12094_v51 = vpack.c.bf16 %v14152_v60, %v14150_v36  ;;  %v12163_v21 = vsub.f32 %v4867_v44, %v4910_v5  ;;  %v4916_v36 = vand.u32 4294901760, %v4869_v38 }
 0x319   :  { %7243 = vmatprep.mubr.msk.f32.mxu0 %vm8873_vm0, %v13957_v2  ;;  %v4964_v60 = vand.u32 4294901760, %v14170_v58  ;;  %v13172_v44 = vand.u32 4294901760, %v12148_v1  ;;  %v5021_v5 = vsub.f32 %v12146_v40, %v13173_v0 }
 0x31a   :  { %8329 = vmatpush3.bf16.msra.mxu1 %v14084_v4  ;;  %v14155_v4 = vand.u32 4294901760, %v11872_v61  ;;  %v14159_v61 = vld [vmem:[#allocation39_spill] sm:$0xff]  ;;  %v12172_v20 = vsub.f32 %v4869_v38, %v4916_v36 }
 0x31b   :  { %8330 = vmatprep.subr.bf16.mxu1 %v13967_v41  ;;  %v14160_v19 = vand.u32 4294901760, %v14159_v61  ;;  %v5022_v38 = vand.u32 4294901760, %v5021_v5 }
 0x31c   :  { %v12103_v7 = vpack.c.bf16 %v14155_v4, %v14154_v29  ;;  %v4971_v29 = vand.u32 4294901760, %v14171_v28 }
 0x31d   :  { %v12121_v24 = vpack.c.bf16 %v14161_v25, %v14160_v19  ;;  %v14172_v19 = vld [vmem:[#allocation128_spill] sm:$0xff] }
 0x31e   :  { %8332 = vmatpush3.bf16.msra.mxu1 %v11645_v55  ;;  %v14156_v55 = vand.u32 4294901760, %v11875_v33  ;;  %v4972_v61 = vsub.f32 %v14171_v28, %v4971_v29  ;;  %v13179_v25 = vand.u32 4294901760, %v14172_v19 }
 0x31f   :  { %8333 = vmatprep.subr.bf16.mxu1 %v13967_v41 }
 0x320   :  { %v12113_v16 = vpack.c.bf16 %v14158_v22, %v14156_v55  ;;  %v4965_v22 = vsub.f32 %v14170_v58, %v4964_v60  ;;  %v4973_v27 = vand.u32 4294901760, %v4972_v61  ;;  %v4979_v12 = vsub.f32 %v14172_v19, %v13179_v25 }
 0x321   :  { %6999 = vmatmul.mubr.f32.vlgmr.msra.gmra.mrb[18].mxu1 %v14129_v47  ;;  %v14169_v47 = vld [vmem:[#allocation28_spill] sm:$0xff] }
 0x322   :  { %8335 = vmatpush3.bf16.msra.mxu1 %v12094_v51  ;;  %7033 = vmatprep.mubr.msk.f32.mxu1 %vm8873_vm0, %v13957_v2  ;;  %v4980_v50 = vand.u32 4294901760, %v4979_v12 }
 0x323   :  { %8336 = vmatprep.subr.bf16.mxu1 %v13967_v41 }
 0x326   :  { %8338 = vmatpush3.bf16.msra.mxu1 %v12103_v7 }
 0x327   :  { %8339 = vmatprep.subr.bf16.mxu1 %v13967_v41 }
 0x32a   :  { %8341 = vmatpush3.bf16.msra.mxu1 %v12113_v16 }
 0x32b   :  { %8342 = vmatprep.subr.bf16.mxu1 %v13967_v41 }
 0x32e   :  { %8344 = vmatpush3.bf16.msra.mxu1 %v12121_v24 }
 0x32f   :  { %8345 = vmatprep.subr.bf16.mxu1 %v13967_v41 }
 0x332   :  { %8347 = vmatpush3.bf16.msra.mxu1 %v12142_v46 }
 0x333   :  { %8348 = vmatprep.subr.bf16.mxu1 %v13967_v41 }
 0x334   :  { %v6452_v33 = vpop.f32.mrb[16].mxu1 }
 0x335   :  { %v6453_v13 = vpop.f32.mrb[17].mxu1 }
 0x336   :  { %v6454_v35 = vadd.f32 %v6453_v13, %v6452_v33  ;;  %8350 = vmatpush3.bf16.msra.mxu1 %v12150_v43  ;;  %v14173_v33 = vld [vmem:[#allocation129_spill] sm:$0xff] }
 0x337   :  { %8351 = vmatprep.subr.bf16.mxu1 %v13967_v41  ;;  %v13178_v13 = vand.u32 4294901760, %v14173_v33 }
 0x338   :  { %v12126_v52 = vadd.f32 %v6454_v35, %v4094_v10  ;;  %v4913_v10 = vand.u32 4294901760, %v4868_v30  ;;  %v4966_v35 = vand.u32 4294901760, %v4965_v22  ;;  %v13170_v22 = vand.u32 4294901760, %v12154_v57 }
 0x339   :  { %v4986_v34 = vsub.f32 %v14173_v33, %v13178_v13 }
 0x33a   :  { %8353 = vmatpush3.bf16.msra.mxu1 %v12158_v62  ;;  %v12168_v4 = vpack.c.bf16 %v4916_v36, %v4913_v10  ;;  %v12170_v55 = vsub.f32 %v4868_v30, %v4913_v10  ;;  %v12190_v14 = vpack.c.bf16 %v4973_v27, %v4966_v35  ;;  %v5028_v30 = vsub.f32 %v12148_v1, %v13172_v44 }
 0x33b   :  { %8354 = vmatprep.subr.bf16.mxu1 %v13967_v41  ;;  %v4987_v63 = vand.u32 4294901760, %v4986_v34  ;;  %v13171_v36 = vand.u32 4294901760, %v12152_v32  ;;  %v5042_v27 = vsub.f32 %v12154_v57, %v13170_v22 }
 0x33c   :  { %v5029_v10 = vand.u32 4294901760, %v5028_v30  ;;  %v13167_v9 = vand.u32 4294901760, %v12170_v55 }
 0x33d   :  { %v5035_v35 = vsub.f32 %v12152_v32, %v13171_v36  ;;  %v5043_v34 = vand.u32 4294901760, %v5042_v27  ;;  %v8382_v27 = vpack.c.bf16 %v14171_v28, %v14170_v58  ;;  %v14180_v58 = vand.u32 4294901760, %v14174_v37 }
 0x33e   :  { %8356 = vmatpush3.bf16.msra.mxu1 %v12168_v4  ;;  %v8370_v61 = vpack.c.bf16 %v5029_v10, %v5022_v38  ;;  %v5063_v5 = vsub.f32 %v12170_v55, %v13167_v9 }
 0x33f   :  { %8357 = vmatprep.subr.bf16.mxu1 %v13967_v41  ;;  %v5036_v12 = vand.u32 4294901760, %v5035_v35 }
 0x340   :  { %v5064_v38 = vand.u32 4294901760, %v5063_v5  ;;  %v8403_v5 = vpack.c.bf16 %v12172_v20, %v12170_v55 }
 0x34b   :  { %v2479_v59 = vpop.f32.mrb[2].mxu0 }
 0x34c   :  { %v8625_v39 = vadd.f32 %v2479_v59, %v1341_v3  ;;  %v2481_v23 = vpop.f32.mrb[3].mxu0  ;;  %v13177_v3 = vand.u32 4294901760, %v14174_v37  ;;  %v12194_v59 = vpack.c.bf16 %v4987_v63, %v4980_v50  ;;  %v13169_v50 = vand.u32 4294901760, %v12161_v54 }
 0x34d   :  { %v8629_v8 = vadd.f32 %v2481_v23, %v1343_v11  ;;  %v13176_v11 = vand.u32 4294901760, %v14175_v26  ;;  %v13168_v63 = vand.u32 4294901760, %v12163_v21 }
 0x34e   :  { %v12137_v42 = vadd.f32 %v8625_v39, %v14168_v18  ;;  %v4993_v39 = vsub.f32 %v14174_v37, %v13177_v3 }
 0x34f   :  { %v12140_v56 = vadd.f32 %v8629_v8, %v14169_v47  ;;  %v5000_v23 = vsub.f32 %v14175_v26, %v13176_v11  ;;  %v14176_v47 = vld [vmem:[#allocation44_spill] sm:$0xff] }
 0x350   :  { %v4994_v8 = vand.u32 4294901760, %v4993_v39  ;;  %v13175_v17 = vand.u32 4294901760, %v14176_v47  ;;  %v8373_v39 = vpack.c.bf16 %v5043_v34, %v5036_v12  ;;  %v8385_v12 = vpack.c.bf16 %v14173_v33, %v14172_v19 }
 0x351   :  { %v5001_v18 = vand.u32 4294901760, %v5000_v23  ;;  %v5049_v23 = vsub.f32 %v12161_v54, %v13169_v50  ;;  %v8388_v34 = vpack.c.bf16 %v14175_v26, %v14174_v37  ;;  %v14186_v37 = vand.u32 4294901760, %v12152_v32 }
 0x352   :  { %v5007_v31 = vsub.f32 %v14176_v47, %v13175_v17  ;;  %v5521_v17 = vld [vmem:[#allocation10 + $0x48] sm:$0xff] }
 0x353   :  { %v12204_v48 = vpack.c.bf16 %v5001_v18, %v4994_v8  ;;  %v5056_v8 = vsub.f32 %v12163_v21, %v13168_v63  ;;  %v5050_v18 = vand.u32 4294901760, %v5049_v23  ;;  %v8391_v23 = vpack.c.bf16 %v14177_v49, %v14176_v47 }
 0x354   :  { %v5008_v6 = vand.u32 4294901760, %v5007_v31 }
 0x355   :  { %v5057_v31 = vand.u32 4294901760, %v5056_v8  ;;  %v8394_v8 = vpack.c.bf16 %v12148_v1, %v12146_v40 }
 0x356   :  { %v8367_v45 = vpack.c.bf16 %v5015_v53, %v5008_v6  ;;  %v13166_v6 = vand.u32 4294901760, %v12172_v20 }
 0x357   :  { %v8376_v53 = vpack.c.bf16 %v5057_v31, %v5050_v18  ;;  %v8397_v18 = vpack.c.bf16 %v12154_v57, %v12152_v32  ;;  %v8400_v31 = vpack.c.bf16 %v12163_v21, %v12161_v54 }
 0x358   :  { %v5070_v30 = vsub.f32 %v12172_v20, %v13166_v6 }
 0x35a   :  { %v5071_v10 = vand.u32 4294901760, %v5070_v30 }
 0x35c   :  { %v8379_v35 = vpack.c.bf16 %v5071_v10, %v5064_v38 }
 0x3eb   :  { %v3334_v30 = vpop.f32.mrb[4].mxu0 }
 0x3ec   :  { %v8627_v38 = vadd.f32 %v12137_v42, %v3334_v30  ;;  %v3336_v10 = vpop.f32.mrb[5].mxu0 }
 0x3ed   :  { %v8631_v6 = vadd.f32 %v12140_v56, %v3336_v10  ;;  %v5519_v10 = vld [vmem:[#allocation10 + $0x38] sm:$0xff] }
 0x3ef   :  { %v12262_v9 = vadd.f32 %v8631_v6, %v8627_v38  ;;  %v4846_v63 = vrot.slane %v8631_v6, 6 }
 0x3f1   :  { %v4849_v50 = vsel %vm4848_vm3, %v8627_v38, %v4846_v63  ;;  %v5518_v38 = vld [vmem:[#allocation10 + $0x30] sm:$0xff] }
 0x3f2   :  { %v12265_v22 = vand.u32 4294901760, %v4849_v50 }
 0x3f4   :  { %v4838_v36 = vpop.f32.mrb[18].mxu1  ;;  %v12268_v44 = vsub.f32 %v4849_v50, %v12265_v22  ;;  %v5517_v50 = vld [vmem:[#allocation10 + $0x28] sm:$0xff] }
 0x3f5   :  { %v12271_v0 = vadd.f32 %v4838_v36, %v12126_v52  ;;  %v7000_v15 = vpop.f32.mrb[19].mxu1  ;;  %v5512_v52 = vld [vmem:[#allocation10] sm:$0xff] }
 0x3f6   :  { %v4953_v42 = vand.u32 4294901760, %v12268_v44  ;;  %v5529_v15 = vand.u32 4294901760, %v5512_v52 }
 0x3f7   :  { %v6169_v56 = vmul.f32 %v12271_v0, %v12271_v0 }
 0x3f8   :  { %v4954_v6 = vsub.f32 %v12268_v44, %v4953_v42 }
 0x3f9   :  { %v6170_v63 = vsel %vm4848_vm3, %v6169_v56, 0.0  ;;  %v5520_v56 = vld [vmem:[#allocation10 + $0x40] sm:$0xff] }
 0x3fa   :  { %6171 = vadd.xlane.f32.xlu0 %v6170_v63  ;;  %v4955_v30 = vand.u32 4294901760, %v4954_v6 }
 0x3fc   :  { %7034 = vmatmul.mubr.f32.vlgmr.msra.gmra.mrb[20].mxu1 %v4955_v30 }
 0x3fd   :  { %8359 = vmatpush3.bf16.msra.mxu1 %v12190_v14  ;;  %7068 = vmatprep.mubr.msk.f32.mxu1 %vm8873_vm0, %v13957_v2  ;;  %v5513_v14 = vld [vmem:[#allocation10 + $0x8] sm:$0xff] }
 0x3fe   :  { %8360 = vmatprep.subr.bf16.mxu1 %v13967_v41 }
 0x401   :  { %8362 = vmatpush3.bf16.msra.mxu1 %v12194_v59  ;;  %v5514_v59 = vld [vmem:[#allocation10 + $0x10] sm:$0xff] }
 0x402   :  { %8363 = vmatprep.subr.bf16.mxu1 %v13967_v41  ;;  %v5535_v36 = vand.u32 4294901760, %v5514_v59 }
 0x404   :  { %v12303_v30 = vsub.f32 %v5514_v59, %v5535_v36  ;;  %v5556_v59 = vand.u32 4294901760, %v5521_v17 }
 0x405   :  { %8365 = vmatpush3.bf16.msra.mxu1 %v12204_v48  ;;  %v5532_v48 = vand.u32 4294901760, %v5513_v14 }
 0x406   :  { %8366 = vmatprep.subr.bf16.mxu1 %v13967_v41 }
 0x407   :  { %v12297_v6 = vpack.c.bf16 %v5532_v48, %v5529_v15  ;;  %v12301_v63 = vsub.f32 %v5513_v14, %v5532_v48  ;;  %v5550_v14 = vand.u32 4294901760, %v5519_v10 }
 0x409   :  { %8368 = vmatpush3.bf16.msra.mxu1 %v8367_v45  ;;  %v5515_v45 = vld [vmem:[#allocation10 + $0x18] sm:$0xff]  ;;  %8479 = vmatpush3.bf16.msra.mxu0 %v12297_v6 }
 0x40a   :  { %8369 = vmatprep.subr.bf16.mxu1 %v13967_v41  ;;  %8480 = vmatprep.subr.bf16.mxu0 %v13967_v41 }
 0x40d   :  { %8371 = vmatpush3.bf16.msra.mxu1 %v8370_v61  ;;  %v5516_v61 = vld [vmem:[#allocation10 + $0x20] sm:$0xff] }
 0x40e   :  { %8372 = vmatprep.subr.bf16.mxu1 %v13967_v41 }
 0x411   :  { %8374 = vmatpush3.bf16.msra.mxu1 %v8373_v39  ;;  %v5538_v39 = vand.u32 4294901760, %v5515_v45 }
 0x412   :  { %8375 = vmatprep.subr.bf16.mxu1 %v13967_v41 }
 0x413   :  { %v12305_v11 = vpack.c.bf16 %v5538_v39, %v5535_v36  ;;  %v12307_v3 = vsub.f32 %v5515_v45, %v5538_v39  ;;  %v12321_v45 = vsub.f32 %v5519_v10, %v5550_v14 }
 0x415   :  { %8377 = vmatpush3.bf16.msra.mxu1 %v8376_v53  ;;  %v5541_v53 = vand.u32 4294901760, %v5516_v61  ;;  %8482 = vmatpush3.bf16.msra.mxu0 %v12305_v11 }
 0x416   :  { %8378 = vmatprep.subr.bf16.mxu1 %v13967_v41  ;;  %8483 = vmatprep.subr.bf16.mxu0 %v13967_v41 }
 0x417   :  { %v12309_v13 = vsub.f32 %v5516_v61, %v5541_v53  ;;  %v12325_v61 = vsub.f32 %v5521_v17, %v5556_v59 }
 0x419   :  { %8380 = vmatpush3.bf16.msra.mxu1 %v8379_v35  ;;  %v5544_v35 = vand.u32 4294901760, %v5517_v50 }
 0x41a   :  { %8381 = vmatprep.subr.bf16.mxu1 %v13967_v41 }
 0x41b   :  { %v12315_v25 = vsub.f32 %v5517_v50, %v5544_v35 }
 0x41c   :  { %7069 = vmatmul.mubr.f32.vlgmr.msra.gmra.mrb[20].mxu1 %v12265_v22 }
 0x41d   :  { %8383 = vmatpush3.bf16.msra.mxu1 %v8382_v27  ;;  %7103 = vmatprep.mubr.msk.f32.mxu1 %vm8873_vm0, %v13957_v2  ;;  %v12299_v27 = vsub.f32 %v5512_v52, %v5529_v15  ;;  %v5547_v52 = vand.u32 4294901760, %v5518_v38  ;;  %v5553_v15 = vand.u32 4294901760, %v5520_v56 }
 0x41e   :  { %8384 = vmatprep.subr.bf16.mxu1 %v13967_v41 }
 0x41f   :  { %v12319_v48 = vsub.f32 %v5518_v38, %v5547_v52  ;;  %v12323_v36 = vsub.f32 %v5520_v56, %v5553_v15  ;;  %v12339_v17 = vpack.c.bf16 %v5550_v14, %v5547_v52 }
 0x421   :  { %8386 = vmatpush3.bf16.msra.mxu1 %v8385_v12  ;;  %v12331_v12 = vpack.c.bf16 %v5544_v35, %v5541_v53  ;;  %v5629_v35 = vand.u32 4294901760, %v12301_v63 }
 0x422   :  { %8387 = vmatprep.subr.bf16.mxu1 %v13967_v41 }
 0x423   :  { %8485 = vmatpush3.bf16.msra.mxu0 %v12331_v12  ;;  %v5630_v56 = vsub.f32 %v12301_v63, %v5629_v35 }
 0x424   :  { %8486 = vmatprep.subr.bf16.mxu0 %v13967_v41 }
 0x425   :  { %8389 = vmatpush3.bf16.msra.mxu1 %v8388_v34  ;;  %v12347_v34 = vpack.c.bf16 %v5556_v59, %v5553_v15 }
 0x426   :  { %8390 = vmatprep.subr.bf16.mxu1 %v13967_v41 }
 0x427   :  { %8488 = vmatpush3.bf16.msra.mxu0 %v12339_v17 }
 0x428   :  { %8489 = vmatprep.subr.bf16.mxu0 %v13967_v41 }
 0x429   :  { %8392 = vmatpush3.bf16.msra.mxu1 %v8391_v23  ;;  %v8430_v23 = vpack.c.bf16 %v4971_v29, %v4964_v60  ;;  %v14181_v60 = vand.u32 4294901760, %v14175_v26  ;;  %v14182_v29 = vand.u32 4294901760, %v14176_v47  ;;  %v14187_v26 = vand.u32 4294901760, %v12154_v57  ;;  %v5525_v57 = vld [vmem:[#allocation10 + $0x68] sm:$0xff] }
 0x42a   :  { %8393 = vmatprep.subr.bf16.mxu1 %v13967_v41  ;;  %v14188_v47 = vand.u32 4294901760, %v12161_v54  ;;  %v5568_v54 = vand.u32 4294901760, %v5525_v57 }
 0x42b   :  { %8491 = vmatpush3.bf16.msra.mxu0 %v12347_v34  ;;  %v8436_v28 = vpack.c.bf16 %v14181_v60, %v14180_v58  ;;  %v8445_v50 = vpack.c.bf16 %v14187_v26, %v14186_v37  ;;  %v5636_v58 = vand.u32 4294901760, %v12303_v30  ;;  %v5643_v60 = vand.u32 4294901760, %v12307_v3 }
 0x42c   :  { %8492 = vmatprep.subr.bf16.mxu0 %v13967_v41  ;;  %v12471_v59 = vsub.f32 %v5525_v57, %v5568_v54 }
 0x42d   :  { %8395 = vmatpush3.bf16.msra.mxu1 %v8394_v8  ;;  %v14178_v8 = vand.u32 4294901760, %v14172_v19  ;;  %v14183_v19 = vand.u32 4294901760, %v14177_v49  ;;  %v14189_v49 = vand.u32 4294901760, %v12163_v21  ;;  %v5526_v21 = vld [vmem:[#allocation10 + $0x70] sm:$0xff] }
 0x42e   :  { %8396 = vmatprep.subr.bf16.mxu1 %v13967_v41 }
 0x42f   :  { %v8448_v39 = vpack.c.bf16 %v14189_v49, %v14188_v47 }
 0x431   :  { %8398 = vmatpush3.bf16.msra.mxu1 %v8397_v18  ;;  %v14179_v18 = vand.u32 4294901760, %v14173_v33  ;;  %v8439_v33 = vpack.c.bf16 %v14183_v19, %v14182_v29  ;;  %v5637_v29 = vsub.f32 %v12303_v30, %v5636_v58  ;;  %v5644_v19 = vsub.f32 %v12307_v3, %v5643_v60 }
 0x432   :  { %8399 = vmatprep.subr.bf16.mxu1 %v13967_v41 }
 0x435   :  { %8401 = vmatpush3.bf16.msra.mxu1 %v8400_v31  ;;  %v8433_v31 = vpack.c.bf16 %v14179_v18, %v14178_v8 }
 0x436   :  { %8402 = vmatprep.subr.bf16.mxu1 %v13967_v41 }
 0x439   :  { %8404 = vmatpush3.bf16.msra.mxu1 %v8403_v5  ;;  %v14185_v5 = vand.u32 4294901760, %v12148_v1  ;;  %v14191_v1 = vand.u32 4294901760, %v12172_v20 }
 0x43a   :  { %8405 = vmatprep.subr.bf16.mxu1 %v13967_v41 }
 0x43c   :  { %7104 = vmatmul.mubr.f32.vlgmr.msra.gmra.mrb[20].mxu1 %v12268_v44  ;;  %v14184_v44 = vand.u32 4294901760, %v12146_v40  ;;  %v14190_v40 = vand.u32 4294901760, %v12170_v55  ;;  %v5571_v55 = vand.u32 4294901760, %v5526_v21 }
 0x43d   :  { %8407 = vmatpush3.bf16.msra.mxu1 %v12094_v51  ;;  %7138 = vmatprep.mubr.msk.f32.mxu1 %vm8873_vm0, %v13957_v2 }
 0x43e   :  { %8408 = vmatprep.subr.bf16.mxu1 %v13967_v41  ;;  %v8451_v53 = vpack.c.bf16 %v14191_v1, %v14190_v40  ;;  %v13188_v40 = vand.u32 4294901760, %v12321_v45 }
 0x441   :  { %8410 = vmatpush3.bf16.msra.mxu1 %v12103_v7 }
 0x442   :  { %8411 = vmatprep.subr.bf16.mxu1 %v13967_v41 }
 0x445   :  { %8413 = vmatpush3.bf16.msra.mxu1 %v12113_v16 }
 0x446   :  { %8414 = vmatprep.subr.bf16.mxu1 %v13967_v41 }
 0x449   :  { %8416 = vmatpush3.bf16.msra.mxu1 %v12121_v24 }
 0x44a   :  { %8417 = vmatprep.subr.bf16.mxu1 %v13967_v41 }
 0x44d   :  { %8419 = vmatpush3.bf16.msra.mxu1 %v12142_v46 }
 0x44e   :  { %8420 = vmatprep.subr.bf16.mxu1 %v13967_v41 }
 0x451   :  { %8422 = vmatpush3.bf16.msra.mxu1 %v12150_v43 }
 0x452   :  { %8423 = vmatprep.subr.bf16.mxu1 %v13967_v41 }
 0x455   :  { %8425 = vmatpush3.bf16.msra.mxu1 %v12158_v62 }
 0x456   :  { %8426 = vmatprep.subr.bf16.mxu1 %v13967_v41 }
 0x459   :  { %8428 = vmatpush3.bf16.msra.mxu1 %v12168_v4 }
 0x45a   :  { %8429 = vmatprep.subr.bf16.mxu1 %v13967_v41 }
 0x45c   :  { %7139 = vmatmul.mubr.f32.vlgmr.msra.gmra.mrb[20].mxu1 %v4953_v42  ;;  %v8442_v42 = vpack.c.bf16 %v14185_v5, %v14184_v44  ;;  %v5657_v44 = vand.u32 4294901760, %v12315_v25  ;;  %v5638_v5 = vand.u32 4294901760, %v5637_v29 }
 0x45d   :  { %8431 = vmatpush3.bf16.msra.mxu1 %v8430_v23  ;;  %7173 = vmatprep.mubr.msk.f32.mxu1 %vm8873_vm0, %v13957_v2  ;;  %v12474_v23 = vsub.f32 %v5526_v21, %v5571_v55 }
 0x45e   :  { %8432 = vmatprep.subr.bf16.mxu1 %v13967_v41  ;;  %v5658_v26 = vsub.f32 %v12315_v25, %v5657_v44 }
 0x460   :  { %v5659_v49 = vand.u32 4294901760, %v5658_v26 }
 0x461   :  { %8434 = vmatpush3.bf16.msra.mxu1 %v8433_v31  ;;  %v5631_v31 = vand.u32 4294901760, %v5630_v56 }
 0x462   :  { %8435 = vmatprep.subr.bf16.mxu1 %v13967_v41 }
 0x465   :  { %8437 = vmatpush3.bf16.msra.mxu1 %v8436_v28 }
 0x466   :  { %8438 = vmatprep.subr.bf16.mxu1 %v13967_v41 }
 0x469   :  { %8440 = vmatpush3.bf16.msra.mxu1 %v8439_v33  ;;  %v5650_v33 = vand.u32 4294901760, %v12309_v13 }
 0x46a   :  { %8441 = vmatprep.subr.bf16.mxu1 %v13967_v41 }
 0x46b   :  { %v5651_v37 = vsub.f32 %v12309_v13, %v5650_v33 }
 0x46d   :  { %8443 = vmatpush3.bf16.msra.mxu1 %v8442_v42  ;;  %v5645_v42 = vand.u32 4294901760, %v5644_v19  ;;  %v5652_v47 = vand.u32 4294901760, %v5651_v37 }
 0x46e   :  { %8444 = vmatprep.subr.bf16.mxu1 %v13967_v41 }
 0x46f   :  { %v8508_v1 = vpack.c.bf16 %v5659_v49, %v5652_v47 }
 0x471   :  { %8446 = vmatpush3.bf16.msra.mxu1 %v8445_v50  ;;  %v8505_v50 = vpack.c.bf16 %v5645_v42, %v5638_v5  ;;  %v13182_v5 = vand.u32 4294901760, %v12471_v59 }
 0x472   :  { %8447 = vmatprep.subr.bf16.mxu1 %v13967_v41 }
 0x473   :  { %v5714_v26 = vsub.f32 %v12471_v59, %v13182_v5 }
 0x475   :  { %8449 = vmatpush3.bf16.msra.mxu1 %v8448_v39  ;;  %v5664_v39 = vand.u32 4294901760, %v12319_v48  ;;  %v5715_v49 = vand.u32 4294901760, %v5714_v26 }
 0x476   :  { %8450 = vmatprep.subr.bf16.mxu1 %v13967_v41 }
 0x479   :  { %8452 = vmatpush3.bf16.msra.mxu1 %v8451_v53  ;;  %v5665_v53 = vsub.f32 %v12319_v48, %v5664_v39 }
 0x47a   :  { %8453 = vmatprep.subr.bf16.mxu1 %v13967_v41 }
 0x47c   :  { %7174 = vmatmul.mubr.f32.vlgmr.msra.gmra.mrb[20].mxu1 %v12265_v22 }
 0x47d   :  { %8455 = vmatpush3.bf16.msra.mxu1 %v12094_v51  ;;  %7208 = vmatprep.mubr.msk.f32.mxu1 %vm8873_vm0, %v13957_v2  ;;  %v5522_v51 = vld [vmem:[#allocation10 + $0x50] sm:$0xff] }
 0x47e   :  { %8456 = vmatprep.subr.bf16.mxu1 %v13967_v41 }
 0x481   :  { %8458 = vmatpush3.bf16.msra.mxu1 %v12103_v7  ;;  %v5523_v7 = vld [vmem:[#allocation10 + $0x58] sm:$0xff] }
 0x482   :  { %8459 = vmatprep.subr.bf16.mxu1 %v13967_v41 }
 0x485   :  { %8461 = vmatpush3.bf16.msra.mxu1 %v12113_v16  ;;  %v5559_v16 = vand.u32 4294901760, %v5522_v51 }
 0x486   :  { %8462 = vmatprep.subr.bf16.mxu1 %v13967_v41 }
 0x487   :  { %v12465_v52 = vsub.f32 %v5522_v51, %v5559_v16  ;;  %v5672_v51 = vsub.f32 %v12321_v45, %v13188_v40 }
 0x489   :  { %8464 = vmatpush3.bf16.msra.mxu1 %v12121_v24  ;;  %v5562_v24 = vand.u32 4294901760, %v5523_v7 }
 0x48a   :  { %8465 = vmatprep.subr.bf16.mxu1 %v13967_v41 }
 0x48b   :  { %v12447_v32 = vpack.c.bf16 %v5562_v24, %v5559_v16  ;;  %v12467_v14 = vsub.f32 %v5523_v7, %v5562_v24  ;;  %v5666_v7 = vand.u32 4294901760, %v5665_v53  ;;  %v5673_v16 = vand.u32 4294901760, %v5672_v51 }
 0x48c   :  { %v13187_v24 = vand.u32 4294901760, %v12323_v36  ;;  %v13181_v53 = vand.u32 4294901760, %v12474_v23 }
 0x48d   :  { %8467 = vmatpush3.bf16.msra.mxu1 %v12142_v46  ;;  %v5524_v46 = vld [vmem:[#allocation10 + $0x60] sm:$0xff]  ;;  %8494 = vmatpush3.bf16.msra.mxu0 %v12447_v32  ;;  %v8511_v57 = vpack.c.bf16 %v5673_v16, %v5666_v7  ;;  %v8541_v26 = vpack.c.bf16 %v12467_v14, %v12465_v52 }
 0x48e   :  { %8468 = vmatprep.subr.bf16.mxu1 %v13967_v41  ;;  %8495 = vmatprep.subr.bf16.mxu0 %v13967_v41  ;;  %v5721_v16 = vsub.f32 %v12474_v23, %v13181_v53 }
 0x491   :  { %8470 = vmatpush3.bf16.msra.mxu1 %v12150_v43  ;;  %v5565_v43 = vand.u32 4294901760, %v5524_v46 }
 0x492   :  { %8471 = vmatprep.subr.bf16.mxu1 %v13967_v41 }
 0x493   :  { %v12469_v15 = vsub.f32 %v5524_v46, %v5565_v43  ;;  %v13186_v46 = vand.u32 4294901760, %v12325_v61 }
 0x495   :  { %8473 = vmatpush3.bf16.msra.mxu1 %v12158_v62  ;;  %v12451_v62 = vpack.c.bf16 %v5568_v54, %v5565_v43  ;;  %v5679_v43 = vsub.f32 %v12323_v36, %v13187_v24  ;;  %v5686_v54 = vsub.f32 %v12325_v61, %v13186_v46  ;;  %v13183_v19 = vand.u32 4294901760, %v12469_v15 }
 0x496   :  { %8474 = vmatprep.subr.bf16.mxu1 %v13967_v41 }
 0x497   :  { %8497 = vmatpush3.bf16.msra.mxu0 %v12451_v62  ;;  %v5680_v21 = vand.u32 4294901760, %v5679_v43  ;;  %v5707_v37 = vsub.f32 %v12469_v15, %v13183_v19 }
 0x498   :  { %8498 = vmatprep.subr.bf16.mxu0 %v13967_v41 }
 0x499   :  { %8476 = vmatpush3.bf16.msra.mxu1 %v12168_v4  ;;  %v5527_v4 = vld [vmem:[#allocation10 + $0x78] sm:$0xff]  ;;  %v5708_v47 = vand.u32 4294901760, %v5707_v37  ;;  %v8538_v37 = vpack.c.bf16 %v12325_v61, %v12323_v36 }
 0x49a   :  { %v5574_v20 = vand.u32 4294901760, %v5527_v4 }
 0x49b   :  { %v8520_v7 = vpack.c.bf16 %v5715_v49, %v5708_v47  ;;  %v8544_v47 = vpack.c.bf16 %v12471_v59, %v12469_v15 }
 0x49c   :  { %7209 = vmatmul.mubr.f32.vlgmr.msra.gmra.mrb[20].mxu1 %v12265_v22  ;;  %v5622_v22 = vand.u32 4294901760, %v12299_v27  ;;  %v12457_v38 = vpack.c.bf16 %v5574_v20, %v5571_v55  ;;  %v12476_v8 = vsub.f32 %v5527_v4, %v5574_v20  ;;  %v5687_v4 = vand.u32 4294901760, %v5686_v54 }
 0x49d   :  { %v13185_v55 = vand.u32 4294901760, %v12465_v52  ;;  %v13184_v20 = vand.u32 4294901760, %v12467_v14  ;;  %v5722_v54 = vand.u32 4294901760, %v5721_v16  ;;  %v14192_v16 = vld [vmem:[#allocation152_spill] sm:$0xff] }
 0x49e   :  { %v5623_v10 = vsub.f32 %v12299_v27, %v5622_v22  ;;  %8500 = vmatpush3.bf16.msra.mxu0 %v12457_v38  ;;  %v13180_v51 = vand.u32 4294901760, %v12476_v8  ;;  %v8547_v49 = vpack.c.bf16 %v12476_v8, %v12474_v23 }
 0x49f   :  { %8501 = vmatprep.subr.bf16.mxu0 %v13967_v41  ;;  %v5693_v56 = vsub.f32 %v12465_v52, %v13185_v55 }
 0x4a0   :  { %v5624_v18 = vand.u32 4294901760, %v5623_v10  ;;  %v8514_v10 = vpack.c.bf16 %v5687_v4, %v5680_v21  ;;  %v5728_v43 = vsub.f32 %v12476_v8, %v13180_v51 }
 0x4a2   :  { %v12481_v28 = vpack.c.bf16 %v5631_v31, %v5624_v18  ;;  %v5700_v18 = vsub.f32 %v12467_v14, %v13184_v20  ;;  %v5694_v31 = vand.u32 4294901760, %v5693_v56  ;;  %v5729_v21 = vand.u32 4294901760, %v5728_v43 }
 0x4a3   :  { %v8526_v56 = vpack.c.bf16 %v12301_v63, %v12299_v27  ;;  %v4843_v43 = vmul.f32 %v14192_v16, %v14192_v16  ;;  %v8580_v27 = vpack.c.bf16 %v5657_v44, %v5650_v33  ;;  %v14193_v63 = vand.u32 4294901760, %v12321_v45 }
 0x4a4   :  { %v5701_v29 = vand.u32 4294901760, %v5700_v18  ;;  %v8523_v4 = vpack.c.bf16 %v5729_v21, %v5722_v54  ;;  %v8529_v18 = vpack.c.bf16 %v12307_v3, %v12303_v30  ;;  %v14194_v30 = vand.u32 4294901760, %v12323_v36 }
 0x4a5   :  { %v4844_v54 = vsub.f32 1.0, %v4843_v43  ;;  %v8583_v3 = vpack.c.bf16 %v14193_v63, %v5664_v39  ;;  %v14200_v36 = vand.u32 4294901760, %v12474_v23 }
 0x4a6   :  { %v8517_v42 = vpack.c.bf16 %v5701_v29, %v5694_v31  ;;  %v8532_v31 = vpack.c.bf16 %v12315_v25, %v12309_v13  ;;  %v8535_v29 = vpack.c.bf16 %v12321_v45, %v12319_v48  ;;  %v14196_v25 = vand.u32 4294901760, %v12465_v52  ;;  %v6172_v52 = vpop.xlane.xlu0 %6171 }
 0x4a7   :  { %v4851_v21 = vrot.slane %v4844_v54, 6  ;;  %v14197_v13 = vand.u32 4294901760, %v12467_v14  ;;  %v14198_v48 = vand.u32 4294901760, %v12469_v15  ;;  %v14199_v45 = vand.u32 4294901760, %v12471_v59 }
 0x4a8   :  { %8719 = vrsqrt.f32 %v6172_v52  ;;  %vm6175_vm4 = vcmp.eq.f32.partialorder %v6172_v52, inf  ;;  %v6178_v14 = vand.u32 2147483648, %v6172_v52  ;;  %vm6177_vm5 = vcmp.eq.f32.partialorder %v6172_v52, 0.0 }
 0x4a9   :  { %v4853_v51 = vsel %vm4848_vm3, %v4844_v54, %v4851_v21 }
 0x56f   :  { %v5507_v53 = vpop.f32.mrb[20].mxu1 }
 0x570   :  { %v5511_v5 = vmul.f32 %v5507_v53, %v4853_v51  ;;  %v7210_v19 = vpop.f32.mrb[21].mxu1 }
 0x572   :  { %v12556_v20 = vand.u32 4294901760, %v5511_v5 }
 0x574   :  { %v5610_v55 = vsub.f32 %v5511_v5, %v12556_v20 }
 0x576   :  { %v5611_v46 = vand.u32 4294901760, %v5610_v55 }
 0x578   :  { %v5612_v24 = vsub.f32 %v5610_v55, %v5611_v46 }
 0x57a   :  { %v5613_v40 = vand.u32 4294901760, %v5612_v24 }
 0x57c   :  { %7244 = vmatmul.mubr.f32.vlgmr.msra.gmra.mrb[6].mxu0 %v5613_v40 }
 0x57d   :  { %8503 = vmatpush3.bf16.msra.mxu0 %v12481_v28  ;;  %7278 = vmatprep.mubr.msk.f32.mxu0 %vm8873_vm0, %v13957_v2  ;;  %v8574_v28 = vpack.c.bf16 %v5629_v35, %v5622_v22  ;;  %v14195_v22 = vand.u32 4294901760, %v12325_v61  ;;  %v14201_v61 = vand.u32 4294901760, %v12476_v8 }
 0x57e   :  { %8504 = vmatprep.subr.bf16.mxu0 %v13967_v41 }
 0x57f   :  { %v8586_v35 = vpack.c.bf16 %v14195_v22, %v14194_v30  ;;  %v8595_v33 = vpack.c.bf16 %v14201_v61, %v14200_v36 }
 0x581   :  { %8506 = vmatpush3.bf16.msra.mxu0 %v8505_v50  ;;  %v8577_v50 = vpack.c.bf16 %v5643_v60, %v5636_v58  ;;  %v8589_v58 = vpack.c.bf16 %v14197_v13, %v14196_v25  ;;  %v8592_v60 = vpack.c.bf16 %v14199_v45, %v14198_v48 }
 0x582   :  { %8507 = vmatprep.subr.bf16.mxu0 %v13967_v41 }
 0x585   :  { %8509 = vmatpush3.bf16.msra.mxu0 %v8508_v1 }
 0x586   :  { %8510 = vmatprep.subr.bf16.mxu0 %v13967_v41 }
 0x589   :  { %8512 = vmatpush3.bf16.msra.mxu0 %v8511_v57 }
 0x58a   :  { %8513 = vmatprep.subr.bf16.mxu0 %v13967_v41 }
 0x58d   :  { %8515 = vmatpush3.bf16.msra.mxu0 %v8514_v10 }
 0x58e   :  { %8516 = vmatprep.subr.bf16.mxu0 %v13967_v41 }
 0x591   :  { %8518 = vmatpush3.bf16.msra.mxu0 %v8517_v42 }
 0x592   :  { %8519 = vmatprep.subr.bf16.mxu0 %v13967_v41 }
 0x595   :  { %8521 = vmatpush3.bf16.msra.mxu0 %v8520_v7 }
 0x596   :  { %8522 = vmatprep.subr.bf16.mxu0 %v13967_v41 }
 0x599   :  { %8524 = vmatpush3.bf16.msra.mxu0 %v8523_v4 }
 0x59a   :  { %8525 = vmatprep.subr.bf16.mxu0 %v13967_v41 }
 0x59c   :  { %7279 = vmatmul.mubr.f32.vlgmr.msra.gmra.mrb[6].mxu0 %v12556_v20 }
 0x59d   :  { %8527 = vmatpush3.bf16.msra.mxu0 %v8526_v56  ;;  %7313 = vmatprep.mubr.msk.f32.mxu0 %vm8873_vm0, %v13957_v2 }
 0x59e   :  { %8528 = vmatprep.subr.bf16.mxu0 %v13967_v41 }
 0x5a1   :  { %8530 = vmatpush3.bf16.msra.mxu0 %v8529_v18 }
 0x5a2   :  { %8531 = vmatprep.subr.bf16.mxu0 %v13967_v41 }
 0x5a5   :  { %8533 = vmatpush3.bf16.msra.mxu0 %v8532_v31 }
 0x5a6   :  { %8534 = vmatprep.subr.bf16.mxu0 %v13967_v41 }
 0x5a9   :  { %8536 = vmatpush3.bf16.msra.mxu0 %v8535_v29 }
 0x5aa   :  { %8537 = vmatprep.subr.bf16.mxu0 %v13967_v41 }
 0x5ad   :  { %8539 = vmatpush3.bf16.msra.mxu0 %v8538_v37 }
 0x5ae   :  { %8540 = vmatprep.subr.bf16.mxu0 %v13967_v41 }
 0x5b1   :  { %8542 = vmatpush3.bf16.msra.mxu0 %v8541_v26 }
 0x5b2   :  { %8543 = vmatprep.subr.bf16.mxu0 %v13967_v41 }
 0x5b5   :  { %8545 = vmatpush3.bf16.msra.mxu0 %v8544_v47 }
 0x5b6   :  { %8546 = vmatprep.subr.bf16.mxu0 %v13967_v41 }
 0x5b9   :  { %8548 = vmatpush3.bf16.msra.mxu0 %v8547_v49 }
 0x5ba   :  { %8549 = vmatprep.subr.bf16.mxu0 %v13967_v41 }
 0x5bc   :  { %7314 = vmatmul.mubr.f32.vlgmr.msra.gmra.mrb[6].mxu0 %v5610_v55 }
 0x5bd   :  { %8551 = vmatpush3.bf16.msra.mxu0 %v12297_v6  ;;  %7348 = vmatprep.mubr.msk.f32.mxu0 %vm8873_vm0, %v13957_v2 }
 0x5be   :  { %8552 = vmatprep.subr.bf16.mxu0 %v13967_v41 }
 0x5c1   :  { %8554 = vmatpush3.bf16.msra.mxu0 %v12305_v11 }
 0x5c2   :  { %8555 = vmatprep.subr.bf16.mxu0 %v13967_v41 }
 0x5c5   :  { %8557 = vmatpush3.bf16.msra.mxu0 %v12331_v12 }
 0x5c6   :  { %8558 = vmatprep.subr.bf16.mxu0 %v13967_v41 }
 0x5c9   :  { %8560 = vmatpush3.bf16.msra.mxu0 %v12339_v17 }
 0x5ca   :  { %8561 = vmatprep.subr.bf16.mxu0 %v13967_v41 }
 0x5cd   :  { %8563 = vmatpush3.bf16.msra.mxu0 %v12347_v34 }
 0x5ce   :  { %8564 = vmatprep.subr.bf16.mxu0 %v13967_v41 }
 0x5d1   :  { %8566 = vmatpush3.bf16.msra.mxu0 %v12447_v32 }
 0x5d2   :  { %8567 = vmatprep.subr.bf16.mxu0 %v13967_v41 }
 0x5d5   :  { %8569 = vmatpush3.bf16.msra.mxu0 %v12451_v62 }
 0x5d6   :  { %8570 = vmatprep.subr.bf16.mxu0 %v13967_v41 }
 0x5d9   :  { %8572 = vmatpush3.bf16.msra.mxu0 %v12457_v38 }
 0x5da   :  { %8573 = vmatprep.subr.bf16.mxu0 %v13967_v41 }
 0x5dc   :  { %7349 = vmatmul.mubr.f32.vlgmr.msra.gmra.mrb[6].mxu0 %v5611_v46 }
 0x5dd   :  { %8575 = vmatpush3.bf16.msra.mxu0 %v8574_v28  ;;  %7383 = vmatprep.mubr.msk.f32.mxu0 %vm8873_vm0, %v13957_v2 }
 0x5de   :  { %8576 = vmatprep.subr.bf16.mxu0 %v13967_v41 }
 0x5e1   :  { %8578 = vmatpush3.bf16.msra.mxu0 %v8577_v50 }
 0x5e2   :  { %8579 = vmatprep.subr.bf16.mxu0 %v13967_v41 }
 0x5e5   :  { %8581 = vmatpush3.bf16.msra.mxu0 %v8580_v27 }
 0x5e6   :  { %8582 = vmatprep.subr.bf16.mxu0 %v13967_v41 }
 0x5e9   :  { %8584 = vmatpush3.bf16.msra.mxu0 %v8583_v3 }
 0x5ea   :  { %8585 = vmatprep.subr.bf16.mxu0 %v13967_v41 }
 0x5ed   :  { %8587 = vmatpush3.bf16.msra.mxu0 %v8586_v35 }
 0x5ee   :  { %8588 = vmatprep.subr.bf16.mxu0 %v13967_v41 }
 0x5f1   :  { %8590 = vmatpush3.bf16.msra.mxu0 %v8589_v58 }
 0x5f2   :  { %8591 = vmatprep.subr.bf16.mxu0 %v13967_v41 }
 0x5f5   :  { %8593 = vmatpush3.bf16.msra.mxu0 %v8592_v60 }
 0x5f6   :  { %8594 = vmatprep.subr.bf16.mxu0 %v13967_v41 }
 0x5f9   :  { %8596 = vmatpush3.bf16.msra.mxu0 %v8595_v33 }
 0x5fa   :  { %8597 = vmatprep.subr.bf16.mxu0 %v13967_v41 }
 0x5fc   :  { %7384 = vmatmul.mubr.f32.vlgmr.msra.gmra.mrb[6].mxu0 %v12556_v20 }
 0x5fd   :  { %8599 = vmatpush3.bf16.msra.mxu0 %v12297_v6  ;;  %7418 = vmatprep.mubr.msk.f32.mxu0 %vm8873_vm0, %v13957_v2 }
 0x5fe   :  { %8600 = vmatprep.subr.bf16.mxu0 %v13967_v41 }
 0x601   :  { %8602 = vmatpush3.bf16.msra.mxu0 %v12305_v11 }
 0x602   :  { %8603 = vmatprep.subr.bf16.mxu0 %v13967_v41 }
 0x605   :  { %8605 = vmatpush3.bf16.msra.mxu0 %v12331_v12 }
 0x606   :  { %8606 = vmatprep.subr.bf16.mxu0 %v13967_v41 }
 0x609   :  { %8608 = vmatpush3.bf16.msra.mxu0 %v12339_v17 }
 0x60a   :  { %8609 = vmatprep.subr.bf16.mxu0 %v13967_v41 }
 0x60d   :  { %8611 = vmatpush3.bf16.msra.mxu0 %v12347_v34 }
 0x60e   :  { %8612 = vmatprep.subr.bf16.mxu0 %v13967_v41 }
 0x611   :  { %8614 = vmatpush3.bf16.msra.mxu0 %v12447_v32 }
 0x612   :  { %8615 = vmatprep.subr.bf16.mxu0 %v13967_v41 }
 0x615   :  { %8617 = vmatpush3.bf16.msra.mxu0 %v12451_v62  ;;  %v8720_v62 = vpop.eup %8719 }
 0x616   :  { %8618 = vmatprep.subr.bf16.mxu0 %v13967_v41  ;;  %v6174_v41 = vmul.f32 %v8720_v62, %v6172_v52 }
 0x619   :  { %8620 = vmatpush3.bf16.msra.mxu0 %v12457_v38  ;;  %v6176_v38 = vsel %vm6175_vm4, %v6172_v52, %v6174_v41 }
 0x61a   :  { %v6179_v15 = vsel %vm6177_vm5, %v6178_v14, %v6176_v38 }
 0x61b   :  { %v6191_v59 = vmul.f32 %v6179_v15, %v6179_v15 }
 0x61c   :  { %7419 = vmatmul.mubr.f32.vlgmr.msra.gmra.mrb[6].mxu0 %v12556_v20 }
 0x61d   :  { %v6192_v8 = vmul.f32 %v6191_v59, %v6191_v59 }
 0x61f   :  { %v6193_v44 = vmul.f32 %v6192_v8, %v6192_v8 }
 0x621   :  { %v6204_v39 = vmul.f32 %v6193_v44, %v6191_v59 }
 0x623   :  { %v6205_v46 = vmul.f32 20.0, %v6204_v39 }
 0x6ef   :  { %v6165_v2 = vpop.f32.mrb[6].mxu0 }
 0x6f0   :  { %v6180_v11 = vmul.f32 %v6165_v2, %v6165_v2  ;;  %v6198_v6 = vrot.slane %v6165_v2, 2  ;;  %v7420_v12 = vpop.f32.mrb[7].mxu0 }
 0x6f2   :  { %v6181_v17 = vsel %vm4848_vm3, %v6180_v11, 0.0  ;;  %v6200_v34 = vmul.f32 %v12271_v0, %v6198_v6  ;;  %v6194_v0 = vmul.f32 %v6193_v44, %v6179_v15 }
 0x6f3   :  { %6182 = vadd.xlane.f32.xlu0 %v6181_v17 }
 0x6f4   :  { %v6201_v32 = vsel %vm4848_vm3, %v6200_v34, 0.0  ;;  %v6195_v55 = vmul.f32 60.0, %v6194_v0 }
 0x6f5   :  { %6202 = vadd.xlane.f32.xlu1 %v6201_v32 }
 0x780   :  { %v6183_v23 = vpop.xlane.xlu0 %6182 }
 0x781   :  { %8721 = vrsqrt.f32 %v6183_v23  ;;  %vm6186_vm6 = vcmp.eq.f32.partialorder %v6183_v23, inf  ;;  %v6189_v57 = vand.u32 2147483648, %v6183_v23  ;;  %vm6188_vm7 = vcmp.eq.f32.partialorder %v6183_v23, 0.0 }
 0x782   :  { %v6203_v1 = vpop.xlane.xlu1 %6202 }
 0x783   :  { %v6206_v10 = vsub.f32 %v6203_v1, %v6205_v46 }
 0x785   :  { %vm6208_vm9 = vcmp.lt.f32.partialorder %v6206_v10, -1e-08 }
 0x78b   :  { %v8722_v40 = vpop.eup %8721 }
 0x78c   :  { %v6185_v24 = vmul.f32 %v8722_v40, %v6183_v23 }
 0x78e   :  { %v6187_v20 = vsel %vm6186_vm6, %v6183_v23, %v6185_v24 }
 0x78f   :  { %v6190_v19 = vsel %vm6188_vm7, %v6189_v57, %v6187_v20 }
 0x790   :  { %v6196_v5 = vsub.f32 %v6190_v19, %v6195_v55 }
 0x792   :  { %vm6207_vm8 = vcmp.gt.f32.partialorder %v6196_v5, 1e-08 }
 0x793   :  { %vm6209_vm10 = vmor %vm6207_vm8, %vm6208_vm9 }
 0x794   :  { %v6212_v42 = vsel %vm6209_vm10, 0.0, %v12262_v9 }
 0x795   :  { %v6213_v53 = vadd.f32 %v6212_v42, %v12262_v9 }
 0x797   :  { %v6214_v51 = vmul.f32 0.5, %v6213_v53 }
 0x799   :  { %6215 = vst [vmem:[#allocation11] sm:$0x3] %v6214_v51 }
 0x79a   :  { %8844 = shalt.err (!%p8841_p2)
}
 0x79b   :  { %s8845_s19 = scalar_lea.hbm %s12684_s7, 32 }
 0x79c   :  { %p8846_p3 = scmp.ne.s32.totalorder %s12684_s7, %s8845_s19  ;;  %p8849_p4 = scmp.lt.u32.totalorder %s8845_s19, %s12684_s7 }
 0x79e   :  { %p8851_p5 = pnand %p8849_p4, %p8846_p3 }
 0x7a0   :  { %8854 = shalt.err (!%p8851_p5)
}
 0x7a1   :  { %6225 = dma.vmem_to_hbm [thread:$0]  %s6223_s15, 32, %s12684_s7, [#allocation4]  }
 0x7a2   :  { %8861 = dma.done.wait [#allocation4], 32  }
 0x7a3   :  { %8862 = vsyncadd [#allocation4], 4294967264 }
 0x7a4   :  { %6229 = vsyncpa [#allocation3], 1 }
 0x7a5   :  { %6230 = vsyncpa [#allocation6], 1 }
 0x7a6   :  { %6231 = vsyncpa [#allocation9], 1 }
 0x7a7   :  { %6232 = vsyncpa [#allocation4], 1 }

</bundles_post_ra>
